<compile_context>
chip_gen: v7x
topology: tpu7x:2x2x1
jax: 0.10.0
libtpu: 0.0.40
codegen_flags: <defaults>
</compile_context>

<pallas_src>
import functools
import jax
import jax.numpy as jnp
from jax import lax
from jax.experimental import pallas as pl
from jax.experimental.pallas import tpu as pltpu


# ----------------------------------------------------------------------------
# Fused flow kernel: encoders + correlation + iterated softmax soft-argmax flow
# ----------------------------------------------------------------------------

def _make_fused_flow_kernel(H, W, iters, inv_sqrt_f, Bsub, F):
    HW = H * W
    inv_sqrt_f = float(inv_sqrt_f)

    def kernel(ref_x_ref, que_x_ref, aug_ref, w_ref_ref, b_ref_ref,
               w_que_ref, b_que_ref, out_ref):
        # constant [x; y; 1] grid (hoisted to the wrapper; constant block index so it
        # is only DMA'd on the first grid step)
        aug = aug_ref[...]                       # (3, HW) f32
        coords_t = aug[0:2, :]                   # (2, HW)
        aug_bf = aug.astype(jnp.bfloat16)

        wr = w_ref_ref[...]                      # (F, C2) bf16
        wq = w_que_ref[...]                      # (F, C)  bf16
        br = b_ref_ref[...]                      # (F, 1)  f32
        bq = b_que_ref[...]                      # (F, 1)  f32
        ones_div_hw = jnp.full((1, HW), 1.0 / HW, jnp.float32)

        # ---- merged pointwise (1x1 conv) encoders over all Bsub elements ----
        # channel-major lane-dense blocks; one (F,C)x(C, Bsub*HW) dot per encoder
        xr_all = jnp.concatenate([ref_x_ref[b] for b in range(Bsub)], axis=1)
        xq_all = jnp.concatenate([que_x_ref[b] for b in range(Bsub)], axis=1)
        fr_all = jnp.maximum(
            jnp.dot(wr, xr_all, preferred_element_type=jnp.float32) + br, 0.0)
        fq_all = jnp.maximum(
            jnp.dot(wq, xq_all, preferred_element_type=jnp.float32) + bq, 0.0)

        for b in range(Bsub):                    # static unroll (Bsub small)
            fr = fr_all[:, b * HW:(b + 1) * HW]  # (F, HW) f32
            fq = fq_all[:, b * HW:(b + 1) * HW]  # (F, HW) f32

            # mean reference feature -> first F lanes of the last output row
            fr_t = jnp.transpose(fr)             # (HW, F) f32
            mf = jnp.dot(ones_div_hw, fr_t, preferred_element_type=jnp.float32)
            out_ref[b, 2 * iters:2 * iters + 1, :] = jnp.zeros((1, HW), jnp.float32)
            out_ref[b, 2 * iters:2 * iters + 1, 0:F] = mf

            # ---- all-pairs correlation, ONCE; scale folded into the small operand ----
            corr = jnp.dot((fr_t * inv_sqrt_f).astype(jnp.bfloat16),
                           fq.astype(jnp.bfloat16),
                           preferred_element_type=jnp.float32)          # (HW, HW)
            centered = corr - jnp.max(corr, axis=-1, keepdims=True)     # <= 0

            # ---- exp ONCE; per-iteration temperatures via power chain ----
            # exp(centered * (1 + it)) == exp(centered) ** (1 + it)
            p1 = jnp.exp(centered)
            p_pows = [p1]
            for _ in range(1, iters):
                p_pows.append(p_pows[-1] * p1)
            # NOTE: bf16 softmax weights limit soft-argmax precision to ~8 mantissa
            # bits; acceptable for this stand-in core (no parity target).
            p_all = jnp.concatenate([p.astype(jnp.bfloat16) for p in p_pows],
                                    axis=0)                             # (iters*HW, HW)

            # one batched MXU dot: [sum p*x ; sum p*y ; sum p] for all iterations
            res = lax.dot_general(aug_bf, p_all, (((1,), (1,)), ((), ())),
                                  preferred_element_type=jnp.float32)   # (3, iters*HW)
            inv_den = pl.reciprocal(res[2:3, :], approx=True)           # EUP, ~2^-12 rel err
            exp_xy = res[0:2, :] * inv_den                              # (2, iters*HW)

            # ---- EMA refinement; direct lane-dense slice stores ----
            flow_acc = jnp.zeros((2, HW), jnp.float32)
            for it in range(iters):
                d = exp_xy[:, it * HW:(it + 1) * HW] - coords_t
                flow_acc = 0.5 * flow_acc + 0.5 * d
                out_ref[b, 2 * it:2 * it + 2, :] = flow_acc

    return kernel


def _flow_fused(ref_x, que_x, aug, params, H, W, iters):
    B, C2, HW = ref_x.shape
    C = que_x.shape[1]
    F = params["w_ref"].shape[1]
    R = 2 * iters + 1                     # 2*iters flow rows + 1 mean-feature row

    # sub-batch 2 elements per grid step (amortize per-step overhead) while keeping
    # grid length >= 2 so both v7x TensorCores get work
    Bsub = 2 if (B % 2 == 0 and B >= 2) else 1
    G = B // Bsub

    w_ref_t = params["w_ref"].T.astype(jnp.bfloat16)   # (F, C2)
    w_que_t = params["w_que"].T.astype(jnp.bfloat16)   # (F, C)
    b_ref = params["b_ref"].reshape(F, 1)
    b_que = params["b_que"].reshape(F, 1)

    kernel = _make_fused_flow_kernel(H, W, iters, 1.0 / (F ** 0.5), Bsub, F)
    packed = pl.pallas_call(
        kernel,
        out_shape=jax.ShapeDtypeStruct((B, R, HW), jnp.float32),
        grid=(G,),
        in_specs=[
            pl.BlockSpec((Bsub, C2, HW), lambda g: (g, 0, 0)),
            pl.BlockSpec((Bsub, C, HW), lambda g: (g, 0, 0)),
            pl.BlockSpec((3, HW), lambda g: (0, 0)),
            pl.BlockSpec((F, C2), lambda g: (0, 0)),
            pl.BlockSpec((F, 1), lambda g: (0, 0)),
            pl.BlockSpec((F, C), lambda g: (0, 0)),
            pl.BlockSpec((F, 1), lambda g: (0, 0)),
        ],
        out_specs=pl.BlockSpec((Bsub, R, HW), lambda g: (g, 0, 0)),
        compiler_params=pltpu.CompilerParams(
            dimension_semantics=("parallel",),
            vmem_limit_bytes=32 * 1024 * 1024),
    )(ref_x, que_x, aug, w_ref_t, b_ref, w_que_t, b_que)
    return packed


# ----------------------------------------------------------------------------
# RAFT_custom stand-in (deterministic synthetic weights)
# ----------------------------------------------------------------------------

def init_params(feat_dim=32, img_channels=3, key=jax.random.PRNGKey(42)):
    k1, k2, k3, k4, k5, k6 = jax.random.split(key, 6)
    s = 0.1
    return {
        "w_ref": s * jax.random.normal(k1, (2 * img_channels, feat_dim), jnp.float32),
        "b_ref": s * jax.random.normal(k2, (1, feat_dim), jnp.float32),
        "w_que": s * jax.random.normal(k3, (img_channels, feat_dim), jnp.float32),
        "b_que": s * jax.random.normal(k4, (1, feat_dim), jnp.float32),
        "w_pose": s * jax.random.normal(k5, (feat_dim + 2, 16), jnp.float32),
        "b_pose": s * jax.random.normal(k6, (1, 16), jnp.float32),
    }


def raft_custom(params, ref_img, que_img, ref_K, que_K, ref_RT, ref_geo, ref_mask,
                iters=3):
    B, c, H, W = ref_img.shape
    HW = H * W
    F = params["w_ref"].shape[1]

    # channel-major (B, C, HW): plain reshape (no transpose), bf16 for the MXU / DMA
    ref_x = (jnp.concatenate([ref_img, ref_geo], axis=1) * ref_mask)    # (B, 2c, H, W)
    ref_x = ref_x.reshape(B, 2 * c, HW).astype(jnp.bfloat16)
    que_x = que_img.reshape(B, c, HW).astype(jnp.bfloat16)

    # [x; y; 1] coordinate matrix, built once here (hoisted out of the kernel)
    ys, xs = jnp.meshgrid(jnp.arange(H, dtype=jnp.float32),
                          jnp.arange(W, dtype=jnp.float32), indexing="ij")
    aug = jnp.stack([xs.reshape(HW), ys.reshape(HW),
                     jnp.ones((HW,), jnp.float32)], axis=0)             # (3, HW)

    # single fused Pallas call: encoders + correlation + all flow iterations
    packed = _flow_fused(ref_x, que_x, aug, params, H, W, iters)
    flows_t = packed[:, :2 * iters, :]                                  # (B, 2*iters, HW)
    mean_feat = packed[:, 2 * iters, :F]                                # (B, F)

    eye4 = jnp.eye(4, dtype=jnp.float32)
    flows, pred_RTs = [], []
    for it in range(iters):
        f_t = flows_t[:, 2 * it:2 * it + 2, :]                          # (B, 2, HW)
        flows.append(f_t.reshape(B, 2, H, W))

        # tiny pose head: plain XLA (far below MXU granularity; not worth a kernel)
        mean_flow = jnp.mean(f_t, axis=-1)                              # (B, 2)
        pooled = jnp.concatenate([mean_flow, mean_feat], axis=-1)       # (B, F+2)
        delta = 0.01 * (pooled @ params["w_pose"] + params["b_pose"])   # (B, 16)
        delta = delta.reshape(B, 4, 4)
        pred_RTs.append(jnp.matmul(eye4 + delta, ref_RT))               # (B, 4, 4)

    return flows, pred_RTs


# ----------------------------------------------------------------------------
# OpticalFlowCustom.forward equivalent
# ----------------------------------------------------------------------------

def optical_flow_custom(params, ref_img, que_img, ref_K_img, que_K_img,
                        ref_RT, ref_geo, ref_mask):
    N = max(ref_img.shape[1], que_img.shape[1])
    bsz, _, c, H, W = ref_img.shape

    ref_img = jnp.broadcast_to(ref_img, (bsz, N, c, H, W)).reshape(bsz * N, c, H, W)
    que_img = jnp.broadcast_to(que_img, (bsz, N, c, H, W)).reshape(bsz * N, c, H, W)
    ref_K_img = jnp.broadcast_to(ref_K_img, (bsz, N, 3, 3)).reshape(bsz * N, 3, 3)
    que_K_img = jnp.broadcast_to(que_K_img, (bsz, N, 3, 3)).reshape(bsz * N, 3, 3)
    ref_RT = jnp.broadcast_to(ref_RT, (bsz, N, 4, 4)).reshape(bsz * N, 4, 4)
    ref_geo = jnp.broadcast_to(ref_geo, (bsz, N, c, H, W)).reshape(bsz * N, c, H, W)
    ref_mask = jnp.broadcast_to(ref_mask, (bsz, N, 1, H, W)).reshape(bsz * N, 1, H, W)

    flow, pred_RT = raft_custom(params, ref_img, que_img, ref_K_img, que_K_img,
                                ref_RT, ref_geo, ref_mask)

    flow = [f.reshape(bsz, N, 2, H, W) for f in flow]
    pred_RT = [p.reshape(bsz, N, 4, 4) for p in pred_RT]
    return flow, pred_RT


# ----------------------------------------------------------------------------
# main
# ----------------------------------------------------------------------------

if __name__ == "__main__":
    key = jax.random.PRNGKey(0)
    ks = jax.random.split(key, 7)

    bsz, N, c, H, W = 2, 2, 3, 16, 16

    # ref_* come with a size-1 view axis and get expanded to N inside forward
    ref_img = jax.random.uniform(ks[0], (bsz, 1, c, H, W), jnp.float32)
    que_img = jax.random.uniform(ks[1], (bsz, N, c, H, W), jnp.float32)
    ref_K_img = jnp.broadcast_to(jnp.eye(3, dtype=jnp.float32) * 100.0,
                                 (bsz, 1, 3, 3)) + \
        0.01 * jax.random.normal(ks[2], (bsz, 1, 3, 3), jnp.float32)
    que_K_img = jnp.broadcast_to(jnp.eye(3, dtype=jnp.float32) * 100.0,
                                 (bsz, N, 3, 3)) + \
        0.01 * jax.random.normal(ks[3], (bsz, N, 3, 3), jnp.float32)
    ref_RT = jnp.broadcast_to(jnp.eye(4, dtype=jnp.float32), (bsz, 1, 4, 4)) + \
        0.01 * jax.random.normal(ks[4], (bsz, 1, 4, 4), jnp.float32)
    ref_geo = jax.random.uniform(ks[5], (bsz, 1, c, H, W), jnp.float32)
    ref_mask = (jax.random.uniform(ks[6], (bsz, 1, 1, H, W), jnp.float32) > 0.3
                ).astype(jnp.float32)

    params = init_params(feat_dim=32, img_channels=c)

    fwd = jax.jit(functools.partial(optical_flow_custom, params))
    flow, pred_RT = fwd(ref_img, que_img, ref_K_img, que_K_img,
                        ref_RT, ref_geo, ref_mask)

    jax.block_until_ready(flow)
    jax.block_until_ready(pred_RT)

    assert len(flow) == 3 and len(pred_RT) == 3
    assert flow[0].shape == (bsz, N, 2, H, W)
    assert pred_RT[0].shape == (bsz, N, 4, 4)
    assert all(bool(jnp.all(jnp.isfinite(f))) for f in flow)
    assert all(bool(jnp.all(jnp.isfinite(p))) for p in pred_RT)

    print("KERNEL_OK")
</pallas_src>

<mosaic_0001>
module attributes {stable_mosaic.version = 11 : i64} {
  func.func @kernel(%arg0: i32, %arg1: memref<2x6x256xbf16, #tpu.memory_space<vmem>>, %arg2: memref<2x3x256xbf16, #tpu.memory_space<vmem>>, %arg3: memref<3x256xf32, #tpu.memory_space<vmem>>, %arg4: memref<32x6xbf16, #tpu.memory_space<vmem>>, %arg5: memref<32x1xf32, #tpu.memory_space<vmem>>, %arg6: memref<32x3xbf16, #tpu.memory_space<vmem>>, %arg7: memref<32x1xf32, #tpu.memory_space<vmem>>, %arg8: memref<2x7x256xf32, #tpu.memory_space<vmem>>) attributes {dimension_semantics = [#tpu.dimension_semantics<parallel>], iteration_bounds = array<i64: 2>, scalar_prefetch = 0 : i64, scratch_operands = 0 : i64, tpu.core_type = #tpu.core_type<tc>, window_params = [{transform_indices = @transform_0, window_bounds = array<i64: 2, 6, 256>}, {transform_indices = @transform_1, window_bounds = array<i64: 2, 3, 256>}, {pipeline_mode = #tpu.pipeline_mode<synchronous>, transform_indices = @transform_2, window_bounds = array<i64: 3, 256>}, {pipeline_mode = #tpu.pipeline_mode<synchronous>, transform_indices = @transform_3, window_bounds = array<i64: 32, 6>}, {pipeline_mode = #tpu.pipeline_mode<synchronous>, transform_indices = @transform_4, window_bounds = array<i64: 32, 1>}, {pipeline_mode = #tpu.pipeline_mode<synchronous>, transform_indices = @transform_5, window_bounds = array<i64: 32, 3>}, {pipeline_mode = #tpu.pipeline_mode<synchronous>, transform_indices = @transform_6, window_bounds = array<i64: 32, 1>}, {transform_indices = @transform_7, window_bounds = array<i64: 2, 7, 256>}]} {
    %c0 = arith.constant 0 : index
    %c0_0 = arith.constant 0 : index
    %0 = vector.load %arg3[%c0, %c0_0] : memref<3x256xf32, #tpu.memory_space<vmem>>, vector<3x256xf32>
    %1 = vector.extract_strided_slice %0 {offsets = [0, 0], sizes = [2, 256], strides = [1, 1]} : vector<3x256xf32> to vector<2x256xf32>
    %2 = arith.truncf %0 : vector<3x256xf32> to vector<3x256xbf16>
    %c0_1 = arith.constant 0 : index
    %c0_2 = arith.constant 0 : index
    %3 = vector.load %arg4[%c0_1, %c0_2] : memref<32x6xbf16, #tpu.memory_space<vmem>>, vector<32x6xbf16>
    %c0_3 = arith.constant 0 : index
    %c0_4 = arith.constant 0 : index
    %4 = vector.load %arg6[%c0_3, %c0_4] : memref<32x3xbf16, #tpu.memory_space<vmem>>, vector<32x3xbf16>
    %c0_5 = arith.constant 0 : index
    %c0_6 = arith.constant 0 : index
    %5 = vector.load %arg5[%c0_5, %c0_6] : memref<32x1xf32, #tpu.memory_space<vmem>>, vector<32x1xf32>
    %c0_7 = arith.constant 0 : index
    %c0_8 = arith.constant 0 : index
    %6 = vector.load %arg7[%c0_7, %c0_8] : memref<32x1xf32, #tpu.memory_space<vmem>>, vector<32x1xf32>
    %cst = arith.constant 3.906250e-03 : f32
    %7 = vector.broadcast %cst : f32 to vector<1x256xf32>
    %c0_9 = arith.constant 0 : index
    %c0_10 = arith.constant 0 : index
    %c0_11 = arith.constant 0 : index
    %8 = vector.load %arg1[%c0_9, %c0_10, %c0_11] : memref<2x6x256xbf16, #tpu.memory_space<vmem>>, vector<1x6x256xbf16>
    %9 = vector.shape_cast %8 : vector<1x6x256xbf16> to vector<6x256xbf16>
    %c1 = arith.constant 1 : index
    %c0_12 = arith.constant 0 : index
    %c0_13 = arith.constant 0 : index
    %10 = vector.load %arg1[%c1, %c0_12, %c0_13] : memref<2x6x256xbf16, #tpu.memory_space<vmem>>, vector<1x6x256xbf16>
    %11 = vector.shape_cast %10 : vector<1x6x256xbf16> to vector<6x256xbf16>
    %12 = tpu.concatenate %9, %11 in 1 : vector<6x256xbf16>, vector<6x256xbf16> -> vector<6x512xbf16>
    %c0_14 = arith.constant 0 : index
    %c0_15 = arith.constant 0 : index
    %c0_16 = arith.constant 0 : index
    %13 = vector.load %arg2[%c0_14, %c0_15, %c0_16] : memref<2x3x256xbf16, #tpu.memory_space<vmem>>, vector<1x3x256xbf16>
    %14 = vector.shape_cast %13 : vector<1x3x256xbf16> to vector<3x256xbf16>
    %c1_17 = arith.constant 1 : index
    %c0_18 = arith.constant 0 : index
    %c0_19 = arith.constant 0 : index
    %15 = vector.load %arg2[%c1_17, %c0_18, %c0_19] : memref<2x3x256xbf16, #tpu.memory_space<vmem>>, vector<1x3x256xbf16>
    %16 = vector.shape_cast %15 : vector<1x3x256xbf16> to vector<3x256xbf16>
    %17 = tpu.concatenate %14, %16 in 1 : vector<3x256xbf16>, vector<3x256xbf16> -> vector<3x512xbf16>
    %cst_20 = arith.constant dense<0.000000e+00> : vector<32x512xf32>
    %18 = tpu.matmul %3, %12, %cst_20 {dimension_numbers = #tpu.dot_dimension_numbers<[1], [0], [0], [1], [0, 0, 1, 1], [], []>} : vector<32x6xbf16>, vector<6x512xbf16>, vector<32x512xf32> -> vector<32x512xf32>
    %19 = vector.broadcast %5 : vector<32x1xf32> to vector<32x512xf32>
    %20 = arith.addf %18, %19 : vector<32x512xf32>
    %cst_21 = arith.constant 0.000000e+00 : f32
    %21 = vector.broadcast %cst_21 : f32 to vector<32x512xf32>
    %22 = arith.maximumf %20, %21 : vector<32x512xf32>
    %cst_22 = arith.constant dense<0.000000e+00> : vector<32x512xf32>
    %23 = tpu.matmul %4, %17, %cst_22 {dimension_numbers = #tpu.dot_dimension_numbers<[1], [0], [0], [1], [0, 0, 1, 1], [], []>} : vector<32x3xbf16>, vector<3x512xbf16>, vector<32x512xf32> -> vector<32x512xf32>
    %24 = vector.broadcast %6 : vector<32x1xf32> to vector<32x512xf32>
    %25 = arith.addf %23, %24 : vector<32x512xf32>
    %cst_23 = arith.constant 0.000000e+00 : f32
    %26 = vector.broadcast %cst_23 : f32 to vector<32x512xf32>
    %27 = arith.maximumf %25, %26 : vector<32x512xf32>
    %28 = vector.extract_strided_slice %22 {offsets = [0, 0], sizes = [32, 256], strides = [1, 1]} : vector<32x512xf32> to vector<32x256xf32>
    %29 = vector.extract_strided_slice %27 {offsets = [0, 0], sizes = [32, 256], strides = [1, 1]} : vector<32x512xf32> to vector<32x256xf32>
    %30 = tpu.transpose %28, [1, 0] : vector<32x256xf32> -> vector<256x32xf32>
    %cst_24 = arith.constant dense<0.000000e+00> : vector<1x32xf32>
    %31 = tpu.matmul %7, %30, %cst_24 {dimension_numbers = #tpu.dot_dimension_numbers<[1], [0], [0], [1], [0, 0, 1, 1], [], []>} : vector<1x256xf32>, vector<256x32xf32>, vector<1x32xf32> -> vector<1x32xf32>
    %cst_25 = arith.constant 0.000000e+00 : f32
    %32 = vector.broadcast %cst_25 : f32 to vector<1x256xf32>
    %c0_26 = arith.constant 0 : index
    %c6 = arith.constant 6 : index
    %c0_27 = arith.constant 0 : index
    %33 = vector.load %arg8[%c0_26, %c6, %c0_27] : memref<2x7x256xf32, #tpu.memory_space<vmem>>, vector<1x1x256xf32>
    %34 = vector.shape_cast %33 : vector<1x1x256xf32> to vector<1x256xf32>
    %35 = vector.shape_cast %32 : vector<1x256xf32> to vector<1x1x256xf32>
    tpu.vector_store %arg8[%c0_26, %c6, %c0_27], %35 {strides = array<i32>} : memref<2x7x256xf32, #tpu.memory_space<vmem>>, vector<1x1x256xf32>,
    %c0_28 = arith.constant 0 : index
    %c6_29 = arith.constant 6 : index
    %c0_30 = arith.constant 0 : index
    %36 = vector.load %arg8[%c0_28, %c6_29, %c0_30] : memref<2x7x256xf32, #tpu.memory_space<vmem>>, vector<1x1x32xf32>
    %37 = vector.shape_cast %36 : vector<1x1x32xf32> to vector<1x32xf32>
    %38 = vector.shape_cast %31 : vector<1x32xf32> to vector<1x1x32xf32>
    tpu.vector_store %arg8[%c0_28, %c6_29, %c0_30], %38 {strides = array<i32>} : memref<2x7x256xf32, #tpu.memory_space<vmem>>, vector<1x1x32xf32>,
    %cst_31 = arith.constant 0.176776692 : f32
    %39 = vector.broadcast %cst_31 : f32 to vector<256x32xf32>
    %40 = arith.mulf %30, %39 : vector<256x32xf32>
    %41 = arith.truncf %40 : vector<256x32xf32> to vector<256x32xbf16>
    %42 = arith.truncf %29 : vector<32x256xf32> to vector<32x256xbf16>
    %cst_32 = arith.constant dense<0.000000e+00> : vector<256x256xf32>
    %43 = tpu.matmul %41, %42, %cst_32 {dimension_numbers = #tpu.dot_dimension_numbers<[1], [0], [0], [1], [0, 0, 1, 1], [], []>} : vector<256x32xbf16>, vector<32x256xbf16>, vector<256x256xf32> -> vector<256x256xf32>
    %cst_33 = arith.constant dense<0xFF800000> : vector<256xf32>
    %44 = vector.multi_reduction <maximumf>, %43, %cst_33 [1] : vector<256x256xf32> to vector<256xf32>
    %45 = vector.shape_cast %44 : vector<256xf32> to vector<256x1xf32>
    %46 = vector.broadcast %45 : vector<256x1xf32> to vector<256x256xf32>
    %47 = arith.subf %43, %46 : vector<256x256xf32>
    %48 = math.exp %47 : vector<256x256xf32>
    %49 = arith.mulf %48, %48 : vector<256x256xf32>
    %50 = arith.mulf %49, %48 : vector<256x256xf32>
    %51 = arith.truncf %48 : vector<256x256xf32> to vector<256x256xbf16>
    %52 = arith.truncf %49 : vector<256x256xf32> to vector<256x256xbf16>
    %53 = arith.truncf %50 : vector<256x256xf32> to vector<256x256xbf16>
    %54 = tpu.concatenate %51, %52, %53 in 0 : vector<256x256xbf16>, vector<256x256xbf16>, vector<256x256xbf16> -> vector<768x256xbf16>
    %cst_34 = arith.constant dense<0.000000e+00> : vector<3x768xf32>
    %55 = tpu.matmul %2, %54, %cst_34 {dimension_numbers = #tpu.dot_dimension_numbers<[1], [1], [0], [0], [0, 0, 1, 0], [], []>} : vector<3x256xbf16>, vector<768x256xbf16>, vector<3x768xf32> -> vector<3x768xf32>
    %56 = vector.extract_strided_slice %55 {offsets = [2, 0], sizes = [1, 768], strides = [1, 1]} : vector<3x768xf32> to vector<1x768xf32>
    %57 = tpu.reciprocal %56 {approx = true} : vector<1x768xf32> -> vector<1x768xf32>
    %58 = vector.extract_strided_slice %55 {offsets = [0, 0], sizes = [2, 768], strides = [1, 1]} : vector<3x768xf32> to vector<2x768xf32>
    %59 = vector.broadcast %57 : vector<1x768xf32> to vector<2x768xf32>
    %60 = arith.mulf %58, %59 : vector<2x768xf32>
    %cst_35 = arith.constant 0.000000e+00 : f32
    %61 = vector.broadcast %cst_35 : f32 to vector<2x256xf32>
    %62 = vector.extract_strided_slice %60 {offsets = [0, 0], sizes = [2, 256], strides = [1, 1]} : vector<2x768xf32> to vector<2x256xf32>
    %63 = arith.subf %62, %1 : vector<2x256xf32>
    %cst_36 = arith.constant 5.000000e-01 : f32
    %64 = vector.broadcast %cst_36 : f32 to vector<2x256xf32>
    %65 = arith.mulf %64, %61 : vector<2x256xf32>
    %cst_37 = arith.constant 5.000000e-01 : f32
    %66 = vector.broadcast %cst_37 : f32 to vector<2x256xf32>
    %67 = arith.mulf %66, %63 : vector<2x256xf32>
    %68 = arith.addf %65, %67 : vector<2x256xf32>
    %c0_38 = arith.constant 0 : index
    %c0_39 = arith.constant 0 : index
    %c0_40 = arith.constant 0 : index
    %69 = vector.load %arg8[%c0_38, %c0_39, %c0_40] : memref<2x7x256xf32, #tpu.memory_space<vmem>>, vector<1x2x256xf32>
    %70 = vector.shape_cast %69 : vector<1x2x256xf32> to vector<2x256xf32>
    %71 = vector.shape_cast %68 : vector<2x256xf32> to vector<1x2x256xf32>
    tpu.vector_store %arg8[%c0_38, %c0_39, %c0_40], %71 {strides = array<i32>} : memref<2x7x256xf32, #tpu.memory_space<vmem>>, vector<1x2x256xf32>,
    %72 = vector.extract_strided_slice %60 {offsets = [0, 256], sizes = [2, 256], strides = [1, 1]} : vector<2x768xf32> to vector<2x256xf32>
    %73 = arith.subf %72, %1 : vector<2x256xf32>
    %cst_41 = arith.constant 5.000000e-01 : f32
    %74 = vector.broadcast %cst_41 : f32 to vector<2x256xf32>
    %75 = arith.mulf %74, %68 : vector<2x256xf32>
    %cst_42 = arith.constant 5.000000e-01 : f32
    %76 = vector.broadcast %cst_42 : f32 to vector<2x256xf32>
    %77 = arith.mulf %76, %73 : vector<2x256xf32>
    %78 = arith.addf %75, %77 : vector<2x256xf32>
    %c0_43 = arith.constant 0 : index
    %c2 = arith.constant 2 : index
    %c0_44 = arith.constant 0 : index
    %79 = vector.load %arg8[%c0_43, %c2, %c0_44] : memref<2x7x256xf32, #tpu.memory_space<vmem>>, vector<1x2x256xf32>
    %80 = vector.shape_cast %79 : vector<1x2x256xf32> to vector<2x256xf32>
    %81 = vector.shape_cast %78 : vector<2x256xf32> to vector<1x2x256xf32>
    tpu.vector_store %arg8[%c0_43, %c2, %c0_44], %81 {strides = array<i32>} : memref<2x7x256xf32, #tpu.memory_space<vmem>>, vector<1x2x256xf32>,
    %82 = vector.extract_strided_slice %60 {offsets = [0, 512], sizes = [2, 256], strides = [1, 1]} : vector<2x768xf32> to vector<2x256xf32>
    %83 = arith.subf %82, %1 : vector<2x256xf32>
    %cst_45 = arith.constant 5.000000e-01 : f32
    %84 = vector.broadcast %cst_45 : f32 to vector<2x256xf32>
    %85 = arith.mulf %84, %78 : vector<2x256xf32>
    %cst_46 = arith.constant 5.000000e-01 : f32
    %86 = vector.broadcast %cst_46 : f32 to vector<2x256xf32>
    %87 = arith.mulf %86, %83 : vector<2x256xf32>
    %88 = arith.addf %85, %87 : vector<2x256xf32>
    %c0_47 = arith.constant 0 : index
    %c4 = arith.constant 4 : index
    %c0_48 = arith.constant 0 : index
    %89 = vector.load %arg8[%c0_47, %c4, %c0_48] : memref<2x7x256xf32, #tpu.memory_space<vmem>>, vector<1x2x256xf32>
    %90 = vector.shape_cast %89 : vector<1x2x256xf32> to vector<2x256xf32>
    %91 = vector.shape_cast %88 : vector<2x256xf32> to vector<1x2x256xf32>
    tpu.vector_store %arg8[%c0_47, %c4, %c0_48], %91 {strides = array<i32>} : memref<2x7x256xf32, #tpu.memory_space<vmem>>, vector<1x2x256xf32>,
    %92 = vector.extract_strided_slice %22 {offsets = [0, 256], sizes = [32, 256], strides = [1, 1]} : vector<32x512xf32> to vector<32x256xf32>
    %93 = vector.extract_strided_slice %27 {offsets = [0, 256], sizes = [32, 256], strides = [1, 1]} : vector<32x512xf32> to vector<32x256xf32>
    %94 = tpu.transpose %92, [1, 0] : vector<32x256xf32> -> vector<256x32xf32>
    %cst_49 = arith.constant dense<0.000000e+00> : vector<1x32xf32>
    %95 = tpu.matmul %7, %94, %cst_49 {dimension_numbers = #tpu.dot_dimension_numbers<[1], [0], [0], [1], [0, 0, 1, 1], [], []>} : vector<1x256xf32>, vector<256x32xf32>, vector<1x32xf32> -> vector<1x32xf32>
    %cst_50 = arith.constant 0.000000e+00 : f32
    %96 = vector.broadcast %cst_50 : f32 to vector<1x256xf32>
    %c1_51 = arith.constant 1 : index
    %c6_52 = arith.constant 6 : index
    %c0_53 = arith.constant 0 : index
    %97 = vector.load %arg8[%c1_51, %c6_52, %c0_53] : memref<2x7x256xf32, #tpu.memory_space<vmem>>, vector<1x1x256xf32>
    %98 = vector.shape_cast %97 : vector<1x1x256xf32> to vector<1x256xf32>
    %99 = vector.shape_cast %96 : vector<1x256xf32> to vector<1x1x256xf32>
    tpu.vector_store %arg8[%c1_51, %c6_52, %c0_53], %99 {strides = array<i32>} : memref<2x7x256xf32, #tpu.memory_space<vmem>>, vector<1x1x256xf32>,
    %c1_54 = arith.constant 1 : index
    %c6_55 = arith.constant 6 : index
    %c0_56 = arith.constant 0 : index
    %100 = vector.load %arg8[%c1_54, %c6_55, %c0_56] : memref<2x7x256xf32, #tpu.memory_space<vmem>>, vector<1x1x32xf32>
    %101 = vector.shape_cast %100 : vector<1x1x32xf32> to vector<1x32xf32>
    %102 = vector.shape_cast %95 : vector<1x32xf32> to vector<1x1x32xf32>
    tpu.vector_store %arg8[%c1_54, %c6_55, %c0_56], %102 {strides = array<i32>} : memref<2x7x256xf32, #tpu.memory_space<vmem>>, vector<1x1x32xf32>,
    %cst_57 = arith.constant 0.176776692 : f32
    %103 = vector.broadcast %cst_57 : f32 to vector<256x32xf32>
    %104 = arith.mulf %94, %103 : vector<256x32xf32>
    %105 = arith.truncf %104 : vector<256x32xf32> to vector<256x32xbf16>
    %106 = arith.truncf %93 : vector<32x256xf32> to vector<32x256xbf16>
    %cst_58 = arith.constant dense<0.000000e+00> : vector<256x256xf32>
    %107 = tpu.matmul %105, %106, %cst_58 {dimension_numbers = #tpu.dot_dimension_numbers<[1], [0], [0], [1], [0, 0, 1, 1], [], []>} : vector<256x32xbf16>, vector<32x256xbf16>, vector<256x256xf32> -> vector<256x256xf32>
    %cst_59 = arith.constant dense<0xFF800000> : vector<256xf32>
    %108 = vector.multi_reduction <maximumf>, %107, %cst_59 [1] : vector<256x256xf32> to vector<256xf32>
    %109 = vector.shape_cast %108 : vector<256xf32> to vector<256x1xf32>
    %110 = vector.broadcast %109 : vector<256x1xf32> to vector<256x256xf32>
    %111 = arith.subf %107, %110 : vector<256x256xf32>
    %112 = math.exp %111 : vector<256x256xf32>
    %113 = arith.mulf %112, %112 : vector<256x256xf32>
    %114 = arith.mulf %113, %112 : vector<256x256xf32>
    %115 = arith.truncf %112 : vector<256x256xf32> to vector<256x256xbf16>
    %116 = arith.truncf %113 : vector<256x256xf32> to vector<256x256xbf16>
    %117 = arith.truncf %114 : vector<256x256xf32> to vector<256x256xbf16>
    %118 = tpu.concatenate %115, %116, %117 in 0 : vector<256x256xbf16>, vector<256x256xbf16>, vector<256x256xbf16> -> vector<768x256xbf16>
    %cst_60 = arith.constant dense<0.000000e+00> : vector<3x768xf32>
    %119 = tpu.matmul %2, %118, %cst_60 {dimension_numbers = #tpu.dot_dimension_numbers<[1], [1], [0], [0], [0, 0, 1, 0], [], []>} : vector<3x256xbf16>, vector<768x256xbf16>, vector<3x768xf32> -> vector<3x768xf32>
    %120 = vector.extract_strided_slice %119 {offsets = [2, 0], sizes = [1, 768], strides = [1, 1]} : vector<3x768xf32> to vector<1x768xf32>
    %121 = tpu.reciprocal %120 {approx = true} : vector<1x768xf32> -> vector<1x768xf32>
    %122 = vector.extract_strided_slice %119 {offsets = [0, 0], sizes = [2, 768], strides = [1, 1]} : vector<3x768xf32> to vector<2x768xf32>
    %123 = vector.broadcast %121 : vector<1x768xf32> to vector<2x768xf32>
    %124 = arith.mulf %122, %123 : vector<2x768xf32>
    %cst_61 = arith.constant 0.000000e+00 : f32
    %125 = vector.broadcast %cst_61 : f32 to vector<2x256xf32>
    %126 = vector.extract_strided_slice %124 {offsets = [0, 0], sizes = [2, 256], strides = [1, 1]} : vector<2x768xf32> to vector<2x256xf32>
    %127 = arith.subf %126, %1 : vector<2x256xf32>
    %cst_62 = arith.constant 5.000000e-01 : f32
    %128 = vector.broadcast %cst_62 : f32 to vector<2x256xf32>
    %129 = arith.mulf %128, %125 : vector<2x256xf32>
    %cst_63 = arith.constant 5.000000e-01 : f32
    %130 = vector.broadcast %cst_63 : f32 to vector<2x256xf32>
    %131 = arith.mulf %130, %127 : vector<2x256xf32>
    %132 = arith.addf %129, %131 : vector<2x256xf32>
    %c1_64 = arith.constant 1 : index
    %c0_65 = arith.constant 0 : index
    %c0_66 = arith.constant 0 : index
    %133 = vector.load %arg8[%c1_64, %c0_65, %c0_66] : memref<2x7x256xf32, #tpu.memory_space<vmem>>, vector<1x2x256xf32>
    %134 = vector.shape_cast %133 : vector<1x2x256xf32> to vector<2x256xf32>
    %135 = vector.shape_cast %132 : vector<2x256xf32> to vector<1x2x256xf32>
    tpu.vector_store %arg8[%c1_64, %c0_65, %c0_66], %135 {strides = array<i32>} : memref<2x7x256xf32, #tpu.memory_space<vmem>>, vector<1x2x256xf32>,
    %136 = vector.extract_strided_slice %124 {offsets = [0, 256], sizes = [2, 256], strides = [1, 1]} : vector<2x768xf32> to vector<2x256xf32>
    %137 = arith.subf %136, %1 : vector<2x256xf32>
    %cst_67 = arith.constant 5.000000e-01 : f32
    %138 = vector.broadcast %cst_67 : f32 to vector<2x256xf32>
    %139 = arith.mulf %138, %132 : vector<2x256xf32>
    %cst_68 = arith.constant 5.000000e-01 : f32
    %140 = vector.broadcast %cst_68 : f32 to vector<2x256xf32>
    %141 = arith.mulf %140, %137 : vector<2x256xf32>
    %142 = arith.addf %139, %141 : vector<2x256xf32>
    %c1_69 = arith.constant 1 : index
    %c2_70 = arith.constant 2 : index
    %c0_71 = arith.constant 0 : index
    %143 = vector.load %arg8[%c1_69, %c2_70, %c0_71] : memref<2x7x256xf32, #tpu.memory_space<vmem>>, vector<1x2x256xf32>
    %144 = vector.shape_cast %143 : vector<1x2x256xf32> to vector<2x256xf32>
    %145 = vector.shape_cast %142 : vector<2x256xf32> to vector<1x2x256xf32>
    tpu.vector_store %arg8[%c1_69, %c2_70, %c0_71], %145 {strides = array<i32>} : memref<2x7x256xf32, #tpu.memory_space<vmem>>, vector<1x2x256xf32>,
    %146 = vector.extract_strided_slice %124 {offsets = [0, 512], sizes = [2, 256], strides = [1, 1]} : vector<2x768xf32> to vector<2x256xf32>
    %147 = arith.subf %146, %1 : vector<2x256xf32>
    %cst_72 = arith.constant 5.000000e-01 : f32
    %148 = vector.broadcast %cst_72 : f32 to vector<2x256xf32>
    %149 = arith.mulf %148, %142 : vector<2x256xf32>
    %cst_73 = arith.constant 5.000000e-01 : f32
    %150 = vector.broadcast %cst_73 : f32 to vector<2x256xf32>
    %151 = arith.mulf %150, %147 : vector<2x256xf32>
    %152 = arith.addf %149, %151 : vector<2x256xf32>
    %c1_74 = arith.constant 1 : index
    %c4_75 = arith.constant 4 : index
    %c0_76 = arith.constant 0 : index
    %153 = vector.load %arg8[%c1_74, %c4_75, %c0_76] : memref<2x7x256xf32, #tpu.memory_space<vmem>>, vector<1x2x256xf32>
    %154 = vector.shape_cast %153 : vector<1x2x256xf32> to vector<2x256xf32>
    %155 = vector.shape_cast %152 : vector<2x256xf32> to vector<1x2x256xf32>
    tpu.vector_store %arg8[%c1_74, %c4_75, %c0_76], %155 {strides = array<i32>} : memref<2x7x256xf32, #tpu.memory_space<vmem>>, vector<1x2x256xf32>,
    return
  }
  func.func @transform_0(%arg0: i32) -> (i32, i32, i32) {
    %c0_i32 = arith.constant 0 : i32
    %c0_i32_0 = arith.constant 0 : i32
    %c0_i32_1 = arith.constant 0 : i32
    return %arg0, %c0_i32, %c0_i32_0 : i32, i32, i32
  }
  func.func @transform_1(%arg0: i32) -> (i32, i32, i32) {
    %c0_i32 = arith.constant 0 : i32
    %c0_i32_0 = arith.constant 0 : i32
    %c0_i32_1 = arith.constant 0 : i32
    return %arg0, %c0_i32, %c0_i32_0 : i32, i32, i32
  }
  func.func @transform_2(%arg0: i32) -> (i32, i32) {
    %c0_i32 = arith.constant 0 : i32
    %c0_i32_0 = arith.constant 0 : i32
    %c0_i32_1 = arith.constant 0 : i32
    return %c0_i32, %c0_i32_0 : i32, i32
  }
  func.func @transform_3(%arg0: i32) -> (i32, i32) {
    %c0_i32 = arith.constant 0 : i32
    %c0_i32_0 = arith.constant 0 : i32
    %c0_i32_1 = arith.constant 0 : i32
    return %c0_i32, %c0_i32_0 : i32, i32
  }
  func.func @transform_4(%arg0: i32) -> (i32, i32) {
    %c0_i32 = arith.constant 0 : i32
    %c0_i32_0 = arith.constant 0 : i32
    %c0_i32_1 = arith.constant 0 : i32
    return %c0_i32, %c0_i32_0 : i32, i32
  }
  func.func @transform_5(%arg0: i32) -> (i32, i32) {
    %c0_i32 = arith.constant 0 : i32
    %c0_i32_0 = arith.constant 0 : i32
    %c0_i32_1 = arith.constant 0 : i32
    return %c0_i32, %c0_i32_0 : i32, i32
  }
  func.func @transform_6(%arg0: i32) -> (i32, i32) {
    %c0_i32 = arith.constant 0 : i32
    %c0_i32_0 = arith.constant 0 : i32
    %c0_i32_1 = arith.constant 0 : i32
    return %c0_i32, %c0_i32_0 : i32, i32
  }
  func.func @transform_7(%arg0: i32) -> (i32, i32, i32) {
    %c0_i32 = arith.constant 0 : i32
    %c0_i32_0 = arith.constant 0 : i32
    %c0_i32_1 = arith.constant 0 : i32
    return %arg0, %c0_i32, %c0_i32_0 : i32, i32, i32
  }
}

</mosaic_0001>

<bundles_post_ra>
// kernel: optical_flow_custom.1
= control target key start
LH: loop header
LB: loop body
LE: loop exit
PB: predicated region body
PF: predicated region fallthrough
CT: control target
= control target key end

     0   :  { %s3651_s24 = smov 0   ;;  %s5317_s0 = inlined_call_operand.vmem [shape: bf16[4,6,256], index: 0, kind: input, shape index: {}]   ;;  %s5318_s1 = inlined_call_operand.vmem [shape: bf16[4,3,256], index: 1, kind: input, shape index: {}]   ;;  %s5319_s2 = inlined_call_operand.vmem [shape: f32[3,256], index: 2, kind: input, shape index: {}]   ;;  %s5320_s3 = inlined_call_operand.vmem [shape: bf16[32,6], index: 3, kind: input, shape index: {}]   ;;  %s5321_s4 = inlined_call_operand.vmem [shape: f32[32,1], index: 4, kind: input, shape index: {}]   ;;  %s5322_s5 = inlined_call_operand.vmem [shape: bf16[32,3], index: 5, kind: input, shape index: {}]   ;;  %s5323_s6 = inlined_call_operand.vmem [shape: f32[32,1], index: 6, kind: input, shape index: {}]   ;;  %s5324_s7 = inlined_call_operand.vmem [shape: f32[4,7,256], index: 7, kind: output, shape index: {}]  }
   0x1 LB: > { %s3078_s25 = sadd.s32 4294967295, %s3605_s24   ;;  %p3082_p0 = scmp.ge.s32.totalorder %s3605_s24, 1  ;;  %s3605_s24 = sphi %s3651_s24, %s17_s24  }
   0x2   : > { %p251_p1 = scmp.lt.s32.totalorder %s3605_s24, 3 }
   0x4   : > { %p252_p2 = pnand %p3082_p0, %p251_p1 }
   0x6   : > { %255 = sbr.rel (%p252_p2) target bundleno = 1942 (0x796), region = 48 }
   0xd   : > { %s3083_s26 = sshll.u32 %s3078_s25, 1  ;;  %v5327_v0 = vmov 0   ;;  %vm578_vm0 = vcmask 1040384   ;;  %vm579_vm1 = vcmask 1041408   ;;  %v3608_v1 = vmov 65535   ;;  %v327_v3 = vld [vmem:[%s5321_s4] sm:$0xff] }
   0xe   : > { %p292_p3 = scmp.lt.s32.totalorder %s3083_s26, 3  ;;  %451 = vmatprep.mubr.bf16.mxu0 %v5327_v0  ;;  %504 = vmatprep.mubr.bf16.mxu1 %v5327_v0  ;;  %v580_v2 = vsel %vm578_vm0, 4294967295, %v3608_v1  ;;  %v329_v4 = vld [vmem:[%s5321_s4 + $0x10] sm:$0xff]  ;;  %vm406_vm2 = vcmask 1042432   ;;  %v328_v5 = vld [vmem:[%s5321_s4 + $0x8] sm:$0xff]  ;;  %v3312_v13 = vld [vmem:[%s5320_s3] sm:$0xff]  }
   0xf   : > { %3306 = vset.pattern.permute.xlu0 %v5327_v0  ;;  %3307 = vset.pattern.permute.xlu1 %v5327_v0  ;;  %v581_v8 = vsel %vm579_vm1, %v580_v2, 0  ;;  %v331_v15 = vld [vmem:[%s5323_s6] sm:$0xff]  ;;  %v330_v16 = vld [vmem:[%s5321_s4 + $0x18] sm:$0xff]  ;;  %vm399_vm3 = vcmask 48128   ;;  %v332_v26 = vld [vmem:[%s5323_s6 + $0x8] sm:$0xff]  ;;  %vm571_vm4 = vcmask 23552  }
  0x10   : > { %s5637_s26 = smov (!%p292_p3, %s3083_s26), 3  ;;  %371 = vperm.xlu0 %3306, %v327_v3   ;;  %381 = vperm.xlu1 %3307, %v329_v4   ;;  %v3313_v27 = vld [vmem:[%s5320_s3 + $0x8] sm:$0xff]   ;;  %v3314_v28 = vld [vmem:[%s5322_s5] sm:$0xff]   ;;  %vm911_vm5 = vcmask 261120   ;;  %vm857_vm7 = vcmask 253952  }
  0x11   : > { %s3157_s29 = sshll.u32 %s5637_s26, 3  ;;  %s3158_s14 = sshll.u32 %s5637_s26, 2  ;;  %v3315_v29 = vld [vmem:[%s5322_s5 + $0x8] sm:$0xff]  }
  0x12   : > { %s296_s11 = scalar_lea.vmem %s5317_s0, %s3157_s29  ;;  %s303_s19 = scalar_lea.vmem %s5318_s1, %s3158_s14 }
  0x13   : > { %v335_v6 = vld [vmem:[%s296_s11] sm:$0x77]  ;;  %v3092_v7 = vld [vmem:[%s296_s11 + $0x8] sm:$0x77]  ;;  %s3159_s15 = sshll.u32 %s5637_s26, 4 }
  0x14   : > { %v3094_v9 = vcombine.high %v335_v6, %v335_v6  ;;  %v3096_v10 = vcombine.high %v3092_v7, %v3092_v7  ;;  %v3093_v11 = vcombine.low %v335_v6, %v335_v6  ;;  %v3095_v12 = vcombine.low %v3092_v7, %v3092_v7  ;;  %v3098_v14 = vld.sshfl [vmem:[%s303_s19] sm:$0x33 pattern:$0x76325410]  ;;  %376 = vperm.xlu0 %3306, %v328_v5   ;;  %s3919_s18 = scalar_lea.vmem %s5324_s7, %s3159_s15 }
  0x15   : > { %v359_v19 = vcombine.high %v3098_v14, %v3098_v14  ;;  %v3099_v20 = vld.sshfl [vmem:[%s303_s19 + $0x4] sm:$0x33 pattern:$0x76325410]  ;;  %386 = vperm.xlu1 %3307, %v330_v16   ;;  %v583_v24 = vand.u32 %v3098_v14, %v581_v8 }
  0x16   : > { %3102 = vmatprep.subr.msk.bf16.mxu0 %vm406_vm2, %v3094_v9  ;;  %3105 = vmatprep.subr.msk.bf16.mxu1 %vm406_vm2, %v3096_v10  ;;  %v408_v17 = vsel %vm406_vm2, %v3093_v11, 0  ;;  %v414_v18 = vsel %vm406_vm2, %v3095_v12, 0  ;;  %v368_v21 = vcombine.high %v3099_v20, %v3099_v20  ;;  %v589_v25 = vand.u32 %v3099_v20, %v581_v8 }
  0x17   : > { %420 = vmatpush1.bf16.msra.mxu0 %v408_v17  ;;  %473 = vmatpush1.bf16.msra.mxu1 %v414_v18  ;;  %v586_v22 = vand.u32 %v581_v8, %v359_v19 }
  0x18   : > { %v592_v23 = vand.u32 %v581_v8, %v368_v21  ;;  %543 = vperm.xlu0 %3306, %v331_v15  }
  0x19   : > { %594 = vmatprep.subr.bf16.mxu0 %v586_v22  ;;  %548 = vperm.xlu1 %3307, %v332_v26  }
  0x1a   : > { %3103 = vmatmul.mubr.msk.bf16.vlgmr.msra.gmra.mrb[0].mxu0 %vm399_vm3, %v3312_v13  ;;  %3106 = vmatmul.mubr.msk.bf16.vlgmr.msra.gmra.mrb[0].mxu1 %vm399_vm3, %v3312_v13 }
  0x1b   : > { %461 = vmatprep.mubr.bf16.mxu0 %v5327_v0  ;;  %514 = vmatprep.mubr.bf16.mxu1 %v5327_v0 }
  0x1c   : > { %647 = vmatprep.subr.bf16.mxu1 %v592_v23  ;;  %595 = vmatpush1.bf16.msra.mxu0 %v583_v24 }
  0x1d   : > { %648 = vmatpush1.bf16.msra.mxu1 %v589_v25 }
  0x22   : > { %3104 = vmatmul.mubr.msk.bf16.gmra.mrb[4].mxu0 %vm399_vm3, %v3313_v27  ;;  %3107 = vmatmul.mubr.msk.bf16.gmra.mrb[4].mxu1 %vm399_vm3, %v3313_v27 }
  0x23   : > { %626 = vmatprep.mubr.bf16.mxu0 %v5327_v0  ;;  %679 = vmatprep.mubr.bf16.mxu1 %v5327_v0 }
  0x2a   : > { %3110 = vmatmul.mubr.msk.bf16.vlgmr.msra.gmra.mrb[8].mxu0 %vm571_vm4, %v3314_v28  ;;  %3112 = vmatmul.mubr.msk.bf16.vlgmr.msra.gmra.mrb[8].mxu1 %vm571_vm4, %v3314_v28 }
  0x2b   : > { %636 = vmatprep.mubr.bf16.mxu0 %v5327_v0  ;;  %689 = vmatprep.mubr.bf16.mxu1 %v5327_v0 }
  0x32   : > { %3111 = vmatmul.mubr.msk.bf16.gmra.mrb[12].mxu0 %vm571_vm4, %v3315_v29  ;;  %3113 = vmatmul.mubr.msk.bf16.gmra.mrb[12].mxu1 %vm571_vm4, %v3315_v29 }
  0x8f   : > { %v3717_v30 = vpop.permute.xlu0 %371  ;;  %v3721_v32 = vpop.permute.xlu1 %381 }
  0x93   : > { %v3719_v31 = vpop.permute.xlu0 %376 }
  0x94   : > { %v3735_v48 = vpop.permute.xlu1 %386 }
  0x95   : > { %5405 = vst [vmem:[#allocation2_spill] sm:$0xff] %v3735_v48 }
  0x97   : > { %v544_v1 = vpop.permute.xlu0 %543 }
  0x98   : > { %v549_v2 = vpop.permute.xlu1 %548 }
  0xed   : > { %v453_v33 = vpop.f32.mrb[0].mxu0  ;;  %v3723_v34 = vpop.f32.mrb[0].mxu1 }
  0xee   : > { %v454_v35 = vadd.f32 %v453_v33, %v3717_v30  ;;  %v455_v36 = vpop.f32.mrb[1].mxu0  ;;  %v3726_v37 = vpop.f32.mrb[1].mxu1 }
  0xef   : > { %v456_v38 = vadd.f32 %v455_v36, %v3717_v30  ;;  %v457_v39 = vpop.f32.mrb[2].mxu0  ;;  %v3729_v40 = vpop.f32.mrb[2].mxu1 }
  0xf0   : > { %v525_v41 = vmax.f32 %v454_v35, 0.0  ;;  %v458_v42 = vadd.f32 %v457_v39, %v3719_v31  ;;  %v459_v43 = vpop.f32.mrb[3].mxu0  ;;  %v3732_v44 = vpop.f32.mrb[3].mxu1 }
  0xf1   : > { %v526_v45 = vmax.f32 %v456_v38, 0.0  ;;  %v460_v46 = vadd.f32 %v459_v43, %v3719_v31  ;;  %v5325_v38 = vmov 0.00390625  }
  0xf2   : > { %716 = vxpose.xlu1.b32.start [1/4] (short) %v525_v41, 128  ;;  %v529_v47 = vmax.f32 %v458_v42, 0.0  ;;  %844 = vmatprep.mubr.f32.mxu1 %v5325_v38  ;;  %v334_v42 = vld [vmem:[%s5323_s6 + $0x18] sm:$0xff] }
  0xf3   : > { %748 = vxpose.xlu0.b32.start [1/4] (short) %v526_v45, 128  ;;  %v530_v49 = vmax.f32 %v460_v46, 0.0 }
  0xf5   : > { %v463_v50 = vpop.f32.mrb[4].mxu0  ;;  %v3737_v51 = vpop.f32.mrb[4].mxu1 }
  0xf6   : > { %5406 = vst [vmem:[#allocation3_spill] sm:$0xff] %v3737_v51  ;;  %v464_v52 = vadd.f32 %v463_v50, %v3721_v32  ;;  %v465_v53 = vpop.f32.mrb[5].mxu0  ;;  %v3740_v54 = vpop.f32.mrb[5].mxu1  ;;  %717 = vxpose.xlu1.b32.cont [2/4] (short) %v529_v47, 128 }
  0xf7   : > { %5407 = vst [vmem:[#allocation4_spill] sm:$0xff] %v3740_v54  ;;  %v466_v55 = vadd.f32 %v465_v53, %v3721_v32  ;;  %v467_v56 = vpop.f32.mrb[6].mxu0  ;;  %v3743_v57 = vpop.f32.mrb[6].mxu1  ;;  %749 = vxpose.xlu0.b32.cont [2/4] (short) %v530_v49, 128 }
  0xf8   : > { %5408 = vst [vmem:[#allocation5_spill] sm:$0xff] %v3743_v57  ;;  %v533_v58 = vmax.f32 %v464_v52, 0.0  ;;  %v468_v59 = vadd.f32 %v467_v56, %v3735_v48  ;;  %v469_v60 = vpop.f32.mrb[7].mxu0  ;;  %v3746_v61 = vpop.f32.mrb[7].mxu1  ;;  %v333_v52 = vld [vmem:[%s5323_s6 + $0x10] sm:$0xff] }
  0xf9   : > { %5409 = vst [vmem:[#allocation6_spill] sm:$0xff] %v3746_v61  ;;  %v534_v62 = vmax.f32 %v466_v55, 0.0  ;;  %v470_v63 = vadd.f32 %v469_v60, %v3735_v48 }
  0xfa   : > { %718 = vxpose.xlu1.b32.cont [3/4] (short) %v533_v58, 128  ;;  %v537_v3 = vmax.f32 %v468_v59, 0.0 }
  0xfb   : > { %750 = vxpose.xlu0.b32.cont [3/4] (short) %v534_v62, 128  ;;  %v538_v4 = vmax.f32 %v470_v63, 0.0 }
  0xfd   : > { %v628_v5 = vpop.f32.mrb[8].mxu0  ;;  %v681_v6 = vpop.f32.mrb[8].mxu1 }
  0xfe   : > { %v629_v7 = vadd.f32 %v628_v5, %v544_v1  ;;  %v682_v8 = vadd.f32 %v681_v6, %v544_v1  ;;  %v630_v9 = vpop.f32.mrb[9].mxu0  ;;  %v683_v10 = vpop.f32.mrb[9].mxu1  ;;  %719 = vxpose.xlu1.b32.end [4/4] (short) %v537_v3, 128 }
  0xff   : > { %v631_v11 = vadd.f32 %v630_v9, %v544_v1  ;;  %v684_v12 = vadd.f32 %v683_v10, %v544_v1  ;;  %v632_v13 = vpop.f32.mrb[10].mxu0  ;;  %v685_v14 = vpop.f32.mrb[10].mxu1  ;;  %751 = vxpose.xlu0.b32.end [4/4] (short) %v538_v4, 128 }
 0x100   : > { %v633_v15 = vadd.f32 %v632_v13, %v549_v2  ;;  %v686_v16 = vadd.f32 %v685_v14, %v549_v2  ;;  %v634_v17 = vpop.f32.mrb[11].mxu0  ;;  %v687_v18 = vpop.f32.mrb[11].mxu1  ;;  %v700_v21 = vmax.f32 %v629_v7, 0.0  ;;  %v702_v22 = vmax.f32 %v682_v8, 0.0 }
 0x101   : > { %v635_v19 = vadd.f32 %v634_v17, %v549_v2  ;;  %v688_v20 = vadd.f32 %v687_v18, %v549_v2  ;;  %v701_v25 = vmax.f32 %v631_v11, 0.0  ;;  %v703_v26 = vmax.f32 %v684_v12, 0.0 }
 0x102   : > { %v704_v23 = vmax.f32 %v633_v15, 0.0  ;;  %v706_v24 = vmax.f32 %v686_v16, 0.0 }
 0x103   : > { %v705_v27 = vmax.f32 %v635_v19, 0.0  ;;  %v707_v28 = vmax.f32 %v688_v20, 0.0 }
 0x104   : > { %v3749_v29 = vpack.c.bf16 %v704_v23, %v700_v21  ;;  %v3751_v33 = vpack.c.bf16 %v706_v24, %v702_v22 }
 0x105   : > { %v3753_v35 = vpack.c.bf16 %v705_v27, %v701_v25  ;;  %v3755_v36 = vpack.c.bf16 %v707_v28, %v703_v26  ;;  %v3758_v39 = vpop.f32.mrb[12].mxu0  ;;  %v3760_v41 = vpop.f32.mrb[12].mxu1 }
 0x106   : > { %5410 = vst [vmem:[#allocation7_spill] sm:$0xff] %v3751_v33  ;;  %v3765_v43 = vpop.f32.mrb[13].mxu0  ;;  %v3767_v45 = vpop.f32.mrb[13].mxu1 }
 0x107   : > { %5411 = vst [vmem:[#allocation8_spill] sm:$0xff] %v3755_v36  ;;  %v3769_v46 = vpop.f32.mrb[14].mxu0  ;;  %v3771_v47 = vpop.f32.mrb[14].mxu1 }
 0x108   : > { %v3773_v49 = vpop.f32.mrb[15].mxu0  ;;  %v3775_v50 = vpop.f32.mrb[15].mxu1 }
 0x14c   : > { %558 = vperm.xlu1 %3307, %v334_v42  }
 0x158   : > { %553 = vperm.xlu0 %3306, %v333_v52  }
 0x172   : > { %v3780_v53 = vpop.trf.xlu1 }
 0x173   : > { %v3782_v55 = vpop.trf.xlu0 }
 0x176   : > { %v3784_v56 = vpop.trf.xlu1 }
 0x177   : > { %v3786_v58 = vpop.trf.xlu0  ;;  %v3232_v59 = vpack.c.bf16 %v3784_v56, %v3780_v53 }
 0x178   : > { %v3230_v60 = vpack.c.bf16 %v3786_v58, %v3782_v55 }
 0x17a   : > { %v3792_v62 = vpop.trf.xlu1  ;;  %3231 = vmatprep.subr.bf16.mxu1 %v3230_v60 }
 0x17b   : > { %v3794_v63 = vpop.trf.xlu0  ;;  %3233 = vmatpush3.bf16.msra.mxu1 %v3232_v59 }
 0x17e   : > { %v3796_v1 = vpop.trf.xlu1 }
 0x17f   : > { %v3798_v2 = vpop.trf.xlu0  ;;  %v3236_v3 = vpack.c.bf16 %v3796_v1, %v3792_v62 }
 0x180   : > { %v3234_v4 = vpack.c.bf16 %v3798_v2, %v3794_v63 }
 0x182   : > { %v3804_v5 = vpop.trf.xlu1  ;;  %3235 = vmatprep.subr.bf16.mxu1 %v3234_v4 }
 0x183   : > { %v3806_v6 = vpop.trf.xlu0  ;;  %3237 = vmatpush3.bf16.msra.mxu1 %v3236_v3 }
 0x186   : > { %v3808_v7 = vpop.trf.xlu1 }
 0x187   : > { %v3810_v8 = vpop.trf.xlu0  ;;  %v3240_v9 = vpack.c.bf16 %v3808_v7, %v3804_v5 }
 0x188   : > { %v3238_v10 = vpack.c.bf16 %v3810_v8, %v3806_v6 }
 0x18a   : > { %v3816_v11 = vpop.trf.xlu1  ;;  %3239 = vmatprep.subr.bf16.mxu1 %v3238_v10 }
 0x18b   : > { %v3818_v12 = vpop.trf.xlu0  ;;  %3241 = vmatpush3.bf16.msra.mxu1 %v3240_v9 }
 0x18e   : > { %v3820_v13 = vpop.trf.xlu1 }
 0x18f   : > { %v3822_v14 = vpop.trf.xlu0  ;;  %v3244_v15 = vpack.c.bf16 %v3820_v13, %v3816_v11 }
 0x190   : > { %v3242_v16 = vpack.c.bf16 %v3822_v14, %v3818_v12 }
 0x192   : > { %v3828_v17 = vpop.trf.xlu1  ;;  %3243 = vmatprep.subr.bf16.mxu1 %v3242_v16 }
 0x193   : > { %v3830_v18 = vpop.trf.xlu0  ;;  %3245 = vmatpush3.bf16.msra.mxu1 %v3244_v15 }
 0x196   : > { %v3832_v19 = vpop.trf.xlu1 }
 0x197   : > { %v3834_v20 = vpop.trf.xlu0  ;;  %v3248_v21 = vpack.c.bf16 %v3832_v19, %v3828_v17 }
 0x198   : > { %v3246_v22 = vpack.c.bf16 %v3834_v20, %v3830_v18 }
 0x19a   : > { %v3840_v23 = vpop.trf.xlu1  ;;  %3247 = vmatprep.subr.bf16.mxu1 %v3246_v22 }
 0x19b   : > { %v3842_v24 = vpop.trf.xlu0  ;;  %3249 = vmatpush3.bf16.msra.mxu1 %v3248_v21 }
 0x19e   : > { %v3844_v25 = vpop.trf.xlu1 }
 0x19f   : > { %v3846_v26 = vpop.trf.xlu0  ;;  %v3252_v27 = vpack.c.bf16 %v3844_v25, %v3840_v23 }
 0x1a0   : > { %v3250_v28 = vpack.c.bf16 %v3846_v26, %v3842_v24 }
 0x1a2   : > { %v3852_v42 = vpop.trf.xlu1  ;;  %3251 = vmatprep.subr.bf16.mxu1 %v3250_v28 }
 0x1a3   : > { %v3854_v52 = vpop.trf.xlu0  ;;  %3253 = vmatpush3.bf16.msra.mxu1 %v3252_v27 }
 0x1a6   : > { %v3856_v59 = vpop.trf.xlu1 }
 0x1a7   : > { %v3858_v60 = vpop.trf.xlu0  ;;  %v3256_v3 = vpack.c.bf16 %v3856_v59, %v3852_v42 }
 0x1a8   : > { %v3254_v4 = vpack.c.bf16 %v3858_v60, %v3854_v52 }
 0x1aa   : > { %v3864_v9 = vpop.trf.xlu1  ;;  %3255 = vmatprep.subr.bf16.mxu1 %v3254_v4 }
 0x1ab   : > { %v3866_v10 = vpop.trf.xlu0  ;;  %3257 = vmatpush3.bf16.msra.mxu1 %v3256_v3 }
 0x1ae   : > { %v3868_v15 = vpop.trf.xlu1 }
 0x1af   : > { %v3870_v16 = vpop.trf.xlu0  ;;  %v3260_v21 = vpack.c.bf16 %v3868_v15, %v3864_v9 }
 0x1b0   : > { %v3258_v22 = vpack.c.bf16 %v3870_v16, %v3866_v10 }
 0x1b2   : > { %3259 = vmatprep.subr.bf16.mxu1 %v3258_v22 }
 0x1b3   : > { %3261 = vmatpush3.bf16.msra.mxu1 %v3260_v21 }
 0x1b4   : > { %960 = vmatprep.subr.bf16.mxu1 %v3753_v35 }
 0x1b6   : > { %845 = vmatmul.mubr.f32.vlgmr.msra.gmra.mrb[16].mxu1 %v5325_v38 }
 0x1b7   : > { %961 = vmatpush1.bf16.msra.mxu1 %v3749_v29  ;;  %992 = vmatprep.mubr.bf16.mxu1 %v5327_v0 }
 0x1cb   : > { %v559_v27 = vpop.permute.xlu1 %558 }
 0x1cc   : > { %v643_v28 = vadd.f32 %v3769_v46, %v559_v27  ;;  %v645_v3 = vadd.f32 %v3773_v49, %v559_v27  ;;  %v696_v4 = vadd.f32 %v3771_v47, %v559_v27  ;;  %v698_v33 = vadd.f32 %v3775_v50, %v559_v27 }
 0x1cd   : > { %v859_v47 = vmul.f32 0.17677669, %v3780_v53  ;;  %v860_v50 = vmul.f32 0.17677669, %v3784_v56  ;;  %v867_v56 = vmul.f32 0.17677669, %v3828_v17 }
 0x1ce   : > { %v712_v38 = vmax.f32 %v643_v28, 0.0  ;;  %v714_v0 = vmax.f32 %v696_v4, 0.0  ;;  %v713_v61 = vmax.f32 %v645_v3, 0.0  ;;  %v715_v57 = vmax.f32 %v698_v33, 0.0 }
 0x1cf   : > { %v5414_v33 = vmov 0   ;;  %v871_v17 = vmul.f32 0.17677669, %v3852_v42  ;;  %v873_v3 = vmul.f32 0.17677669, %v3864_v9 }
 0x1d0   : > { %v874_v42 = vmul.f32 0.17677669, %v3868_v15  ;;  %v878_v9 = vmul.f32 0.17677669, %v3798_v2  ;;  %v879_v15 = vmul.f32 0.17677669, %v3806_v6 }
 0x1d1   : > { %v883_v2 = vmul.f32 0.17677669, %v3830_v18  ;;  %v884_v6 = vmul.f32 0.17677669, %v3834_v20  ;;  %v888_v18 = vmul.f32 0.17677669, %v3858_v60 }
 0x1d2   : > { %v898_v4 = vpack.c.bf16 %v874_v42, %v873_v3 }
 0x1d7   : > { %v554_v36 = vpop.permute.xlu0 %553 }
 0x1d8   : > { %v639_v21 = vadd.f32 %v3758_v39, %v554_v36  ;;  %v692_v35 = vadd.f32 %v3760_v41, %v554_v36  ;;  %v641_v22 = vadd.f32 %v3765_v43, %v554_v36  ;;  %v694_v29 = vadd.f32 %v3767_v45, %v554_v36 }
 0x1d9   : > { %v891_v36 = vpack.c.bf16 %v860_v50, %v859_v47  ;;  %v861_v43 = vmul.f32 0.17677669, %v3792_v62  ;;  %v862_v45 = vmul.f32 0.17677669, %v3796_v1  ;;  %v868_v62 = vmul.f32 0.17677669, %v3832_v19 }
 0x1da   : > { %v708_v46 = vmax.f32 %v639_v21, 0.0  ;;  %v710_v48 = vmax.f32 %v692_v35, 0.0  ;;  %v709_v49 = vmax.f32 %v641_v22, 0.0  ;;  %v711_v54 = vmax.f32 %v694_v29, 0.0 }
 0x1db   : > { %v892_v53 = vpack.c.bf16 %v862_v45, %v861_v43  ;;  %v895_v1 = vpack.c.bf16 %v868_v62, %v867_v56  ;;  %v872_v19 = vmul.f32 0.17677669, %v3856_v59  ;;  %v875_v59 = vmul.f32 0.17677669, %v3782_v55 }
 0x1dc   : > { %v910_v27 = vpack.c.bf16 %v713_v61, %v709_v49  ;;  %v909_v39 = vpack.c.bf16 %v712_v38, %v708_v46  ;;  %v3890_v51 = vpack.c.bf16 %v715_v57, %v711_v54  ;;  %v3892_v41 = vpack.c.bf16 %v714_v0, %v710_v48 }
 0x1dd   : > { %v863_v0 = vmul.f32 0.17677669, %v3804_v5  ;;  %v864_v48 = vmul.f32 0.17677669, %v3808_v7  ;;  %v865_v57 = vmul.f32 0.17677669, %v3816_v11  ;;  %v897_v28 = vpack.c.bf16 %v872_v19, %v871_v17 }
 0x1de   : > { %5412 = vst [vmem:[#allocation9_spill] sm:$0xff] %v3890_v51  ;;  %5413 = vst [vmem:[#allocation10_spill] sm:$0xff] %v3892_v41  ;;  %962 = vmatprep.subr.bf16.mxu1 %v910_v27  ;;  %v866_v61 = vmul.f32 0.17677669, %v3820_v13  ;;  %v869_v5 = vmul.f32 0.17677669, %v3840_v23  ;;  %v5331_v13 = vlaneseq  ;;  %v903_v47 = vpack.c.bf16 %v884_v6, %v883_v2 }
 0x1df   : > { %963 = vmatpush1.bf16.msra.mxu1 %v909_v39  ;;  %v893_v54 = vpack.c.bf16 %v864_v48, %v863_v0  ;;  %v870_v7 = vmul.f32 0.17677669, %v3844_v25  ;;  %v3610_v25 = vmov 0.0   ;;  %v876_v21 = vmul.f32 0.17677669, %v3786_v58 }
 0x1e0   : > { %v894_v38 = vpack.c.bf16 %v866_v61, %v865_v57  ;;  %vm3925_vm6 = vcmp.lt.s32.totalorder %v5331_v13, 256  ;;  %v877_v22 = vmul.f32 0.17677669, %v3794_v63  ;;  %v880_v55 = vmul.f32 0.17677669, %v3810_v8 }
 0x1e1   : > { %v896_v11 = vpack.c.bf16 %v870_v7, %v869_v5  ;;  %3114 = vst.msk [vmem:[%s3919_s18 + $0x6] ss:$8 sm:$0x3] %vm3925_vm6, %v3610_v25  ;;  %v899_v35 = vpack.c.bf16 %v876_v21, %v875_v59  ;;  %v881_v58 = vmul.f32 0.17677669, %v3818_v12 }
 0x1e2   : > { %3115 = vmatmul.mubr.msk.bf16.vlgmr.msra.gmra.mrb[20].mxu1 %vm911_vm5, %v891_v36  ;;  %v900_v29 = vpack.c.bf16 %v878_v9, %v877_v22  ;;  %v901_v46 = vpack.c.bf16 %v880_v55, %v879_v15  ;;  %v882_v63 = vmul.f32 0.17677669, %v3822_v14  ;;  %v885_v8 = vmul.f32 0.17677669, %v3842_v24 }
 0x1e3   : > { %1002 = vmatprep.mubr.bf16.mxu1 %v5414_v33  ;;  %v886_v12 = vmul.f32 0.17677669, %v3846_v26  ;;  %v887_v14 = vmul.f32 0.17677669, %v3854_v52  ;;  %v889_v24 = vmul.f32 0.17677669, %v3866_v10 }
 0x1e4   : > { %v902_v49 = vpack.c.bf16 %v882_v63, %v881_v58  ;;  %v890_v26 = vmul.f32 0.17677669, %v3870_v16  ;;  %3131 = vst.msk [vmem:[%s3919_s18 + $0x16] ss:$8 sm:$0x3] %vm3925_vm6, %v3610_v25 }
 0x1e5   : > { %v904_v50 = vpack.c.bf16 %v886_v12, %v885_v8  ;;  %v905_v20 = vpack.c.bf16 %v888_v18, %v887_v14 }
 0x1e6   : > { %v906_v27 = vpack.c.bf16 %v890_v26, %v889_v24 }
 0x1ea   : > { %3116 = vmatmul.mubr.msk.bf16.gmra.mrb[24].mxu1 %vm911_vm5, %v892_v53 }
 0x1eb   : > { %1012 = vmatprep.mubr.bf16.mxu1 %v5414_v33 }
 0x1f2   : > { %3117 = vmatmul.mubr.msk.bf16.gmra.mrb[28].mxu1 %vm911_vm5, %v893_v54 }
 0x1f3   : > { %1022 = vmatprep.mubr.bf16.mxu1 %v5414_v33 }
 0x1fa   : > { %3118 = vmatmul.mubr.msk.bf16.gmra.mrb[32].mxu1 %vm911_vm5, %v894_v38 }
 0x1fb   : > { %1032 = vmatprep.mubr.bf16.mxu1 %v5414_v33 }
 0x202   : > { %3119 = vmatmul.mubr.msk.bf16.gmra.mrb[36].mxu1 %vm911_vm5, %v895_v1 }
 0x203   : > { %1042 = vmatprep.mubr.bf16.mxu1 %v5414_v33 }
 0x20a   : > { %3120 = vmatmul.mubr.msk.bf16.gmra.mrb[40].mxu1 %vm911_vm5, %v896_v11 }
 0x20b   : > { %1052 = vmatprep.mubr.bf16.mxu1 %v5414_v33 }
 0x212   : > { %3121 = vmatmul.mubr.msk.bf16.gmra.mrb[44].mxu1 %vm911_vm5, %v897_v28 }
 0x213   : > { %1062 = vmatprep.mubr.bf16.mxu1 %v5414_v33 }
 0x21a   : > { %3122 = vmatmul.mubr.msk.bf16.gmra.mrb[48].mxu1 %vm911_vm5, %v898_v4 }
 0x21b   : > { %1072 = vmatprep.mubr.bf16.mxu1 %v5414_v33 }
 0x222   : > { %3123 = vmatmul.mubr.msk.bf16.gmra.mrb[52].mxu1 %vm911_vm5, %v899_v35 }
 0x223   : > { %1082 = vmatprep.mubr.bf16.mxu1 %v5414_v33 }
 0x22a   : > { %3124 = vmatmul.mubr.msk.bf16.gmra.mrb[56].mxu1 %vm911_vm5, %v900_v29 }
 0x22b   : > { %1092 = vmatprep.mubr.bf16.mxu1 %v5414_v33 }
 0x232   : > { %3125 = vmatmul.mubr.msk.bf16.gmra.mrb[60].mxu1 %vm911_vm5, %v901_v46 }
 0x233   : > { %1102 = vmatprep.mubr.bf16.mxu1 %v5414_v33 }
 0x23a   : > { %3126 = vmatmul.mubr.msk.bf16.gmra.mrb[64].mxu1 %vm911_vm5, %v902_v49 }
 0x23b   : > { %1112 = vmatprep.mubr.bf16.mxu1 %v5414_v33 }
 0x242   : > { %3127 = vmatmul.mubr.msk.bf16.gmra.mrb[68].mxu1 %vm911_vm5, %v903_v47 }
 0x243   : > { %1122 = vmatprep.mubr.bf16.mxu1 %v5414_v33 }
 0x24a   : > { %3128 = vmatmul.mubr.msk.bf16.gmra.mrb[72].mxu1 %vm911_vm5, %v904_v50 }
 0x24b   : > { %1132 = vmatprep.mubr.bf16.mxu1 %v5414_v33 }
 0x252   : > { %3129 = vmatmul.mubr.msk.bf16.gmra.mrb[76].mxu1 %vm911_vm5, %v905_v20 }
 0x253   : > { %1142 = vmatprep.mubr.bf16.mxu1 %v5414_v33 }
 0x25a   : > { %3130 = vmatmul.mubr.msk.bf16.gmra.mrb[80].mxu1 %vm911_vm5, %v906_v27 }
 0x289   : > { %v3192_v39 = vpop.f32.mrb[16].mxu1 }
 0x28a   : > { %v3193_v36 = vpop.f32.mrb[17].mxu1 }
 0x28b   : > { %v3194_v43 = vadd.f32 %v3193_v36, %v3192_v39 }
 0x28d   : > { %858 = vst.msk [vmem:[%s3919_s18 + $0x6] sm:$0x1] %vm857_vm7, %v3194_v43 }
 0x2b5   : > { %v3974_v52 = vpop.f32.mrb[20].mxu1 }
 0x2b6   : > { %v3976_v60 = vpop.f32.mrb[21].mxu1 }
 0x2b7   : > { %v3978_v45 = vpop.f32.mrb[22].mxu1  ;;  %v1153_v10 = vmax.f32 %v3974_v52, %v3976_v60 }
 0x2b8   : > { %v3982_v16 = vpop.f32.mrb[23].mxu1 }
 0x2b9   : > { %1154 = vmax.xlane.f32.xlu0 %v1153_v10  ;;  %v1156_v53 = vmax.f32 %v3978_v45, %v3982_v16 }
 0x2bb   : > { %1157 = vmax.xlane.f32.xlu1 %v1156_v53 }
 0x2bd   : > { %v3986_v0 = vpop.f32.mrb[24].mxu1 }
 0x2be   : > { %v3988_v48 = vpop.f32.mrb[25].mxu1 }
 0x2bf   : > { %v3990_v54 = vpop.f32.mrb[26].mxu1  ;;  %v1159_v57 = vmax.f32 %v3986_v0, %v3988_v48 }
 0x2c0   : > { %v3994_v61 = vpop.f32.mrb[27].mxu1 }
 0x2c1   : > { %1160 = vmax.xlane.f32.xlu0 %v1159_v57  ;;  %v1162_v38 = vmax.f32 %v3990_v54, %v3994_v61 }
 0x2c5   : > { %1163 = vmax.xlane.f32.xlu0 %v1162_v38  ;;  %v3998_v56 = vpop.f32.mrb[28].mxu1 }
 0x2c6   : > { %v4000_v62 = vpop.f32.mrb[29].mxu1 }
 0x2c7   : > { %v4002_v1 = vpop.f32.mrb[30].mxu1  ;;  %v1165_v5 = vmax.f32 %v3998_v56, %v4000_v62 }
 0x2c8   : > { %v4006_v7 = vpop.f32.mrb[31].mxu1 }
 0x2c9   : > { %1166 = vmax.xlane.f32.xlu1 %v1165_v5  ;;  %v1168_v11 = vmax.f32 %v4002_v1, %v4006_v7 }
 0x2cb   : > { %1169 = vmax.xlane.f32.xlu0 %v1168_v11 }
 0x2cd   : > { %v4010_v17 = vpop.f32.mrb[32].mxu1 }
 0x2ce   : > { %v4012_v19 = vpop.f32.mrb[33].mxu1 }
 0x2cf   : > { %v4014_v23 = vpop.f32.mrb[34].mxu1  ;;  %v1171_v25 = vmax.f32 %v4010_v17, %v4012_v19 }
 0x2d0   : > { %v4018_v28 = vpop.f32.mrb[35].mxu1 }
 0x2d1   : > { %1172 = vmax.xlane.f32.xlu1 %v1171_v25  ;;  %v1174_v3 = vmax.f32 %v4014_v23, %v4018_v28 }
 0x2d3   : > { %1175 = vmax.xlane.f32.xlu0 %v1174_v3 }
 0x2d5   : > { %v4022_v42 = vpop.f32.mrb[36].mxu1 }
 0x2d6   : > { %v4024_v4 = vpop.f32.mrb[37].mxu1 }
 0x2d7   : > { %v4026_v59 = vpop.f32.mrb[38].mxu1  ;;  %v1177_v21 = vmax.f32 %v4022_v42, %v4024_v4 }
 0x2d8   : > { %v4030_v35 = vpop.f32.mrb[39].mxu1 }
 0x2d9   : > { %1178 = vmax.xlane.f32.xlu1 %v1177_v21  ;;  %v1180_v22 = vmax.f32 %v4026_v59, %v4030_v35 }
 0x2db   : > { %1181 = vmax.xlane.f32.xlu0 %v1180_v22 }
 0x2dd   : > { %v4034_v9 = vpop.f32.mrb[40].mxu1 }
 0x2de   : > { %v4036_v29 = vpop.f32.mrb[41].mxu1 }
 0x2df   : > { %v4038_v15 = vpop.f32.mrb[42].mxu1  ;;  %v1183_v55 = vmax.f32 %v4034_v9, %v4036_v29 }
 0x2e0   : > { %v4042_v46 = vpop.f32.mrb[43].mxu1 }
 0x2e1   : > { %1184 = vmax.xlane.f32.xlu1 %v1183_v55  ;;  %v1186_v58 = vmax.f32 %v4038_v15, %v4042_v46 }
 0x2e3   : > { %1187 = vmax.xlane.f32.xlu0 %v1186_v58 }
 0x2e5   : > { %v4046_v63 = vpop.f32.mrb[44].mxu1 }
 0x2e6   : > { %v4048_v49 = vpop.f32.mrb[45].mxu1 }
 0x2e7   : > { %v4050_v2 = vpop.f32.mrb[46].mxu1  ;;  %v1189_v6 = vmax.f32 %v4046_v63, %v4048_v49 }
 0x2e8   : > { %v4054_v47 = vpop.f32.mrb[47].mxu1 }
 0x2e9   : > { %1190 = vmax.xlane.f32.xlu1 %v1189_v6  ;;  %v1192_v8 = vmax.f32 %v4050_v2, %v4054_v47 }
 0x2eb   : > { %1193 = vmax.xlane.f32.xlu0 %v1192_v8 }
 0x2ed   : > { %v4058_v12 = vpop.f32.mrb[48].mxu1 }
 0x2ee   : > { %v4060_v50 = vpop.f32.mrb[49].mxu1 }
 0x2ef   : > { %v4062_v14 = vpop.f32.mrb[50].mxu1  ;;  %v1195_v18 = vmax.f32 %v4058_v12, %v4060_v50 }
 0x2f0   : > { %v4066_v20 = vpop.f32.mrb[51].mxu1 }
 0x2f1   : > { %1196 = vmax.xlane.f32.xlu1 %v1195_v18  ;;  %v1198_v24 = vmax.f32 %v4062_v14, %v4066_v20 }
 0x2f3   : > { %1199 = vmax.xlane.f32.xlu0 %v1198_v24 }
 0x2f5   : > { %v4070_v26 = vpop.f32.mrb[52].mxu1 }
 0x2f6   : > { %v4072_v27 = vpop.f32.mrb[53].mxu1 }
 0x2f7   : > { %v4074_v39 = vpop.f32.mrb[54].mxu1  ;;  %v1201_v36 = vmax.f32 %v4070_v26, %v4072_v27 }
 0x2f8   : > { %v4078_v43 = vpop.f32.mrb[55].mxu1 }
 0x2f9   : > { %1202 = vmax.xlane.f32.xlu1 %v1201_v36  ;;  %v1204_v10 = vmax.f32 %v4074_v39, %v4078_v43 }
 0x2fb   : > { %1205 = vmax.xlane.f32.xlu0 %v1204_v10 }
 0x2fd   : > { %v4082_v53 = vpop.f32.mrb[56].mxu1 }
 0x2fe   : > { %v4084_v57 = vpop.f32.mrb[57].mxu1 }
 0x2ff   : > { %v4086_v38 = vpop.f32.mrb[58].mxu1  ;;  %v1207_v5 = vmax.f32 %v4082_v53, %v4084_v57 }
 0x300   : > { %v4090_v11 = vpop.f32.mrb[59].mxu1 }
 0x301   : > { %1208 = vmax.xlane.f32.xlu1 %v1207_v5  ;;  %v1210_v25 = vmax.f32 %v4086_v38, %v4090_v11 }
 0x303   : > { %1211 = vmax.xlane.f32.xlu0 %v1210_v25 }
 0x305   : > { %v4094_v3 = vpop.f32.mrb[60].mxu1 }
 0x306   : > { %v4096_v21 = vpop.f32.mrb[61].mxu1 }
 0x307   : > { %v4098_v22 = vpop.f32.mrb[62].mxu1  ;;  %v1213_v55 = vmax.f32 %v4094_v3, %v4096_v21 }
 0x308   : > { %v4102_v58 = vpop.f32.mrb[63].mxu1 }
 0x309   : > { %5417 = vst [vmem:[#allocation11_spill] sm:$0xff] %v4102_v58  ;;  %1214 = vmax.xlane.f32.xlu1 %v1213_v55  ;;  %v1216_v6 = vmax.f32 %v4098_v22, %v4102_v58 }
 0x30b   : > { %1217 = vmax.xlane.f32.xlu0 %v1216_v6 }
 0x30d   : > { %v4106_v8 = vpop.f32.mrb[64].mxu1 }
 0x30e   : > { %5418 = vst [vmem:[#allocation12_spill] sm:$0xff] %v4106_v8  ;;  %v4108_v18 = vpop.f32.mrb[65].mxu1 }
 0x30f   : > { %5419 = vst [vmem:[#allocation13_spill] sm:$0xff] %v4108_v18  ;;  %v4110_v24 = vpop.f32.mrb[66].mxu1  ;;  %v1219_v36 = vmax.f32 %v4106_v8, %v4108_v18 }
 0x310   : > { %5420 = vst [vmem:[#allocation14_spill] sm:$0xff] %v4110_v24  ;;  %v4114_v10 = vpop.f32.mrb[67].mxu1 }
 0x311   : > { %5421 = vst [vmem:[#allocation15_spill] sm:$0xff] %v4114_v10  ;;  %1220 = vmax.xlane.f32.xlu1 %v1219_v36  ;;  %v1222_v5 = vmax.f32 %v4110_v24, %v4114_v10 }
 0x313   : > { %1223 = vmax.xlane.f32.xlu0 %v1222_v5 }
 0x315   : > { %v4118_v25 = vpop.f32.mrb[68].mxu1 }
 0x316   : > { %5422 = vst [vmem:[#allocation16_spill] sm:$0xff] %v4118_v25  ;;  %v4120_v55 = vpop.f32.mrb[69].mxu1 }
 0x317   : > { %5423 = vst [vmem:[#allocation17_spill] sm:$0xff] %v4120_v55  ;;  %v4122_v6 = vpop.f32.mrb[70].mxu1  ;;  %v1225_v13 = vmax.f32 %v4118_v25, %v4120_v55 }
 0x318   : > { %5424 = vst [vmem:[#allocation18_spill] sm:$0xff] %v4122_v6  ;;  %v4126_v41 = vpop.f32.mrb[71].mxu1 }
 0x319   : > { %5425 = vst [vmem:[#allocation19_spill] sm:$0xff] %v4126_v41  ;;  %1226 = vmax.xlane.f32.xlu1 %v1225_v13  ;;  %v1228_v51 = vmax.f32 %v4122_v6, %v4126_v41 }
 0x31b   : > { %1229 = vmax.xlane.f32.xlu0 %v1228_v51 }
 0x31d   : > { %v4130_v36 = vpop.f32.mrb[72].mxu1 }
 0x31e   : > { %5426 = vst [vmem:[#allocation20_spill] sm:$0xff] %v4130_v36  ;;  %v4132_v33 = vpop.f32.mrb[73].mxu1 }
 0x31f   : > { %5427 = vst [vmem:[#allocation21_spill] sm:$0xff] %v4132_v33  ;;  %v4134_v5 = vpop.f32.mrb[74].mxu1  ;;  %v1231_v10 = vmax.f32 %v4130_v36, %v4132_v33 }
 0x320   : > { %5428 = vst [vmem:[#allocation22_spill] sm:$0xff] %v4134_v5  ;;  %v4138_v24 = vpop.f32.mrb[75].mxu1 }
 0x321   : > { %5429 = vst [vmem:[#allocation23_spill] sm:$0xff] %v4138_v24  ;;  %1232 = vmax.xlane.f32.xlu1 %v1231_v10  ;;  %v1234_v55 = vmax.f32 %v4134_v5, %v4138_v24 }
 0x323   : > { %1235 = vmax.xlane.f32.xlu0 %v1234_v55 }
 0x325   : > { %v4142_v13 = vpop.f32.mrb[76].mxu1 }
 0x326   : > { %5430 = vst [vmem:[#allocation24_spill] sm:$0xff] %v4142_v13  ;;  %v4144_v41 = vpop.f32.mrb[77].mxu1 }
 0x327   : > { %5431 = vst [vmem:[#allocation25_spill] sm:$0xff] %v4144_v41  ;;  %v4146_v51 = vpop.f32.mrb[78].mxu1  ;;  %v1237_v6 = vmax.f32 %v4142_v13, %v4144_v41 }
 0x328   : > { %5432 = vst [vmem:[#allocation26_spill] sm:$0xff] %v4146_v51  ;;  %v4150_v25 = vpop.f32.mrb[79].mxu1 }
 0x329   : > { %5433 = vst [vmem:[#allocation27_spill] sm:$0xff] %v4150_v25  ;;  %1238 = vmax.xlane.f32.xlu1 %v1237_v6  ;;  %v1240_v33 = vmax.f32 %v4146_v51, %v4150_v25 }
 0x32b   : > { %1241 = vmax.xlane.f32.xlu0 %v1240_v33 }
 0x32d   : > { %v4154_v10 = vpop.f32.mrb[80].mxu1 }
 0x32e   : > { %5434 = vst [vmem:[#allocation28_spill] sm:$0xff] %v4154_v10  ;;  %v4156_v24 = vpop.f32.mrb[81].mxu1 }
 0x32f   : > { %5435 = vst [vmem:[#allocation29_spill] sm:$0xff] %v4156_v24  ;;  %v4158_v55 = vpop.f32.mrb[82].mxu1  ;;  %v1243_v5 = vmax.f32 %v4154_v10, %v4156_v24 }
 0x330   : > { %v4162_v36 = vpop.f32.mrb[83].mxu1 }
 0x331   : > { %5436 = vst [vmem:[#allocation30_spill] sm:$0xff] %v4162_v36  ;;  %1244 = vmax.xlane.f32.xlu1 %v1243_v5  ;;  %v1246_v41 = vmax.f32 %v4158_v55, %v4162_v36 }
 0x333   : > { %1247 = vmax.xlane.f32.xlu0 %v1246_v41 }
 0x346   : > { %v1155_v6 = vpop.xlane.xlu0 %1154 }
 0x347   : > { %v1249_v25 = vsub.f32 %v3974_v52, %v1155_v6  ;;  %v1250_v33 = vsub.f32 %v3976_v60, %v1155_v6 }
 0x348   : > { %v1158_v51 = vpop.xlane.xlu1 %1157 }
 0x349   : > { %v1313_v13 = vmul.f32 1.442695, %v1249_v25  ;;  %v1315_v18 = vmul.f32 1.442695, %v1250_v33  ;;  %v1251_v8 = vsub.f32 %v3978_v45, %v1158_v51  ;;  %v1252_v58 = vsub.f32 %v3982_v16, %v1158_v51 }
 0x34a   : > { %v4174_v25 = vadd.f32 %v3723_v34, %v3717_v30  ;;  %v4185_v34 = vadd.f32 %v3729_v40, %v3719_v31 }
 0x34b   : > { %3317 = vpow2.f32 %v1313_v13  ;;  %v1317_v24 = vmul.f32 1.442695, %v1251_v8  ;;  %v1319_v10 = vmul.f32 1.442695, %v1252_v58 }
 0x34c   : > { %3319 = vpow2.f32 %v1315_v18 }
 0x34d   : > { %3321 = vpow2.f32 %v1317_v24 }
 0x34e   : > { %3323 = vpow2.f32 %v1319_v10  ;;  %v1161_v5 = vpop.xlane.xlu0 %1160 }
 0x34f   : > { %v1253_v41 = vsub.f32 %v3986_v0, %v1161_v5  ;;  %v1254_v52 = vsub.f32 %v3988_v48, %v1161_v5  ;;  %v527_v0 = vmax.f32 %v4174_v25, 0.0  ;;  %v4181_v48 = vadd.f32 %v3726_v37, %v3717_v30 }
 0x351   : > { %v1321_v36 = vmul.f32 1.442695, %v1253_v41  ;;  %v1323_v60 = vmul.f32 1.442695, %v1254_v52 }
 0x352   : > { %v1164_v45 = vpop.xlane.xlu0 %1163 }
 0x353   : > { %3325 = vpow2.f32 %v1321_v36  ;;  %v1255_v16 = vsub.f32 %v3990_v54, %v1164_v45  ;;  %v1256_v58 = vsub.f32 %v3994_v61, %v1164_v45 }
 0x354   : > { %3327 = vpow2.f32 %v1323_v60 }
 0x355   : > { %v3318_v8 = vpop.eup %3317  ;;  %v1325_v18 = vmul.f32 1.442695, %v1255_v16  ;;  %v1327_v24 = vmul.f32 1.442695, %v1256_v58 }
 0x356   : > { %v3320_v13 = vpop.eup %3319  ;;  %v1167_v36 = vpop.xlane.xlu1 %1166  ;;  %v1441_v51 = vmul.f32 %v3318_v8, %v3318_v8 }
 0x357   : > { %v3322_v54 = vpop.eup %3321  ;;  %3329 = vpow2.f32 %v1325_v18  ;;  %v1257_v61 = vsub.f32 %v3998_v56, %v1167_v36  ;;  %v1258_v10 = vsub.f32 %v4000_v62, %v1167_v36  ;;  %v1442_v6 = vmul.f32 %v3320_v13, %v3320_v13  ;;  %v313_v56 = vld [vmem:[%s5319_s2] sm:$0x77] }
 0x358   : > { %v3324_v33 = vpop.eup %3323  ;;  %3331 = vpow2.f32 %v1327_v24  ;;  %v1170_v5 = vpop.xlane.xlu0 %1169  ;;  %v1569_v41 = vpack.c.bf16 %v3322_v54, %v3318_v8  ;;  %v1443_v52 = vmul.f32 %v3322_v54, %v3322_v54  ;;  %v4189_v30 = vmul.f32 %v3318_v8, %v1441_v51 }
 0x359   : > { %v1329_v37 = vmul.f32 1.442695, %v1257_v61  ;;  %v1331_v60 = vmul.f32 1.442695, %v1258_v10  ;;  %v1259_v40 = vsub.f32 %v4002_v1, %v1170_v5  ;;  %v1260_v25 = vsub.f32 %v4006_v7, %v1170_v5 }
 0x35a   : > { %v1570_v45 = vpack.c.bf16 %v3324_v33, %v3320_v13  ;;  %v1444_v62 = vmul.f32 %v3324_v33, %v3324_v33  ;;  %v1601_v16 = vpack.c.bf16 %v1443_v52, %v1441_v51  ;;  %v4196_v58 = vmul.f32 %v3320_v13, %v1442_v6 }
 0x35b   : > { %3333 = vpow2.f32 %v1329_v37  ;;  %v1333_v18 = vmul.f32 1.442695, %v1259_v40  ;;  %v1335_v24 = vmul.f32 1.442695, %v1260_v25  ;;  %v4198_v8 = vcombine.high %v313_v56, %v313_v56  ;;  %v5440_v40 = vld [vmem:[#allocation4_spill] sm:$0xff] }
 0x35c   : > { %v4202_v36 = vadd.f32 %v3732_v44, %v3719_v31  ;;  %3335 = vpow2.f32 %v1331_v60  ;;  %1665 = vmatprep.subr.bf16.mxu1 %v1570_v45  ;;  %v1602_v1 = vpack.c.bf16 %v1444_v62, %v1442_v6  ;;  %v4204_v7 = vmul.f32 %v3324_v33, %v1444_v62  ;;  %v5439_v31 = vld [vmem:[#allocation3_spill] sm:$0xff] }
 0x35d   : > { %5437 = vst [vmem:[#allocation31_spill] sm:$0xff] %v4198_v8  ;;  %v3326_v61 = vpop.eup %3325  ;;  %v528_v10 = vmax.f32 %v4181_v48, 0.0  ;;  %3337 = vpow2.f32 %v1333_v18  ;;  %1666 = vmatpush1.bf16.xpose.msra.mxu1 %v1569_v41  ;;  %v4209_v13 = vpack.c.bf16 %v4198_v8, %v4198_v8  ;;  %v4211_v51 = vmul.f32 %v3322_v54, %v1443_v52 }
 0x35e   : > { %v3328_v5 = vpop.eup %3327  ;;  %v4215_v44 = vadd.f32 %v5439_v31, %v3721_v32  ;;  %3339 = vpow2.f32 %v1335_v24  ;;  %1706 = vmatprep.subr.bf16.mxu0 %v1602_v1  ;;  %v1173_v6 = vpop.xlane.xlu1 %1172  ;;  %v4217_v33 = vmul.f32 %v3326_v61, %v3326_v61  ;;  %v531_v41 = vmax.f32 %v4185_v34, 0.0 }
 0x35f   : > { %5438 = vst [vmem:[#allocation32_spill] sm:$0xff] %v4209_v13  ;;  %1707 = vmatpush1.bf16.xpose.msra.mxu0 %v1601_v16  ;;  %v1261_v37 = vsub.f32 %v4010_v17, %v1173_v6  ;;  %v1262_v54 = vsub.f32 %v4012_v19, %v1173_v6  ;;  %v1446_v52 = vmul.f32 %v3328_v5, %v3328_v5  ;;  %v532_v60 = vmax.f32 %v4202_v36, 0.0  ;;  %v5442_v36 = vld [vmem:[#allocation5_spill] sm:$0xff] }
 0x360   : > { %1697 = vmatprep.mubr.bf16.mxu1 %v4209_v13  ;;  %v4228_v25 = vadd.f32 %v5440_v40, %v3721_v32  ;;  %v1176_v56 = vpop.xlane.xlu0 %1175  ;;  %1864 = vxpose.xlu0.b32.start [1/4] (short) %v527_v0, 128  ;;  %v4233_v34 = vmul.f32 %v3326_v61, %v4217_v33  ;;  %v5441_v32 = vld [vmem:[#allocation2_spill] sm:$0xff] }
 0x361   : > { %1738 = vmatprep.mubr.bf16.mxu0 %v4209_v13  ;;  %v3330_v17 = vpop.eup %3329  ;;  %v1337_v19 = vmul.f32 1.442695, %v1261_v37  ;;  %v1339_v62 = vmul.f32 1.442695, %v1262_v54  ;;  %v1263_v16 = vsub.f32 %v4014_v23, %v1176_v56  ;;  %v1264_v18 = vsub.f32 %v4018_v28, %v1176_v56 }
 0x362   : > { %v3332_v24 = vpop.eup %3331  ;;  %v4240_v1 = vadd.f32 %v5442_v36, %v5441_v32  ;;  %v1571_v0 = vpack.c.bf16 %v3330_v17, %v3326_v61  ;;  %v1447_v31 = vmul.f32 %v3330_v17, %v3330_v17  ;;  %v4242_v6 = vmul.f32 %v3328_v5, %v1446_v52  ;;  %v5443_v36 = vld [vmem:[#allocation6_spill] sm:$0xff] }
 0x363   : > { %3341 = vpow2.f32 %v1337_v19  ;;  %v1341_v40 = vmul.f32 1.442695, %v1263_v16  ;;  %v1343_v45 = vmul.f32 1.442695, %v1264_v18  ;;  %v1572_v48 = vpack.c.bf16 %v3332_v24, %v3328_v5 }
 0x364   : > { %3343 = vpow2.f32 %v1339_v62  ;;  %1896 = vxpose.xlu1.b32.start [1/4] (short) %v528_v10, 128  ;;  %1865 = vxpose.xlu0.b32.cont [2/4] (short) %v531_v41, 128  ;;  %v1448_v37 = vmul.f32 %v3332_v24, %v3332_v24  ;;  %v1603_v23 = vpack.c.bf16 %v1447_v31, %v4217_v33  ;;  %v4245_v28 = vmul.f32 %v3330_v17, %v1447_v31 }
 0x365   : > { %v3334_v54 = vpop.eup %3333  ;;  %v535_v56 = vmax.f32 %v4215_v44, 0.0  ;;  %v536_v61 = vmax.f32 %v4228_v25, 0.0  ;;  %v523_v8 = vadd.f32 %v5443_v36, %v5441_v32  ;;  %3345 = vpow2.f32 %v1341_v40  ;;  %1667 = vmatprep.subr.bf16.mxu1 %v1572_v48 }
 0x366   : > { %v3336_v19 = vpop.eup %3335  ;;  %3347 = vpow2.f32 %v1343_v45  ;;  %1668 = vmatpush1.bf16.xpose.msra.mxu1 %v1571_v0  ;;  %v1604_v10 = vpack.c.bf16 %v1448_v37, %v1446_v52  ;;  %v1179_v5 = vpop.xlane.xlu1 %1178  ;;  %v1449_v41 = vmul.f32 %v3334_v54, %v3334_v54  ;;  %v4251_v62 = vmul.f32 %v3332_v24, %v1448_v37 }
 0x367   : > { %v3338_v33 = vpop.eup %3337  ;;  %v1265_v17 = vsub.f32 %v4022_v42, %v1179_v5  ;;  %v1266_v44 = vsub.f32 %v4024_v4, %v1179_v5  ;;  %v1450_v16 = vmul.f32 %v3336_v19, %v3336_v19  ;;  %v539_v48 = vmax.f32 %v4240_v1, 0.0 }
 0x368   : > { %v3340_v18 = vpop.eup %3339  ;;  %1708 = vmatprep.subr.bf16.mxu0 %v1604_v10  ;;  %v1182_v45 = vpop.xlane.xlu0 %1181  ;;  %1897 = vxpose.xlu1.b32.cont [2/4] (short) %v532_v60, 128  ;;  %v1573_v52 = vpack.c.bf16 %v3338_v33, %v3334_v54  ;;  %v1451_v32 = vmul.f32 %v3338_v33, %v3338_v33  ;;  %v4264_v5 = vmul.f32 %v3334_v54, %v1449_v41 }
 0x369   : > { %v1345_v0 = vmul.f32 1.442695, %v1265_v17  ;;  %v1347_v31 = vmul.f32 1.442695, %v1266_v44  ;;  %1709 = vmatpush1.bf16.xpose.msra.mxu0 %v1603_v23  ;;  %v1267_v42 = vsub.f32 %v4026_v59, %v1182_v45  ;;  %v1268_v4 = vsub.f32 %v4030_v35, %v1182_v45  ;;  %1866 = vxpose.xlu0.b32.cont [3/4] (short) %v535_v56, 128 }
 0x36a   : > { %v1574_v40 = vpack.c.bf16 %v3340_v18, %v3336_v19  ;;  %v1452_v37 = vmul.f32 %v3340_v18, %v3340_v18  ;;  %v1605_v36 = vpack.c.bf16 %v1451_v32, %v1449_v41  ;;  %v4262_v1 = vmul.f32 %v3336_v19, %v1450_v16 }
 0x36b   : > { %3349 = vpow2.f32 %v1345_v0  ;;  %v1349_v60 = vmul.f32 1.442695, %v1267_v42  ;;  %v1351_v10 = vmul.f32 1.442695, %v1268_v4  ;;  %v4268_v59 = vmul.f32 %v3338_v33, %v1451_v32 }
 0x36c   : > { %3351 = vpow2.f32 %v1347_v31  ;;  %1669 = vmatprep.subr.bf16.mxu1 %v1574_v40  ;;  %v1606_v17 = vpack.c.bf16 %v1452_v37, %v1450_v16  ;;  %1898 = vxpose.xlu1.b32.cont [3/4] (short) %v536_v61, 128  ;;  %v4266_v23 = vmul.f32 %v3340_v18, %v1452_v37  ;;  %v540_v56 = vmax.f32 %v523_v8, 0.0 }
 0x36d   : > { %v3342_v35 = vpop.eup %3341  ;;  %3353 = vpow2.f32 %v1349_v60  ;;  %1867 = vxpose.xlu0.b32.end [4/4] (short) %v539_v48, 128 }
 0x36e   : > { %v3344_v44 = vpop.eup %3343  ;;  %3355 = vpow2.f32 %v1351_v10  ;;  %1710 = vmatprep.subr.bf16.mxu0 %v1606_v17  ;;  %1670 = vmatpush1.bf16.xpose.msra.mxu1 %v1573_v52  ;;  %v1185_v19 = vpop.xlane.xlu1 %1184  ;;  %v1453_v45 = vmul.f32 %v3342_v35, %v3342_v35 }
 0x36f   : > { %v3346_v41 = vpop.eup %3345  ;;  %v1269_v33 = vsub.f32 %v4034_v9, %v1185_v19  ;;  %v1270_v16 = vsub.f32 %v4036_v29, %v1185_v19  ;;  %v1454_v8 = vmul.f32 %v3344_v44, %v3344_v44 }
 0x370   : > { %v3348_v18 = vpop.eup %3347  ;;  %v1188_v48 = vpop.xlane.xlu0 %1187  ;;  %1899 = vxpose.xlu1.b32.end [4/4] (short) %v540_v56, 128  ;;  %v1575_v32 = vpack.c.bf16 %v3346_v41, %v3342_v35  ;;  %v1455_v0 = vmul.f32 %v3346_v41, %v3346_v41  ;;  %v4276_v52 = vmul.f32 %v3342_v35, %v1453_v45 }
 0x371   : > { %v1353_v31 = vmul.f32 1.442695, %v1269_v33  ;;  %v1355_v42 = vmul.f32 1.442695, %v1270_v16  ;;  %1711 = vmatpush1.bf16.xpose.msra.mxu0 %v1605_v36  ;;  %v1271_v4 = vsub.f32 %v4038_v15, %v1188_v48  ;;  %v1272_v40 = vsub.f32 %v4042_v46, %v1188_v48 }
 0x372   : > { %v1576_v37 = vpack.c.bf16 %v3348_v18, %v3344_v44  ;;  %v1456_v60 = vmul.f32 %v3348_v18, %v3348_v18  ;;  %v1607_v9 = vpack.c.bf16 %v1455_v0, %v1453_v45  ;;  %v4280_v10 = vmul.f32 %v3344_v44, %v1454_v8 }
 0x373   : > { %3357 = vpow2.f32 %v1353_v31  ;;  %v1357_v29 = vmul.f32 1.442695, %v1271_v4  ;;  %v1359_v17 = vmul.f32 1.442695, %v1272_v40  ;;  %v4282_v56 = vmul.f32 %v3346_v41, %v1455_v0 }
 0x374   : > { %3359 = vpow2.f32 %v1355_v42  ;;  %1671 = vmatprep.subr.bf16.mxu1 %v1576_v37  ;;  %v1608_v35 = vpack.c.bf16 %v1456_v60, %v1454_v8  ;;  %v4284_v19 = vmul.f32 %v3348_v18, %v1456_v60 }
 0x375   : > { %v3350_v36 = vpop.eup %3349  ;;  %3361 = vpow2.f32 %v1357_v29 }
 0x376   : > { %v3352_v46 = vpop.eup %3351  ;;  %3363 = vpow2.f32 %v1359_v17  ;;  %1712 = vmatprep.subr.bf16.mxu0 %v1608_v35  ;;  %1672 = vmatpush1.bf16.xpose.msra.mxu1 %v1575_v32  ;;  %v1191_v44 = vpop.xlane.xlu1 %1190  ;;  %v1457_v45 = vmul.f32 %v3350_v36, %v3350_v36 }
 0x377   : > { %v3354_v33 = vpop.eup %3353  ;;  %v1273_v16 = vsub.f32 %v4046_v63, %v1191_v44  ;;  %v1274_v8 = vsub.f32 %v4048_v49, %v1191_v44  ;;  %v1458_v18 = vmul.f32 %v3352_v46, %v3352_v46 }
 0x378   : > { %v3356_v48 = vpop.eup %3355  ;;  %v1194_v0 = vpop.xlane.xlu0 %1193  ;;  %v1577_v31 = vpack.c.bf16 %v3354_v33, %v3350_v36  ;;  %v1459_v42 = vmul.f32 %v3354_v33, %v3354_v33  ;;  %v4292_v4 = vmul.f32 %v3350_v36, %v1457_v45 }
 0x379   : > { %v1361_v40 = vmul.f32 1.442695, %v1273_v16  ;;  %v1363_v37 = vmul.f32 1.442695, %v1274_v8  ;;  %1713 = vmatpush1.bf16.xpose.msra.mxu0 %v1607_v9  ;;  %v1275_v32 = vsub.f32 %v4050_v2, %v1194_v0  ;;  %v1276_v60 = vsub.f32 %v4054_v47, %v1194_v0 }
 0x37a   : > { %v1578_v29 = vpack.c.bf16 %v3356_v48, %v3352_v46  ;;  %v1460_v17 = vmul.f32 %v3356_v48, %v3356_v48  ;;  %v1609_v35 = vpack.c.bf16 %v1459_v42, %v1457_v45  ;;  %v4296_v63 = vmul.f32 %v3352_v46, %v1458_v18 }
 0x37b   : > { %3365 = vpow2.f32 %v1361_v40  ;;  %v1365_v49 = vmul.f32 1.442695, %v1275_v32  ;;  %v1367_v44 = vmul.f32 1.442695, %v1276_v60  ;;  %v4298_v15 = vmul.f32 %v3354_v33, %v1459_v42 }
 0x37c   : > { %3367 = vpow2.f32 %v1363_v37  ;;  %1673 = vmatprep.subr.bf16.mxu1 %v1578_v29  ;;  %v1610_v36 = vpack.c.bf16 %v1460_v17, %v1458_v18  ;;  %v4300_v16 = vmul.f32 %v3356_v48, %v1460_v17 }
 0x37d   : > { %v3358_v9 = vpop.eup %3357  ;;  %3369 = vpow2.f32 %v1365_v49 }
 0x37e   : > { %v3360_v47 = vpop.eup %3359  ;;  %3371 = vpow2.f32 %v1367_v44  ;;  %1714 = vmatprep.subr.bf16.mxu0 %v1610_v36  ;;  %1674 = vmatpush1.bf16.xpose.msra.mxu1 %v1577_v31  ;;  %v1197_v46 = vpop.xlane.xlu1 %1196  ;;  %v1461_v45 = vmul.f32 %v3358_v9, %v3358_v9 }
 0x37f   : > { %v3362_v8 = vpop.eup %3361  ;;  %v1277_v0 = vsub.f32 %v4058_v12, %v1197_v46  ;;  %v1278_v18 = vsub.f32 %v4060_v50, %v1197_v46  ;;  %v1462_v48 = vmul.f32 %v3360_v47, %v3360_v47 }
 0x380   : > { %v3364_v42 = vpop.eup %3363  ;;  %v1200_v40 = vpop.xlane.xlu0 %1199  ;;  %v1579_v37 = vpack.c.bf16 %v3362_v8, %v3358_v9  ;;  %v1463_v32 = vmul.f32 %v3362_v8, %v3362_v8  ;;  %v4308_v60 = vmul.f32 %v3358_v9, %v1461_v45 }
 0x381   : > { %v1369_v29 = vmul.f32 1.442695, %v1277_v0  ;;  %v1371_v17 = vmul.f32 1.442695, %v1278_v18  ;;  %1715 = vmatpush1.bf16.xpose.msra.mxu0 %v1609_v35  ;;  %v1279_v31 = vsub.f32 %v4062_v14, %v1200_v40  ;;  %v1280_v49 = vsub.f32 %v4066_v20, %v1200_v40 }
 0x382   : > { %v1580_v44 = vpack.c.bf16 %v3364_v42, %v3360_v47  ;;  %v1464_v36 = vmul.f32 %v3364_v42, %v3364_v42  ;;  %v1611_v2 = vpack.c.bf16 %v1463_v32, %v1461_v45  ;;  %v4312_v12 = vmul.f32 %v3360_v47, %v1462_v48 }
 0x383   : > { %3373 = vpow2.f32 %v1369_v29  ;;  %v1373_v50 = vmul.f32 1.442695, %v1279_v31  ;;  %v1375_v46 = vmul.f32 1.442695, %v1280_v49  ;;  %v4314_v33 = vmul.f32 %v3362_v8, %v1463_v32 }
 0x384   : > { %3375 = vpow2.f32 %v1371_v17  ;;  %1675 = vmatprep.subr.bf16.mxu1 %v1580_v44  ;;  %v1612_v9 = vpack.c.bf16 %v1464_v36, %v1462_v48  ;;  %v4316_v0 = vmul.f32 %v3364_v42, %v1464_v36 }
 0x385   : > { %v3366_v35 = vpop.eup %3365  ;;  %3377 = vpow2.f32 %v1373_v50 }
 0x386   : > { %v3368_v20 = vpop.eup %3367  ;;  %3379 = vpow2.f32 %v1375_v46  ;;  %1716 = vmatprep.subr.bf16.mxu0 %v1612_v9  ;;  %1676 = vmatpush1.bf16.xpose.msra.mxu1 %v1579_v37  ;;  %v1203_v47 = vpop.xlane.xlu1 %1202  ;;  %v1465_v45 = vmul.f32 %v3366_v35, %v3366_v35 }
 0x387   : > { %v3370_v18 = vpop.eup %3369  ;;  %v1281_v40 = vsub.f32 %v4070_v26, %v1203_v47  ;;  %v1282_v48 = vsub.f32 %v4072_v27, %v1203_v47  ;;  %v1466_v42 = vmul.f32 %v3368_v20, %v3368_v20 }
 0x388   : > { %v3372_v32 = vpop.eup %3371  ;;  %v1206_v29 = vpop.xlane.xlu0 %1205  ;;  %v1581_v17 = vpack.c.bf16 %v3370_v18, %v3366_v35  ;;  %v1467_v31 = vmul.f32 %v3370_v18, %v3370_v18  ;;  %v4324_v49 = vmul.f32 %v3366_v35, %v1465_v45 }
 0x389   : > { %v1377_v44 = vmul.f32 1.442695, %v1281_v40  ;;  %v1379_v36 = vmul.f32 1.442695, %v1282_v48  ;;  %1717 = vmatpush1.bf16.xpose.msra.mxu0 %v1611_v2  ;;  %v1283_v37 = vsub.f32 %v4074_v39, %v1206_v29  ;;  %v1284_v50 = vsub.f32 %v4078_v43, %v1206_v29 }
 0x38a   : > { %v1582_v46 = vpack.c.bf16 %v3372_v32, %v3368_v20  ;;  %v1468_v9 = vmul.f32 %v3372_v32, %v3372_v32  ;;  %v1613_v14 = vpack.c.bf16 %v1467_v31, %v1465_v45  ;;  %v4328_v26 = vmul.f32 %v3368_v20, %v1466_v42 }
 0x38b   : > { %3381 = vpow2.f32 %v1377_v44  ;;  %v1381_v27 = vmul.f32 1.442695, %v1283_v37  ;;  %v1383_v47 = vmul.f32 1.442695, %v1284_v50  ;;  %v4330_v8 = vmul.f32 %v3370_v18, %v1467_v31 }
 0x38c   : > { %3383 = vpow2.f32 %v1379_v36  ;;  %1677 = vmatprep.subr.bf16.mxu1 %v1582_v46  ;;  %v1614_v35 = vpack.c.bf16 %v1468_v9, %v1466_v42  ;;  %v4332_v40 = vmul.f32 %v3372_v32, %v1468_v9 }
 0x38d   : > { %v3374_v2 = vpop.eup %3373  ;;  %3385 = vpow2.f32 %v1381_v27 }
 0x38e   : > { %v3376_v43 = vpop.eup %3375  ;;  %3387 = vpow2.f32 %v1383_v47  ;;  %1718 = vmatprep.subr.bf16.mxu0 %v1614_v35  ;;  %1678 = vmatpush1.bf16.xpose.msra.mxu1 %v1581_v17  ;;  %v1209_v20 = vpop.xlane.xlu1 %1208  ;;  %v1469_v45 = vmul.f32 %v3374_v2, %v3374_v2 }
 0x38f   : > { %v3378_v48 = vpop.eup %3377  ;;  %v1285_v29 = vsub.f32 %v4082_v53, %v1209_v20  ;;  %v1286_v42 = vsub.f32 %v4084_v57, %v1209_v20  ;;  %v1470_v32 = vmul.f32 %v3376_v43, %v3376_v43 }
 0x390   : > { %v3380_v31 = vpop.eup %3379  ;;  %v1212_v44 = vpop.xlane.xlu0 %1211  ;;  %v1583_v36 = vpack.c.bf16 %v3378_v48, %v3374_v2  ;;  %v1471_v37 = vmul.f32 %v3378_v48, %v3378_v48  ;;  %v4340_v50 = vmul.f32 %v3374_v2, %v1469_v45 }
 0x391   : > { %v1385_v46 = vmul.f32 1.442695, %v1285_v29  ;;  %v1387_v9 = vmul.f32 1.442695, %v1286_v42  ;;  %1719 = vmatpush1.bf16.xpose.msra.mxu0 %v1613_v14  ;;  %v1287_v17 = vsub.f32 %v4086_v38, %v1212_v44  ;;  %v1288_v27 = vsub.f32 %v4090_v11, %v1212_v44 }
 0x392   : > { %v1584_v47 = vpack.c.bf16 %v3380_v31, %v3376_v43  ;;  %v1472_v35 = vmul.f32 %v3380_v31, %v3380_v31  ;;  %v1615_v39 = vpack.c.bf16 %v1471_v37, %v1469_v45  ;;  %v4344_v53 = vmul.f32 %v3376_v43, %v1470_v32 }
 0x393   : > { %3389 = vpow2.f32 %v1385_v46  ;;  %v1389_v57 = vmul.f32 1.442695, %v1287_v17  ;;  %v1391_v20 = vmul.f32 1.442695, %v1288_v27  ;;  %v4346_v18 = vmul.f32 %v3378_v48, %v1471_v37 }
 0x394   : > { %3391 = vpow2.f32 %v1387_v9  ;;  %1679 = vmatprep.subr.bf16.mxu1 %v1584_v47  ;;  %v1616_v2 = vpack.c.bf16 %v1472_v35, %v1470_v32  ;;  %v4348_v29 = vmul.f32 %v3380_v31, %v1472_v35 }
 0x395   : > { %v3382_v14 = vpop.eup %3381  ;;  %3393 = vpow2.f32 %v1389_v57  ;;  %v5444_v57 = vld [vmem:[#allocation11_spill] sm:$0xff] }
 0x396   : > { %v3384_v11 = vpop.eup %3383  ;;  %3395 = vpow2.f32 %v1391_v20  ;;  %1720 = vmatprep.subr.bf16.mxu0 %v1616_v2  ;;  %1680 = vmatpush1.bf16.xpose.msra.mxu1 %v1583_v36  ;;  %v1215_v43 = vpop.xlane.xlu1 %1214  ;;  %v1473_v45 = vmul.f32 %v3382_v14, %v3382_v14 }
 0x397   : > { %v3386_v42 = vpop.eup %3385  ;;  %v1289_v44 = vsub.f32 %v4094_v3, %v1215_v43  ;;  %v1290_v32 = vsub.f32 %v4096_v21, %v1215_v43  ;;  %v1474_v31 = vmul.f32 %v3384_v11, %v3384_v11 }
 0x398   : > { %v3388_v37 = vpop.eup %3387  ;;  %v1218_v46 = vpop.xlane.xlu0 %1217  ;;  %v1585_v9 = vpack.c.bf16 %v3386_v42, %v3382_v14  ;;  %v1475_v17 = vmul.f32 %v3386_v42, %v3386_v42  ;;  %v4356_v27 = vmul.f32 %v3382_v14, %v1473_v45 }
 0x399   : > { %v1393_v47 = vmul.f32 1.442695, %v1289_v44  ;;  %v1395_v35 = vmul.f32 1.442695, %v1290_v32  ;;  %1721 = vmatpush1.bf16.xpose.msra.mxu0 %v1615_v39  ;;  %v1291_v36 = vsub.f32 %v4098_v22, %v1218_v46  ;;  %v1292_v20 = vsub.f32 %v5444_v57, %v1218_v46  ;;  %v5449_v22 = vld [vmem:[#allocation15_spill] sm:$0xff] }
 0x39a   : > { %v1586_v2 = vpack.c.bf16 %v3388_v37, %v3384_v11  ;;  %v1476_v38 = vmul.f32 %v3388_v37, %v3388_v37  ;;  %v1617_v48 = vpack.c.bf16 %v1475_v17, %v1473_v45  ;;  %v4360_v3 = vmul.f32 %v3384_v11, %v1474_v31 }
 0x39b   : > { %3397 = vpow2.f32 %v1393_v47  ;;  %v1397_v21 = vmul.f32 1.442695, %v1291_v36  ;;  %v1399_v43 = vmul.f32 1.442695, %v1292_v20  ;;  %v4362_v41 = vmul.f32 %v3386_v42, %v1475_v17  ;;  %v5445_v17 = vld [vmem:[#allocation12_spill] sm:$0xff] }
 0x39c   : > { %3399 = vpow2.f32 %v1395_v35  ;;  %1681 = vmatprep.subr.bf16.mxu1 %v1586_v2  ;;  %v1618_v14 = vpack.c.bf16 %v1476_v38, %v1474_v31  ;;  %v4364_v44 = vmul.f32 %v3388_v37, %v1476_v38  ;;  %v5446_v31 = vld [vmem:[#allocation13_spill] sm:$0xff] }
 0x39d   : > { %v3390_v39 = vpop.eup %3389  ;;  %3401 = vpow2.f32 %v1397_v21 }
 0x39e   : > { %v3392_v32 = vpop.eup %3391  ;;  %3403 = vpow2.f32 %v1399_v43  ;;  %1722 = vmatprep.subr.bf16.mxu0 %v1618_v14  ;;  %1682 = vmatpush1.bf16.xpose.msra.mxu1 %v1585_v9  ;;  %v1221_v11 = vpop.xlane.xlu1 %1220  ;;  %v1477_v45 = vmul.f32 %v3390_v39, %v3390_v39  ;;  %v5448_v9 = vld [vmem:[#allocation14_spill] sm:$0xff] }
 0x39f   : > { %v3394_v46 = vpop.eup %3393  ;;  %v1293_v47 = vsub.f32 %v5445_v17, %v1221_v11  ;;  %v1294_v38 = vsub.f32 %v5446_v31, %v1221_v11  ;;  %v1478_v37 = vmul.f32 %v3392_v32, %v3392_v32 }
 0x3a0   : > { %v3396_v35 = vpop.eup %3395  ;;  %v1224_v36 = vpop.xlane.xlu0 %1223  ;;  %v1587_v57 = vpack.c.bf16 %v3394_v46, %v3390_v39  ;;  %v1479_v20 = vmul.f32 %v3394_v46, %v3394_v46  ;;  %v4372_v2 = vmul.f32 %v3390_v39, %v1477_v45 }
 0x3a1   : > { %v1401_v21 = vmul.f32 1.442695, %v1293_v47  ;;  %v1403_v43 = vmul.f32 1.442695, %v1294_v38  ;;  %1723 = vmatpush1.bf16.xpose.msra.mxu0 %v1617_v48  ;;  %v1295_v14 = vsub.f32 %v5448_v9, %v1224_v36  ;;  %v1296_v61 = vsub.f32 %v5449_v22, %v1224_v36  ;;  %v5453_v36 = vld [vmem:[#allocation16_spill] sm:$0xff]  ;;  %v5457_v22 = vld [vmem:[#allocation19_spill] sm:$0xff] }
 0x3a2   : > { %5447 = vst [vmem:[#allocation3_spill] sm:$0xff] %v4372_v2  ;;  %v1588_v42 = vpack.c.bf16 %v3396_v35, %v3392_v32  ;;  %v1480_v54 = vmul.f32 %v3396_v35, %v3396_v35  ;;  %v1619_v25 = vpack.c.bf16 %v1479_v20, %v1477_v45  ;;  %v4376_v17 = vmul.f32 %v3392_v32, %v1478_v37 }
 0x3a3   : > { %3405 = vpow2.f32 %v1401_v21  ;;  %v1405_v11 = vmul.f32 1.442695, %v1295_v14  ;;  %v1407_v31 = vmul.f32 1.442695, %v1296_v61  ;;  %v4378_v24 = vmul.f32 %v3394_v46, %v1479_v20 }
 0x3a4   : > { %5450 = vst [vmem:[#allocation4_spill] sm:$0xff] %v4376_v17  ;;  %3407 = vpow2.f32 %v1403_v43  ;;  %1683 = vmatprep.subr.bf16.mxu1 %v1588_v42  ;;  %v1620_v39 = vpack.c.bf16 %v1480_v54, %v1478_v37  ;;  %v4380_v47 = vmul.f32 %v3396_v35, %v1480_v54  ;;  %v5454_v37 = vld [vmem:[#allocation17_spill] sm:$0xff] }
 0x3a5   : > { %5451 = vst [vmem:[#allocation2_spill] sm:$0xff] %v4378_v24  ;;  %v3398_v48 = vpop.eup %3397  ;;  %3409 = vpow2.f32 %v1405_v11 }
 0x3a6   : > { %5452 = vst [vmem:[#allocation5_spill] sm:$0xff] %v4380_v47  ;;  %v3400_v38 = vpop.eup %3399  ;;  %3411 = vpow2.f32 %v1407_v31  ;;  %1724 = vmatprep.subr.bf16.mxu0 %v1620_v39  ;;  %1684 = vmatpush1.bf16.xpose.msra.mxu1 %v1587_v57  ;;  %v1227_v32 = vpop.xlane.xlu1 %1226  ;;  %v1481_v45 = vmul.f32 %v3398_v48, %v3398_v48  ;;  %v5456_v57 = vld [vmem:[#allocation18_spill] sm:$0xff] }
 0x3a7   : > { %v3402_v46 = vpop.eup %3401  ;;  %v1297_v42 = vsub.f32 %v5453_v36, %v1227_v32  ;;  %v1298_v54 = vsub.f32 %v5454_v37, %v1227_v32  ;;  %v1482_v35 = vmul.f32 %v3400_v38, %v3400_v38 }
 0x3a8   : > { %v3404_v20 = vpop.eup %3403  ;;  %v1230_v21 = vpop.xlane.xlu0 %1229  ;;  %v1589_v43 = vpack.c.bf16 %v3402_v46, %v3398_v48  ;;  %v1483_v9 = vmul.f32 %v3402_v46, %v3402_v46  ;;  %v4388_v14 = vmul.f32 %v3398_v48, %v1481_v45 }
 0x3a9   : > { %v1409_v11 = vmul.f32 1.442695, %v1297_v42  ;;  %v1411_v31 = vmul.f32 1.442695, %v1298_v54  ;;  %1725 = vmatpush1.bf16.xpose.msra.mxu0 %v1619_v25  ;;  %v1299_v39 = vsub.f32 %v5456_v57, %v1230_v21  ;;  %v1300_v2 = vsub.f32 %v5457_v22, %v1230_v21  ;;  %v5461_v21 = vld [vmem:[#allocation20_spill] sm:$0xff]  ;;  %v5465_v22 = vld [vmem:[#allocation23_spill] sm:$0xff] }
 0x3aa   : > { %5455 = vst [vmem:[#allocation6_spill] sm:$0xff] %v4388_v14  ;;  %v1590_v61 = vpack.c.bf16 %v3404_v20, %v3400_v38  ;;  %v1484_v24 = vmul.f32 %v3404_v20, %v3404_v20  ;;  %v1621_v17 = vpack.c.bf16 %v1483_v9, %v1481_v45  ;;  %v4392_v36 = vmul.f32 %v3400_v38, %v1482_v35 }
 0x3ab   : > { %3413 = vpow2.f32 %v1409_v11  ;;  %v1413_v32 = vmul.f32 1.442695, %v1299_v39  ;;  %v1415_v37 = vmul.f32 1.442695, %v1300_v2  ;;  %v4394_v47 = vmul.f32 %v3402_v46, %v1483_v9 }
 0x3ac   : > { %5458 = vst [vmem:[#allocation11_spill] sm:$0xff] %v4392_v36  ;;  %3415 = vpow2.f32 %v1411_v31  ;;  %1685 = vmatprep.subr.bf16.mxu1 %v1590_v61  ;;  %v1622_v48 = vpack.c.bf16 %v1484_v24, %v1482_v35  ;;  %v4396_v42 = vmul.f32 %v3404_v20, %v1484_v24  ;;  %v5462_v35 = vld [vmem:[#allocation21_spill] sm:$0xff] }
 0x3ad   : > { %5459 = vst [vmem:[#allocation12_spill] sm:$0xff] %v4394_v47  ;;  %v3406_v25 = vpop.eup %3405  ;;  %3417 = vpow2.f32 %v1413_v32 }
 0x3ae   : > { %5460 = vst [vmem:[#allocation13_spill] sm:$0xff] %v4396_v42  ;;  %v3408_v54 = vpop.eup %3407  ;;  %3419 = vpow2.f32 %v1415_v37  ;;  %1726 = vmatprep.subr.bf16.mxu0 %v1622_v48  ;;  %1686 = vmatpush1.bf16.xpose.msra.mxu1 %v1589_v43  ;;  %v1233_v38 = vpop.xlane.xlu1 %1232  ;;  %v1485_v45 = vmul.f32 %v3406_v25, %v3406_v25  ;;  %v5464_v43 = vld [vmem:[#allocation22_spill] sm:$0xff] }
 0x3af   : > { %v3410_v46 = vpop.eup %3409  ;;  %v1301_v61 = vsub.f32 %v5461_v21, %v1233_v38  ;;  %v1302_v24 = vsub.f32 %v5462_v35, %v1233_v38  ;;  %v1486_v20 = vmul.f32 %v3408_v54, %v3408_v54 }
 0x3b0   : > { %v3412_v9 = vpop.eup %3411  ;;  %v1236_v11 = vpop.xlane.xlu0 %1235  ;;  %v1591_v31 = vpack.c.bf16 %v3410_v46, %v3406_v25  ;;  %v1487_v57 = vmul.f32 %v3410_v46, %v3410_v46  ;;  %v4404_v39 = vmul.f32 %v3406_v25, %v1485_v45 }
 0x3b1   : > { %v1417_v32 = vmul.f32 1.442695, %v1301_v61  ;;  %v1419_v37 = vmul.f32 1.442695, %v1302_v24  ;;  %1727 = vmatpush1.bf16.xpose.msra.mxu0 %v1621_v17  ;;  %v1303_v48 = vsub.f32 %v5464_v43, %v1236_v11  ;;  %v1304_v14 = vsub.f32 %v5465_v22, %v1236_v11  ;;  %v5469_v11 = vld [vmem:[#allocation24_spill] sm:$0xff]  ;;  %v5473_v22 = vld [vmem:[#allocation27_spill] sm:$0xff] }
 0x3b2   : > { %5463 = vst [vmem:[#allocation14_spill] sm:$0xff] %v4404_v39  ;;  %v1592_v2 = vpack.c.bf16 %v3412_v9, %v3408_v54  ;;  %v1488_v47 = vmul.f32 %v3412_v9, %v3412_v9  ;;  %v1623_v36 = vpack.c.bf16 %v1487_v57, %v1485_v45  ;;  %v4408_v21 = vmul.f32 %v3408_v54, %v1486_v20 }
 0x3b3   : > { %3421 = vpow2.f32 %v1417_v32  ;;  %v1421_v38 = vmul.f32 1.442695, %v1303_v48  ;;  %v1423_v35 = vmul.f32 1.442695, %v1304_v14  ;;  %v4410_v42 = vmul.f32 %v3410_v46, %v1487_v57 }
 0x3b4   : > { %5466 = vst [vmem:[#allocation15_spill] sm:$0xff] %v4408_v21  ;;  %3423 = vpow2.f32 %v1419_v37  ;;  %1687 = vmatprep.subr.bf16.mxu1 %v1592_v2  ;;  %v1624_v25 = vpack.c.bf16 %v1488_v47, %v1486_v20  ;;  %v4412_v61 = vmul.f32 %v3412_v9, %v1488_v47  ;;  %v5470_v20 = vld [vmem:[#allocation25_spill] sm:$0xff] }
 0x3b5   : > { %5467 = vst [vmem:[#allocation16_spill] sm:$0xff] %v4410_v42  ;;  %v3414_v17 = vpop.eup %3413  ;;  %3425 = vpow2.f32 %v1421_v38 }
 0x3b6   : > { %5468 = vst [vmem:[#allocation17_spill] sm:$0xff] %v4412_v61  ;;  %v3416_v24 = vpop.eup %3415  ;;  %3427 = vpow2.f32 %v1423_v35  ;;  %1728 = vmatprep.subr.bf16.mxu0 %v1624_v25  ;;  %1688 = vmatpush1.bf16.xpose.msra.mxu1 %v1591_v31  ;;  %v1239_v54 = vpop.xlane.xlu1 %1238  ;;  %v1489_v45 = vmul.f32 %v3414_v17, %v3414_v17  ;;  %v5472_v31 = vld [vmem:[#allocation26_spill] sm:$0xff] }
 0x3b7   : > { %v3418_v46 = vpop.eup %3417  ;;  %v1305_v2 = vsub.f32 %v5469_v11, %v1239_v54  ;;  %v1306_v47 = vsub.f32 %v5470_v20, %v1239_v54  ;;  %v1490_v9 = vmul.f32 %v3416_v24, %v3416_v24 }
 0x3b8   : > { %v3420_v57 = vpop.eup %3419  ;;  %v1242_v32 = vpop.xlane.xlu0 %1241  ;;  %v1593_v37 = vpack.c.bf16 %v3418_v46, %v3414_v17  ;;  %v1491_v43 = vmul.f32 %v3418_v46, %v3418_v46  ;;  %v4420_v48 = vmul.f32 %v3414_v17, %v1489_v45 }
 0x3b9   : > { %v1425_v38 = vmul.f32 1.442695, %v1305_v2  ;;  %v1427_v35 = vmul.f32 1.442695, %v1306_v47  ;;  %1729 = vmatpush1.bf16.xpose.msra.mxu0 %v1623_v36  ;;  %v1307_v25 = vsub.f32 %v5472_v31, %v1242_v32  ;;  %v1308_v39 = vsub.f32 %v5473_v22, %v1242_v32  ;;  %v5476_v32 = vld [vmem:[#allocation28_spill] sm:$0xff] }
 0x3ba   : > { %5471 = vst [vmem:[#allocation18_spill] sm:$0xff] %v4420_v48  ;;  %v1594_v14 = vpack.c.bf16 %v3420_v57, %v3416_v24  ;;  %v1492_v42 = vmul.f32 %v3420_v57, %v3420_v57  ;;  %v1625_v21 = vpack.c.bf16 %v1491_v43, %v1489_v45  ;;  %v4424_v11 = vmul.f32 %v3416_v24, %v1490_v9 }
 0x3bb   : > { %3429 = vpow2.f32 %v1425_v38  ;;  %v1429_v54 = vmul.f32 1.442695, %v1307_v25  ;;  %v1431_v20 = vmul.f32 1.442695, %v1308_v39  ;;  %v4426_v61 = vmul.f32 %v3418_v46, %v1491_v43 }
 0x3bc   : > { %5474 = vst [vmem:[#allocation19_spill] sm:$0xff] %v4424_v11  ;;  %3431 = vpow2.f32 %v1427_v35  ;;  %1689 = vmatprep.subr.bf16.mxu1 %v1594_v14  ;;  %v1626_v17 = vpack.c.bf16 %v1492_v42, %v1490_v9  ;;  %v4428_v2 = vmul.f32 %v3420_v57, %v1492_v42  ;;  %v5477_v9 = vld [vmem:[#allocation29_spill] sm:$0xff] }
 0x3bd   : > { %5475 = vst [vmem:[#allocation20_spill] sm:$0xff] %v4426_v61  ;;  %v3422_v36 = vpop.eup %3421  ;;  %3433 = vpow2.f32 %v1429_v54 }
 0x3be   : > { %v3424_v47 = vpop.eup %3423  ;;  %3435 = vpow2.f32 %v1431_v20  ;;  %1730 = vmatprep.subr.bf16.mxu0 %v1626_v17  ;;  %1690 = vmatpush1.bf16.xpose.msra.mxu1 %v1593_v37  ;;  %v1245_v24 = vpop.xlane.xlu1 %1244  ;;  %v1493_v45 = vmul.f32 %v3422_v36, %v3422_v36  ;;  %v5478_v17 = vld [vmem:[#allocation30_spill] sm:$0xff] }
 0x3bf   : > { %v3426_v46 = vpop.eup %3425  ;;  %v1309_v14 = vsub.f32 %v5476_v32, %v1245_v24  ;;  %v1310_v42 = vsub.f32 %v5477_v9, %v1245_v24  ;;  %v1494_v57 = vmul.f32 %v3424_v47, %v3424_v47 }
 0x3c0   : > { %v3428_v43 = vpop.eup %3427  ;;  %v1248_v38 = vpop.xlane.xlu0 %1247  ;;  %v1595_v35 = vpack.c.bf16 %v3426_v46, %v3422_v36  ;;  %v1495_v31 = vmul.f32 %v3426_v46, %v3426_v46  ;;  %v4436_v25 = vmul.f32 %v3422_v36, %v1493_v45 }
 0x3c1   : > { %v1433_v54 = vmul.f32 1.442695, %v1309_v14  ;;  %v1435_v20 = vmul.f32 1.442695, %v1310_v42  ;;  %1731 = vmatpush1.bf16.xpose.msra.mxu0 %v1625_v21  ;;  %v1311_v37 = vsub.f32 %v4158_v55, %v1248_v38  ;;  %v1312_v22 = vsub.f32 %v5478_v17, %v1248_v38 }
 0x3c2   : > { %v1596_v39 = vpack.c.bf16 %v3428_v43, %v3424_v47  ;;  %v1496_v48 = vmul.f32 %v3428_v43, %v3428_v43  ;;  %v1627_v61 = vpack.c.bf16 %v1495_v31, %v1493_v45  ;;  %v4440_v32 = vmul.f32 %v3424_v47, %v1494_v57 }
 0x3c3   : > { %3437 = vpow2.f32 %v1433_v54  ;;  %v1437_v24 = vmul.f32 1.442695, %v1311_v37  ;;  %v1439_v9 = vmul.f32 1.442695, %v1312_v22  ;;  %v4442_v11 = vmul.f32 %v3426_v46, %v1495_v31 }
 0x3c4   : > { %3439 = vpow2.f32 %v1435_v20  ;;  %1691 = vmatprep.subr.bf16.mxu1 %v1596_v39  ;;  %v1628_v36 = vpack.c.bf16 %v1496_v48, %v1494_v57  ;;  %v4444_v14 = vmul.f32 %v3428_v43, %v1496_v48 }
 0x3c5   : > { %v3430_v21 = vpop.eup %3429  ;;  %3441 = vpow2.f32 %v1437_v24 }
 0x3c6   : > { %v3432_v42 = vpop.eup %3431  ;;  %3443 = vpow2.f32 %v1439_v9  ;;  %1732 = vmatprep.subr.bf16.mxu0 %v1628_v36  ;;  %1692 = vmatpush1.bf16.xpose.msra.mxu1 %v1595_v35  ;;  %v1497_v47 = vmul.f32 %v3430_v21, %v3430_v21 }
 0x3c7   : > { %v3434_v45 = vpop.eup %3433  ;;  %v1498_v46 = vmul.f32 %v3432_v42, %v3432_v42 }
 0x3c8   : > { %v3436_v38 = vpop.eup %3435  ;;  %v1597_v39 = vpack.c.bf16 %v3434_v45, %v3430_v21  ;;  %v1499_v57 = vmul.f32 %v3434_v45, %v3434_v45  ;;  %v4450_v48 = vmul.f32 %v3430_v21, %v1497_v47 }
 0x3c9   : > { %1733 = vmatpush1.bf16.xpose.msra.mxu0 %v1627_v61  ;;  %v1598_v43 = vpack.c.bf16 %v3436_v38, %v3432_v42  ;;  %v1500_v31 = vmul.f32 %v3436_v38, %v3436_v38  ;;  %v4452_v54 = vmul.f32 %v3432_v42, %v1498_v46 }
 0x3ca   : > { %v1629_v20 = vpack.c.bf16 %v1499_v57, %v1497_v47  ;;  %v4454_v37 = vmul.f32 %v3434_v45, %v1499_v57 }
 0x3cb   : > { %1693 = vmatprep.subr.bf16.mxu1 %v1598_v43  ;;  %v1630_v35 = vpack.c.bf16 %v1500_v31, %v1498_v46  ;;  %v4456_v17 = vmul.f32 %v3436_v38, %v1500_v31 }
 0x3cd   : > { %v3438_v9 = vpop.eup %3437  ;;  %1734 = vmatprep.subr.bf16.mxu0 %v1630_v35 }
 0x3ce   : > { %v3440_v61 = vpop.eup %3439  ;;  %1694 = vmatpush1.bf16.xpose.msra.mxu1 %v1597_v39  ;;  %v1501_v21 = vmul.f32 %v3438_v9, %v3438_v9 }
 0x3cf   : > { %v3442_v42 = vpop.eup %3441  ;;  %v1502_v55 = vmul.f32 %v3440_v61, %v3440_v61 }
 0x3d0   : > { %v3444_v47 = vpop.eup %3443  ;;  %v1599_v45 = vpack.c.bf16 %v3442_v42, %v3438_v9  ;;  %v1503_v57 = vmul.f32 %v3442_v42, %v3442_v42  ;;  %v4462_v43 = vmul.f32 %v3438_v9, %v1501_v21 }
 0x3d1   : > { %1735 = vmatpush1.bf16.xpose.msra.mxu0 %v1629_v20  ;;  %v1600_v46 = vpack.c.bf16 %v3444_v47, %v3440_v61  ;;  %v1504_v38 = vmul.f32 %v3444_v47, %v3444_v47  ;;  %v4464_v31 = vmul.f32 %v3440_v61, %v1502_v55  ;;  %v5479_v20 = vpack.c.bf16 %v4204_v7, %v4196_v58  ;;  %v4480_v61 = vld [vmem:[%s5319_s2] sm:$0x77] }
 0x3d2   : > { %v1631_v24 = vpack.c.bf16 %v1503_v57, %v1501_v21  ;;  %v4466_v35 = vmul.f32 %v3442_v42, %v1503_v57  ;;  %v5482_v58 = vpack.c.bf16 %v4251_v62, %v4242_v6 }
 0x3d3   : > { %1695 = vmatprep.subr.bf16.mxu1 %v1600_v46  ;;  %v1632_v36 = vpack.c.bf16 %v1504_v38, %v1502_v55  ;;  %v4468_v22 = vmul.f32 %v3444_v47, %v1504_v38  ;;  %v4484_v55 = vpack.c.bf16 %v4480_v61, %v4480_v61 }
 0x3d5   : > { %1736 = vmatprep.subr.bf16.mxu0 %v1632_v36  ;;  %5480 = vst [vmem:[#allocation21_spill] sm:$0xff] %v4484_v55  ;;  %v5481_v36 = vpack.c.bf16 %v4211_v51, %v4189_v30  ;;  %v5485_v51 = vpack.c.bf16 %v4266_v23, %v4262_v1  ;;  %v5486_v23 = vpack.c.bf16 %v4268_v59, %v4264_v5 }
 0x3d6   : > { %1696 = vmatpush1.bf16.xpose.msra.mxu1 %v1599_v45  ;;  %v5484_v45 = vpack.c.bf16 %v4245_v28, %v4233_v34 }
 0x3d7   : > { %1747 = vmatprep.subr.bf16.mxu1 %v5479_v20 }
 0x3d9   : > { %1737 = vmatpush1.bf16.xpose.msra.mxu0 %v1631_v24  ;;  %v5483_v24 = vmov 0.00390625  }
 0x3dd   : > { %1698 = vmatmul.mubr.bf16.vlgmr.msra.gmra.mrb[84].mxu1 %v4484_v55 }
 0x3de   : > { %1748 = vmatpush1.bf16.xpose.msra.mxu1 %v5481_v36  ;;  %1779 = vmatprep.mubr.bf16.mxu1 %v4209_v13 }
 0x3df   : > { %1749 = vmatprep.subr.bf16.mxu1 %v5482_v58 }
 0x3e0   : > { %1739 = vmatmul.mubr.bf16.vlgmr.msra.gmra.mrb[16].mxu0 %v4484_v55 }
 0x3e1   : > { %v1880_v7 = vpop.trf.xlu0  ;;  %1992 = vmatprep.mubr.f32.mxu0 %v5483_v24 }
 0x3e2   : > { %v4496_v21 = vmul.f32 0.17677669, %v1880_v7 }
 0x3e4   : > { %v1912_v42 = vpop.trf.xlu1 }
 0x3e5   : > { %v1881_v47 = vpop.trf.xlu0  ;;  %v4508_v57 = vmul.f32 0.17677669, %v1912_v42 }
 0x3e6   : > { %1750 = vmatpush1.bf16.xpose.msra.mxu1 %v5484_v45  ;;  %v4501_v30 = vmul.f32 0.17677669, %v1881_v47  ;;  %v3264_v36 = vpack.c.bf16 %v1881_v47, %v1880_v7 }
 0x3e7   : > { %1751 = vmatprep.subr.bf16.mxu1 %v5485_v51 }
 0x3e8   : > { %v2035_v6 = vpack.c.bf16 %v4501_v30, %v4496_v21  ;;  %v1913_v62 = vpop.trf.xlu1  ;;  %v5524_v21 = vld [vmem:[#allocation20_spill] sm:$0xff]  ;;  %v5525_v30 = vld [vmem:[#allocation18_spill] sm:$0xff] }
 0x3e9   : > { %v3262_v46 = vpack.c.bf16 %v1913_v62, %v1912_v42  ;;  %v4510_v38 = vmul.f32 0.17677669, %v1913_v62  ;;  %v1882_v20 = vpop.trf.xlu0  ;;  %v5487_v42 = vpack.c.bf16 %v4284_v19, %v4280_v10  ;;  %v5488_v19 = vpack.c.bf16 %v4282_v56, %v4276_v52 }
 0x3ea   : > { %v4514_v28 = vmul.f32 0.17677669, %v1882_v20 }
 0x3eb   : > { %3263 = vmatprep.subr.bf16.mxu0 %v3262_v46 }
 0x3ec   : > { %v1914_v58 = vpop.trf.xlu1  ;;  %3265 = vmatpush3.bf16.msra.mxu0 %v3264_v36 }
 0x3ed   : > { %v1883_v1 = vpop.trf.xlu0  ;;  %v4526_v51 = vmul.f32 0.17677669, %v1914_v58 }
 0x3ee   : > { %1752 = vmatpush1.bf16.xpose.msra.mxu1 %v5486_v23  ;;  %v4519_v45 = vmul.f32 0.17677669, %v1883_v1  ;;  %v3268_v34 = vpack.c.bf16 %v1883_v1, %v1882_v20 }
 0x3ef   : > { %1753 = vmatprep.subr.bf16.mxu1 %v5487_v42 }
 0x3f0   : > { %v2036_v7 = vpack.c.bf16 %v4519_v45, %v4514_v28  ;;  %v1915_v47 = vpop.trf.xlu1  ;;  %v5530_v28 = vpack.c.bf16 %v4456_v17, %v4452_v54  ;;  %v5537_v17 = vpack.c.bf16 %v4510_v38, %v4508_v57 }
 0x3f1   : > { %v3266_v62 = vpack.c.bf16 %v1915_v47, %v1914_v58  ;;  %v4528_v46 = vmul.f32 0.17677669, %v1915_v47  ;;  %v1884_v36 = vpop.trf.xlu0  ;;  %v5489_v58 = vpack.c.bf16 %v4300_v16, %v4296_v63  ;;  %v5490_v16 = vpack.c.bf16 %v4298_v15, %v4292_v4 }
 0x3f2   : > { %v4532_v59 = vmul.f32 0.17677669, %v1884_v36 }
 0x3f3   : > { %3267 = vmatprep.subr.bf16.mxu0 %v3266_v62 }
 0x3f4   : > { %v1916_v23 = vpop.trf.xlu1  ;;  %3269 = vmatpush3.bf16.msra.mxu0 %v3268_v34 }
 0x3f5   : > { %v1885_v10 = vpop.trf.xlu0  ;;  %v4544_v47 = vmul.f32 0.17677669, %v1916_v23 }
 0x3f6   : > { %1754 = vmatpush1.bf16.xpose.msra.mxu1 %v5488_v19  ;;  %v4537_v42 = vmul.f32 0.17677669, %v1885_v10  ;;  %v3272_v39 = vpack.c.bf16 %v1885_v10, %v1884_v36 }
 0x3f7   : > { %1755 = vmatprep.subr.bf16.mxu1 %v5489_v58 }
 0x3f8   : > { %v1917_v1 = vpop.trf.xlu1 }
 0x3f9   : > { %v3270_v62 = vpack.c.bf16 %v1917_v1, %v1916_v23  ;;  %v4546_v5 = vmul.f32 0.17677669, %v1917_v1  ;;  %v1886_v34 = vpop.trf.xlu0  ;;  %v5491_v23 = vpack.c.bf16 %v4316_v0, %v4312_v12  ;;  %v5492_v0 = vpack.c.bf16 %v4314_v33, %v4308_v60 }
 0x3fa   : > { %v4550_v56 = vmul.f32 0.17677669, %v1886_v34 }
 0x3fb   : > { %3271 = vmatprep.subr.bf16.mxu0 %v3270_v62 }
 0x3fc   : > { %v1918_v19 = vpop.trf.xlu1  ;;  %3273 = vmatpush3.bf16.msra.mxu0 %v3272_v39 }
 0x3fd   : > { %v1887_v63 = vpop.trf.xlu0  ;;  %v4562_v1 = vmul.f32 0.17677669, %v1918_v19 }
 0x3fe   : > { %1756 = vmatpush1.bf16.xpose.msra.mxu1 %v5490_v16  ;;  %v4555_v58 = vmul.f32 0.17677669, %v1887_v63  ;;  %v3276_v9 = vpack.c.bf16 %v1887_v63, %v1886_v34 }
 0x3ff   : > { %1757 = vmatprep.subr.bf16.mxu1 %v5491_v23 }
 0x400   : > { %v1919_v10 = vpop.trf.xlu1  ;;  %v5531_v45 = vpack.c.bf16 %v4555_v58, %v4550_v56  ;;  %v5543_v56 = vlaneseq }
 0x401   : > { %v3274_v62 = vpack.c.bf16 %v1919_v10, %v1918_v19  ;;  %v4564_v52 = vmul.f32 0.17677669, %v1919_v10  ;;  %v1888_v39 = vpop.trf.xlu0  ;;  %v5493_v19 = vpack.c.bf16 %v4332_v40, %v4328_v26  ;;  %v5494_v40 = vpack.c.bf16 %v4330_v8, %v4324_v49 }
 0x402   : > { %v4568_v4 = vmul.f32 0.17677669, %v1888_v39  ;;  %v1795_v58 = vshrl.u32 %v5543_v56, 7 }
 0x403   : > { %3275 = vmatprep.subr.bf16.mxu0 %v3274_v62 }
 0x404   : > { %v1920_v16 = vpop.trf.xlu1  ;;  %3277 = vmatpush3.bf16.msra.mxu0 %v3276_v9 }
 0x405   : > { %v1889_v12 = vpop.trf.xlu0  ;;  %v4580_v10 = vmul.f32 0.17677669, %v1920_v16 }
 0x406   : > { %1758 = vmatpush1.bf16.xpose.msra.mxu1 %v5492_v0  ;;  %v4573_v23 = vmul.f32 0.17677669, %v1889_v12  ;;  %v3280_v36 = vpack.c.bf16 %v1889_v12, %v1888_v39 }
 0x407   : > { %1759 = vmatprep.subr.bf16.mxu1 %v5493_v19 }
 0x408   : > { %v1921_v63 = vpop.trf.xlu1 }
 0x409   : > { %v3278_v62 = vpack.c.bf16 %v1921_v63, %v1920_v16  ;;  %v4582_v15 = vmul.f32 0.17677669, %v1921_v63  ;;  %v1890_v9 = vpop.trf.xlu0  ;;  %v5495_v16 = vpack.c.bf16 %v4348_v29, %v4344_v53  ;;  %v5496_v29 = vpack.c.bf16 %v4346_v18, %v4340_v50 }
 0x40a   : > { %v4586_v60 = vmul.f32 0.17677669, %v1890_v9  ;;  %v5498_v50 = vpack.c.bf16 %v4362_v41, %v4356_v27  ;;  %v5507_v41 = vld [vmem:[#allocation11_spill] sm:$0xff] }
 0x40b   : > { %3279 = vmatprep.subr.bf16.mxu0 %v3278_v62  ;;  %v5541_v57 = vpack.c.bf16 %v4582_v15, %v4580_v10 }
 0x40c   : > { %v1922_v0 = vpop.trf.xlu1  ;;  %3281 = vmatpush3.bf16.msra.mxu0 %v3280_v36 }
 0x40d   : > { %v1891_v26 = vpop.trf.xlu0  ;;  %v4598_v63 = vmul.f32 0.17677669, %v1922_v0 }
 0x40e   : > { %1760 = vmatpush1.bf16.xpose.msra.mxu1 %v5494_v40  ;;  %v4591_v19 = vmul.f32 0.17677669, %v1891_v26  ;;  %v3284_v34 = vpack.c.bf16 %v1891_v26, %v1890_v9 }
 0x40f   : > { %1761 = vmatprep.subr.bf16.mxu1 %v5495_v16 }
 0x410   : > { %v1923_v12 = vpop.trf.xlu1  ;;  %v5536_v54 = vpack.c.bf16 %v4591_v19, %v4586_v60 }
 0x411   : > { %v3282_v62 = vpack.c.bf16 %v1923_v12, %v1922_v0  ;;  %v4600_v33 = vmul.f32 0.17677669, %v1923_v12  ;;  %v1892_v36 = vpop.trf.xlu0  ;;  %v5497_v0 = vpack.c.bf16 %v4364_v44, %v4360_v3  ;;  %v5499_v44 = vld [vmem:[#allocation5_spill] sm:$0xff] }
 0x412   : > { %v2015_v49 = vmul.f32 0.17677669, %v1892_v36 }
 0x413   : > { %3283 = vmatprep.subr.bf16.mxu0 %v3282_v62  ;;  %v5542_v38 = vpack.c.bf16 %v4600_v33, %v4598_v63 }
 0x414   : > { %v1924_v40 = vpop.trf.xlu1  ;;  %3285 = vmatpush3.bf16.msra.mxu0 %v3284_v34 }
 0x415   : > { %v1893_v53 = vpop.trf.xlu0  ;;  %v4610_v9 = vmul.f32 0.17677669, %v1924_v40 }
 0x416   : > { %1762 = vmatpush1.bf16.xpose.msra.mxu1 %v5496_v29  ;;  %v2016_v16 = vmul.f32 0.17677669, %v1893_v53  ;;  %v3288_v20 = vpack.c.bf16 %v1893_v53, %v1892_v36  ;;  %v5502_v53 = vld [vmem:[#allocation8_spill] sm:$0xff] }
 0x417   : > { %1763 = vmatprep.subr.bf16.mxu1 %v5497_v0  ;;  %v5504_v0 = vld [vmem:[#allocation3_spill] sm:$0xff] }
 0x418   : > { %v2041_v12 = vpack.c.bf16 %v2016_v16, %v2015_v49  ;;  %v1925_v39 = vpop.trf.xlu1  ;;  %v5500_v49 = vld [vmem:[#allocation4_spill] sm:$0xff]  ;;  %v5503_v16 = vld [vmem:[#allocation2_spill] sm:$0xff] }
 0x419   : > { %v3286_v26 = vpack.c.bf16 %v1925_v39, %v1924_v40  ;;  %v4612_v8 = vmul.f32 0.17677669, %v1925_v39  ;;  %v1894_v62 = vpop.trf.xlu0  ;;  %v5501_v29 = vpack.c.bf16 %v5499_v44, %v5500_v49  ;;  %v5510_v44 = vmov 0   ;;  %v5511_v49 = vld [vmem:[#allocation9_spill] sm:$0xff] }
 0x41b   : > { %v2049_v34 = vpack.c.bf16 %v4612_v8, %v4610_v9  ;;  %3287 = vmatprep.subr.bf16.mxu0 %v3286_v26  ;;  %v5506_v26 = vld [vmem:[#allocation13_spill] sm:$0xff] }
 0x41c   : > { %v4616_v18 = vpop.trf.xlu1  ;;  %3289 = vmatpush3.bf16.msra.mxu0 %v3288_v20  ;;  %v5505_v20 = vpack.c.bf16 %v5503_v16, %v5504_v0  ;;  %v5508_v27 = vpack.c.bf16 %v5506_v26, %v5507_v41  ;;  %v5516_v16 = vld [vmem:[#allocation17_spill] sm:$0xff]  ;;  %v5517_v0 = vld [vmem:[#allocation15_spill] sm:$0xff]  ;;  %v5520_v26 = vld [vmem:[#allocation14_spill] sm:$0xff] }
 0x41d   : > { %v1895_v3 = vpop.trf.xlu0 }
 0x41e   : > { %1764 = vmatpush1.bf16.xpose.msra.mxu1 %v5498_v50  ;;  %v3292_v36 = vpack.c.bf16 %v1895_v3, %v1894_v62  ;;  %v5509_v50 = vld [vmem:[#allocation7_spill] sm:$0xff] }
 0x41f   : > { %1765 = vmatprep.subr.bf16.mxu1 %v5501_v29  ;;  %v5512_v29 = vld [vmem:[#allocation10_spill] sm:$0xff] }
 0x420   : > { %v1927_v39 = vpop.trf.xlu1 }
 0x421   : > { %v3290_v40 = vpack.c.bf16 %v1927_v39, %v4616_v18 }
 0x423   : > { %3291 = vmatprep.subr.bf16.mxu0 %v3290_v40  ;;  %v5513_v40 = vld [vmem:[#allocation12_spill] sm:$0xff] }
 0x424   : > { %3293 = vmatpush3.bf16.msra.mxu0 %v3292_v36  ;;  %v5514_v36 = vld [vmem:[#allocation6_spill] sm:$0xff] }
 0x425   : > { %2103 = vmatprep.subr.bf16.mxu0 %v5502_v53  ;;  %v5515_v53 = vpack.c.bf16 %v5513_v40, %v5514_v36 }
 0x426   : > { %1766 = vmatpush1.bf16.xpose.msra.mxu1 %v5505_v20  ;;  %v5518_v20 = vpack.c.bf16 %v5516_v16, %v5517_v0 }
 0x427   : > { %1767 = vmatprep.subr.bf16.mxu1 %v5508_v27  ;;  %1993 = vmatmul.mubr.f32.vlgmr.msra.gmra.mrb[20].mxu0 %v5483_v24  ;;  %v5519_v24 = vld [vmem:[#allocation16_spill] sm:$0xff]  ;;  %v5522_v27 = vld [vmem:[#allocation19_spill] sm:$0xff] }
 0x428   : > { %2104 = vmatpush1.bf16.msra.mxu0 %v5509_v50  ;;  %2135 = vmatprep.mubr.bf16.mxu0 %v5510_v44  ;;  %v5521_v41 = vpack.c.bf16 %v5519_v24, %v5520_v26  ;;  %v5523_v50 = vpack.c.bf16 %v4428_v2, %v5522_v27  ;;  %v5529_v2 = vpack.c.bf16 %v4442_v11, %v4436_v25 }
 0x429   : > { %2105 = vmatprep.subr.bf16.mxu0 %v5511_v49  ;;  %v5527_v49 = vpack.c.bf16 %v4444_v14, %v4440_v32  ;;  %v5532_v32 = vpack.c.bf16 %v4454_v37, %v4450_v48  ;;  %v5533_v14 = vpack.c.bf16 %v4468_v22, %v4464_v31  ;;  %v5534_v11 = vpack.c.bf16 %v4573_v23, %v4568_v4 }
 0x42a   : > { %v5535_v25 = vpack.c.bf16 %v4466_v35, %v4462_v43  ;;  %v2017_v22 = vmul.f32 0.17677669, %v1894_v62  ;;  %v2018_v48 = vmul.f32 0.17677669, %v1895_v3  ;;  %v5538_v43 = vpack.c.bf16 %v4528_v46, %v4526_v51  ;;  %v5545_v3 = vld [vmem:[#allocation31_spill] sm:$0xff] }
 0x42b   : > { %v5539_v31 = vpack.c.bf16 %v4546_v5, %v4544_v47  ;;  %v5540_v35 = vpack.c.bf16 %v4564_v52, %v4562_v1  ;;  %v2033_v51 = vmul.f32 0.17677669, %v4616_v18  ;;  %v4745_v23 = vsub.s32 2, %v1795_v58 }
 0x42c   : > { %2106 = vmatpush1.bf16.msra.mxu0 %v5512_v29  ;;  %v5528_v29 = vpack.c.bf16 %v4537_v42, %v4532_v59  ;;  %v2042_v37 = vpack.c.bf16 %v2018_v48, %v2017_v22 }
 0x42d   : > { %5544 = vst [vmem:[#allocation22_spill] sm:$0xff] %v4745_v23 }
 0x42e   : > { %1768 = vmatpush1.bf16.xpose.msra.mxu1 %v5515_v53 }
 0x42f   : > { %1769 = vmatprep.subr.bf16.mxu1 %v5518_v20  ;;  %3133 = vmatmul.mubr.msk.bf16.vlgmr.msra.gmra.mrb[24].mxu0 %vm911_vm5, %v2035_v6  ;;  %v5526_v6 = vpack.c.bf16 %v5524_v21, %v5525_v30 }
 0x430   : > { %2145 = vmatprep.mubr.bf16.mxu0 %v5510_v44 }
 0x436   : > { %1770 = vmatpush1.bf16.xpose.msra.mxu1 %v5521_v41 }
 0x437   : > { %1771 = vmatprep.subr.bf16.mxu1 %v5523_v50  ;;  %3134 = vmatmul.mubr.msk.bf16.gmra.mrb[28].mxu0 %vm911_vm5, %v2036_v7  ;;  %v2034_v7 = vmul.f32 0.17677669, %v1927_v39 }
 0x438   : > { %2155 = vmatprep.mubr.bf16.mxu0 %v5510_v44 }
 0x439   : > { %v2050_v46 = vpack.c.bf16 %v2034_v7, %v2033_v51 }
 0x43e   : > { %1772 = vmatpush1.bf16.xpose.msra.mxu1 %v5526_v6 }
 0x43f   : > { %1773 = vmatprep.subr.bf16.mxu1 %v5527_v49  ;;  %3135 = vmatmul.mubr.msk.bf16.gmra.mrb[32].mxu0 %vm911_vm5, %v5528_v29 }
 0x440   : > { %2165 = vmatprep.mubr.bf16.mxu0 %v5510_v44 }
 0x446   : > { %1774 = vmatpush1.bf16.xpose.msra.mxu1 %v5529_v2 }
 0x447   : > { %1775 = vmatprep.subr.bf16.mxu1 %v5530_v28  ;;  %3136 = vmatmul.mubr.msk.bf16.gmra.mrb[36].mxu0 %vm911_vm5, %v5531_v45 }
 0x448   : > { %2175 = vmatprep.mubr.bf16.mxu0 %v5510_v44 }
 0x44e   : > { %1776 = vmatpush1.bf16.xpose.msra.mxu1 %v5532_v32 }
 0x44f   : > { %1777 = vmatprep.subr.bf16.mxu1 %v5533_v14  ;;  %3137 = vmatmul.mubr.msk.bf16.gmra.mrb[40].mxu0 %vm911_vm5, %v5534_v11 }
 0x450   : > { %2185 = vmatprep.mubr.bf16.mxu0 %v5510_v44 }
 0x456   : > { %1778 = vmatpush1.bf16.xpose.msra.mxu1 %v5535_v25 }
 0x457   : > { %3138 = vmatmul.mubr.msk.bf16.gmra.mrb[44].mxu0 %vm911_vm5, %v5536_v54 }
 0x458   : > { %2195 = vmatprep.mubr.bf16.mxu0 %v5510_v44 }
 0x45d   : > { %1780 = vmatmul.mubr.bf16.vlgmr.msra.gmra.mrb[88].mxu1 %v4484_v55 }
 0x45e   : > { %2881 = vmatprep.mubr.bf16.mxu1 %v4209_v13 }
 0x45f   : > { %3139 = vmatmul.mubr.msk.bf16.gmra.mrb[48].mxu0 %vm911_vm5, %v2041_v12 }
 0x460   : > { %2205 = vmatprep.mubr.bf16.mxu0 %v5510_v44 }
 0x467   : > { %3140 = vmatmul.mubr.msk.bf16.gmra.mrb[52].mxu0 %vm911_vm5, %v2042_v37 }
 0x468   : > { %2215 = vmatprep.mubr.bf16.mxu0 %v5510_v44 }
 0x46f   : > { %3141 = vmatmul.mubr.msk.bf16.gmra.mrb[56].mxu0 %vm911_vm5, %v5537_v17 }
 0x470   : > { %2225 = vmatprep.mubr.bf16.mxu0 %v5510_v44 }
 0x477   : > { %3142 = vmatmul.mubr.msk.bf16.gmra.mrb[60].mxu0 %vm911_vm5, %v5538_v43 }
 0x478   : > { %2235 = vmatprep.mubr.bf16.mxu0 %v5510_v44 }
 0x47f   : > { %3143 = vmatmul.mubr.msk.bf16.gmra.mrb[64].mxu0 %vm911_vm5, %v5539_v31 }
 0x480   : > { %2245 = vmatprep.mubr.bf16.mxu0 %v5510_v44 }
 0x487   : > { %3144 = vmatmul.mubr.msk.bf16.gmra.mrb[68].mxu0 %vm911_vm5, %v5540_v35 }
 0x488   : > { %2255 = vmatprep.mubr.bf16.mxu0 %v5510_v44 }
 0x48f   : > { %3145 = vmatmul.mubr.msk.bf16.gmra.mrb[72].mxu0 %vm911_vm5, %v5541_v57 }
 0x490   : > { %2265 = vmatprep.mubr.bf16.mxu0 %v5510_v44 }
 0x497   : > { %3146 = vmatmul.mubr.msk.bf16.gmra.mrb[76].mxu0 %vm911_vm5, %v5542_v38 }
 0x498   : > { %2275 = vmatprep.mubr.bf16.mxu0 %v5510_v44 }
 0x49f   : > { %3147 = vmatmul.mubr.msk.bf16.gmra.mrb[80].mxu0 %vm911_vm5, %v2049_v34 }
 0x4a0   : > { %2285 = vmatprep.mubr.bf16.mxu0 %v5510_v44 }
 0x4a7   : > { %3148 = vmatmul.mubr.msk.bf16.gmra.mrb[84].mxu0 %vm911_vm5, %v2050_v46 }
 0x4a8   : > { %2840 = vmatprep.mubr.bf16.mxu0 %v4209_v13 }
 0x4b0   : > { %v1699_v5 = vpop.f32.mrb[84].mxu1 }
 0x4b1   : > { %3445 = vrcp.f32 %v1699_v5  ;;  %v1701_v59 = vpop.f32.mrb[85].mxu1 }
 0x4b2   : > { %3447 = vrcp.f32 %v1701_v59  ;;  %v1703_v42 = vpop.f32.mrb[86].mxu1 }
 0x4b3   : > { %v1740_v47 = vpop.f32.mrb[16].mxu0  ;;  %v1704_v52 = vpop.f32.mrb[87].mxu1 }
 0x4b4   : > { %3449 = vrcp.f32 %v1740_v47  ;;  %v1742_v1 = vpop.f32.mrb[17].mxu0 }
 0x4b5   : > { %3451 = vrcp.f32 %v1742_v1  ;;  %v1744_v15 = vpop.f32.mrb[18].mxu0 }
 0x4b6   : > { %v1745_v4 = vpop.f32.mrb[19].mxu0 }
 0x4bb   : > { %v3446_v10 = vpop.eup %3445 }
 0x4bc   : > { %v3448_v33 = vpop.eup %3447  ;;  %v1797_v60 = vrot.slane %v3446_v10, %v4745_v23 }
 0x4bd   : > { %v1801_v19 = vrot.slane %v3448_v33, %v4745_v23 }
 0x4be   : > { %v3450_v63 = vpop.eup %3449  ;;  %v1818_v8 = vmul.f32 %v1797_v60, %v1699_v5 }
 0x4bf   : > { %v3452_v12 = vpop.eup %3451  ;;  %v1819_v9 = vmul.f32 %v1801_v19, %v1701_v59  ;;  %v1805_v62 = vrot.slane %v3450_v63, %v4745_v23 }
 0x4c0   : > { %v1824_v34 = vsub.f32 %v1818_v8, %v4480_v61  ;;  %v1809_v18 = vrot.slane %v3452_v12, %v4745_v23 }
 0x4c1   : > { %v1825_v39 = vsub.f32 %v1819_v9, %v5545_v3  ;;  %v1820_v44 = vmul.f32 %v1805_v62, %v1740_v47 }
 0x4c2   : > { %v1826_v40 = vmul.f32 0.5, %v1824_v34  ;;  %v1821_v36 = vmul.f32 %v1809_v18, %v1742_v1 }
 0x4c3   : > { %v1827_v53 = vmul.f32 0.5, %v1825_v39  ;;  %v1832_v16 = vsub.f32 %v1820_v44, %v4480_v61 }
 0x4c4   : > { %1830 = vst [vmem:[%s3919_s18] sm:$0x3] %v1826_v40  ;;  %v1834_v0 = vmul.f32 0.5, %v1826_v40  ;;  %v1833_v20 = vsub.f32 %v1821_v36, %v5545_v3 }
 0x4c5   : > { %1831 = vst [vmem:[%s3919_s18 + $0x8] sm:$0x3] %v1827_v53  ;;  %v1835_v24 = vmul.f32 0.5, %v1827_v53  ;;  %v1836_v26 = vmul.f32 0.5, %v1832_v16 }
 0x4c6   : > { %v1837_v41 = vmul.f32 0.5, %v1833_v20 }
 0x4c7   : > { %v4757_v27 = vadd.f32 %v1836_v26, %v1834_v0 }
 0x4c8   : > { %v4759_v50 = vadd.f32 %v1837_v41, %v1835_v24 }
 0x4c9   : > { %v1842_v21 = vrot.slane %v4757_v27, 6 }
 0x4ca   : > { %v1843_v30 = vrot.slane %v4759_v50, 6 }
 0x4cb   : > { %1846 = vst [vmem:[%s3919_s18] sm:$0xc] %v1842_v21 }
 0x4cc   : > { %1847 = vst [vmem:[%s3919_s18 + $0x8] sm:$0xc] %v1843_v30 }
 0x4fa   : > { %v3227_v6 = vpop.f32.mrb[20].mxu0 }
 0x4fb   : > { %v3228_v49 = vpop.f32.mrb[21].mxu0 }
 0x4fc   : > { %v3229_v29 = vadd.f32 %v3228_v49, %v3227_v6 }
 0x4fe   : > { %3132 = vst.msk [vmem:[%s3919_s18 + $0x16] sm:$0x1] %vm857_vm7, %v3229_v29 }
 0x502   : > { %v4767_v2 = vpop.f32.mrb[24].mxu0 }
 0x503   : > { %v4769_v28 = vpop.f32.mrb[25].mxu0 }
 0x504   : > { %v2296_v45 = vmax.f32 %v4767_v2, %v4769_v28  ;;  %v4773_v32 = vpop.f32.mrb[26].mxu0 }
 0x505   : > { %v4775_v14 = vpop.f32.mrb[27].mxu0 }
 0x506   : > { %v2299_v11 = vmax.f32 %v4773_v32, %v4775_v14  ;;  %2297 = vmax.xlane.f32.xlu0 %v2296_v45 }
 0x508   : > { %2300 = vmax.xlane.f32.xlu1 %v2299_v11 }
 0x50a   : > { %v4779_v25 = vpop.f32.mrb[28].mxu0 }
 0x50b   : > { %v4781_v54 = vpop.f32.mrb[29].mxu0 }
 0x50c   : > { %v2302_v22 = vmax.f32 %v4779_v25, %v4781_v54  ;;  %v4785_v48 = vpop.f32.mrb[30].mxu0 }
 0x50d   : > { %v4787_v37 = vpop.f32.mrb[31].mxu0 }
 0x50e   : > { %v2305_v17 = vmax.f32 %v4785_v48, %v4787_v37  ;;  %2303 = vmax.xlane.f32.xlu1 %v2302_v22 }
 0x510   : > { %2306 = vmax.xlane.f32.xlu0 %v2305_v17  ;;  %v1850_v17 = vmul.f32 0.5, %v4757_v27 }
 0x512   : > { %v4791_v43 = vpop.f32.mrb[32].mxu0 }
 0x513   : > { %v4793_v31 = vpop.f32.mrb[33].mxu0 }
 0x514   : > { %v2308_v35 = vmax.f32 %v4791_v43, %v4793_v31  ;;  %v4797_v57 = vpop.f32.mrb[34].mxu0 }
 0x515   : > { %v4799_v38 = vpop.f32.mrb[35].mxu0 }
 0x516   : > { %v2311_v7 = vmax.f32 %v4797_v57, %v4799_v38  ;;  %2309 = vmax.xlane.f32.xlu1 %v2308_v35 }
 0x518   : > { %2312 = vmax.xlane.f32.xlu0 %v2311_v7 }
 0x51a   : > { %v4803_v51 = vpop.f32.mrb[36].mxu0 }
 0x51b   : > { %v4805_v46 = vpop.f32.mrb[37].mxu0 }
 0x51c   : > { %v2314_v5 = vmax.f32 %v4803_v51, %v4805_v46  ;;  %v4809_v59 = vpop.f32.mrb[38].mxu0 }
 0x51d   : > { %v4811_v42 = vpop.f32.mrb[39].mxu0 }
 0x51e   : > { %v2317_v47 = vmax.f32 %v4809_v59, %v4811_v42  ;;  %2315 = vmax.xlane.f32.xlu1 %v2314_v5  ;;  %v1851_v5 = vmul.f32 0.5, %v4759_v50 }
 0x520   : > { %2318 = vmax.xlane.f32.xlu0 %v2317_v47 }
 0x522   : > { %v4815_v52 = vpop.f32.mrb[40].mxu0 }
 0x523   : > { %v4817_v56 = vpop.f32.mrb[41].mxu0 }
 0x524   : > { %v2320_v58 = vmax.f32 %v4815_v52, %v4817_v56  ;;  %v4821_v1 = vpop.f32.mrb[42].mxu0 }
 0x525   : > { %v4823_v15 = vpop.f32.mrb[43].mxu0 }
 0x526   : > { %v2323_v4 = vmax.f32 %v4821_v1, %v4823_v15  ;;  %2321 = vmax.xlane.f32.xlu1 %v2320_v58 }
 0x528   : > { %2324 = vmax.xlane.f32.xlu0 %v2323_v4 }
 0x52a   : > { %v4827_v10 = vpop.f32.mrb[44].mxu0 }
 0x52b   : > { %v4829_v33 = vpop.f32.mrb[45].mxu0 }
 0x52c   : > { %v2326_v60 = vmax.f32 %v4827_v10, %v4829_v33  ;;  %v4833_v19 = vpop.f32.mrb[46].mxu0 }
 0x52d   : > { %v4835_v63 = vpop.f32.mrb[47].mxu0 }
 0x52e   : > { %v2329_v8 = vmax.f32 %v4833_v19, %v4835_v63  ;;  %2327 = vmax.xlane.f32.xlu1 %v2326_v60 }
 0x530   : > { %v1781_v12 = vpop.f32.mrb[88].mxu1  ;;  %2330 = vmax.xlane.f32.xlu0 %v2329_v8 }
 0x531   : > { %3453 = vrcp.f32 %v1781_v12  ;;  %v1783_v9 = vpop.f32.mrb[89].mxu1 }
 0x532   : > { %3455 = vrcp.f32 %v1783_v9  ;;  %v4839_v62 = vpop.f32.mrb[48].mxu0  ;;  %v1785_v34 = vpop.f32.mrb[90].mxu1 }
 0x533   : > { %v4841_v18 = vpop.f32.mrb[49].mxu0  ;;  %v1786_v39 = vpop.f32.mrb[91].mxu1 }
 0x534   : > { %v2332_v44 = vmax.f32 %v4839_v62, %v4841_v18  ;;  %v4845_v40 = vpop.f32.mrb[50].mxu0 }
 0x535   : > { %v4847_v36 = vpop.f32.mrb[51].mxu0 }
 0x536   : > { %v2335_v53 = vmax.f32 %v4845_v40, %v4847_v36  ;;  %2333 = vmax.xlane.f32.xlu1 %v2332_v44 }
 0x538   : > { %2336 = vmax.xlane.f32.xlu0 %v2335_v53 }
 0x53a   : > { %v4851_v16 = vpop.f32.mrb[52].mxu0 }
 0x53b   : > { %v3454_v0 = vpop.eup %3453  ;;  %v4853_v20 = vpop.f32.mrb[53].mxu0 }
 0x53c   : > { %v3456_v24 = vpop.eup %3455  ;;  %v1813_v26 = vrot.slane %v3454_v0, %v4745_v23  ;;  %v2338_v41 = vmax.f32 %v4851_v16, %v4853_v20  ;;  %v4858_v21 = vpop.f32.mrb[54].mxu0 }
 0x53d   : > { %v1817_v30 = vrot.slane %v3456_v24, %v4745_v23  ;;  %v4861_v6 = vpop.f32.mrb[55].mxu0 }
 0x53e   : > { %v1822_v49 = vmul.f32 %v1813_v26, %v1781_v12  ;;  %v2341_v29 = vmax.f32 %v4858_v21, %v4861_v6  ;;  %2339 = vmax.xlane.f32.xlu1 %v2338_v41 }
 0x53f   : > { %v1823_v45 = vmul.f32 %v1817_v30, %v1783_v9 }
 0x540   : > { %v1848_v11 = vsub.f32 %v1822_v49, %v4480_v61  ;;  %2342 = vmax.xlane.f32.xlu0 %v2341_v29 }
 0x541   : > { %v1849_v22 = vsub.f32 %v1823_v45, %v5545_v3 }
 0x542   : > { %v1852_v35 = vmul.f32 0.5, %v1848_v11  ;;  %v4868_v7 = vpop.f32.mrb[56].mxu0 }
 0x543   : > { %v1853_v47 = vmul.f32 0.5, %v1849_v22  ;;  %v4871_v58 = vpop.f32.mrb[57].mxu0 }
 0x544   : > { %v1854_v4 = vadd.f32 %v1852_v35, %v1850_v17  ;;  %v2344_v60 = vmax.f32 %v4868_v7, %v4871_v58  ;;  %v4875_v61 = vpop.f32.mrb[58].mxu0 }
 0x545   : > { %v1855_v8 = vadd.f32 %v1853_v47, %v1851_v5  ;;  %v4877_v12 = vpop.f32.mrb[59].mxu0 }
 0x546   : > { %v1858_v9 = vrot.slane %v1854_v4, 4  ;;  %v2347_v27 = vmax.f32 %v4875_v61, %v4877_v12  ;;  %2345 = vmax.xlane.f32.xlu1 %v2344_v60 }
 0x547   : > { %v1859_v34 = vrot.slane %v1855_v8, 4 }
 0x548   : > { %1862 = vst [vmem:[%s3919_s18] sm:$0x30] %v1858_v9  ;;  %2348 = vmax.xlane.f32.xlu0 %v2347_v27 }
 0x549   : > { %1863 = vst [vmem:[%s3919_s18 + $0x8] sm:$0x30] %v1859_v34 }
 0x54a   : > { %v4883_v50 = vpop.f32.mrb[60].mxu0 }
 0x54b   : > { %v4885_v39 = vpop.f32.mrb[61].mxu0 }
 0x54c   : > { %v2350_v44 = vmax.f32 %v4883_v50, %v4885_v39  ;;  %v4889_v53 = vpop.f32.mrb[62].mxu0 }
 0x54d   : > { %v4891_v0 = vpop.f32.mrb[63].mxu0 }
 0x54e   : > { %v2353_v24 = vmax.f32 %v4889_v53, %v4891_v0  ;;  %2351 = vmax.xlane.f32.xlu1 %v2350_v44 }
 0x550   : > { %2354 = vmax.xlane.f32.xlu0 %v2353_v24 }
 0x552   : > { %v4895_v26 = vpop.f32.mrb[64].mxu0 }
 0x553   : > { %v4897_v41 = vpop.f32.mrb[65].mxu0 }
 0x554   : > { %v2356_v30 = vmax.f32 %v4895_v26, %v4897_v41  ;;  %v4901_v49 = vpop.f32.mrb[66].mxu0 }
 0x555   : > { %v4903_v29 = vpop.f32.mrb[67].mxu0 }
 0x556   : > { %v2359_v45 = vmax.f32 %v4901_v49, %v4903_v29  ;;  %2357 = vmax.xlane.f32.xlu1 %v2356_v30 }
 0x558   : > { %2360 = vmax.xlane.f32.xlu0 %v2359_v45 }
 0x55a   : > { %v4907_v11 = vpop.f32.mrb[68].mxu0 }
 0x55b   : > { %v4909_v22 = vpop.f32.mrb[69].mxu0 }
 0x55c   : > { %v2362_v17 = vmax.f32 %v4907_v11, %v4909_v22  ;;  %v4913_v35 = vpop.f32.mrb[70].mxu0 }
 0x55d   : > { %v4915_v5 = vpop.f32.mrb[71].mxu0 }
 0x55e   : > { %v2365_v47 = vmax.f32 %v4913_v35, %v4915_v5  ;;  %2363 = vmax.xlane.f32.xlu1 %v2362_v17 }
 0x560   : > { %2366 = vmax.xlane.f32.xlu0 %v2365_v47 }
 0x562   : > { %v4919_v4 = vpop.f32.mrb[72].mxu0 }
 0x563   : > { %v4921_v60 = vpop.f32.mrb[73].mxu0 }
 0x564   : > { %v2368_v8 = vmax.f32 %v4919_v4, %v4921_v60  ;;  %v4925_v9 = vpop.f32.mrb[74].mxu0 }
 0x565   : > { %5546 = vst [vmem:[#allocation23_spill] sm:$0xff] %v4925_v9  ;;  %v4927_v27 = vpop.f32.mrb[75].mxu0 }
 0x566   : > { %5547 = vst [vmem:[#allocation24_spill] sm:$0xff] %v4927_v27  ;;  %v2371_v34 = vmax.f32 %v4925_v9, %v4927_v27  ;;  %2369 = vmax.xlane.f32.xlu1 %v2368_v8 }
 0x568   : > { %2372 = vmax.xlane.f32.xlu0 %v2371_v34 }
 0x56a   : > { %v4931_v44 = vpop.f32.mrb[76].mxu0 }
 0x56b   : > { %5548 = vst [vmem:[#allocation25_spill] sm:$0xff] %v4931_v44  ;;  %v4933_v24 = vpop.f32.mrb[77].mxu0 }
 0x56c   : > { %5549 = vst [vmem:[#allocation26_spill] sm:$0xff] %v4933_v24  ;;  %v2374_v30 = vmax.f32 %v4931_v44, %v4933_v24  ;;  %v4937_v45 = vpop.f32.mrb[78].mxu0 }
 0x56d   : > { %5550 = vst [vmem:[#allocation27_spill] sm:$0xff] %v4937_v45  ;;  %v4939_v17 = vpop.f32.mrb[79].mxu0 }
 0x56e   : > { %5551 = vst [vmem:[#allocation28_spill] sm:$0xff] %v4939_v17  ;;  %v2377_v47 = vmax.f32 %v4937_v45, %v4939_v17  ;;  %2375 = vmax.xlane.f32.xlu1 %v2374_v30 }
 0x570   : > { %2378 = vmax.xlane.f32.xlu0 %v2377_v47 }
 0x572   : > { %v4943_v3 = vpop.f32.mrb[80].mxu0 }
 0x573   : > { %5552 = vst [vmem:[#allocation29_spill] sm:$0xff] %v4943_v3  ;;  %v4945_v8 = vpop.f32.mrb[81].mxu0 }
 0x574   : > { %5553 = vst [vmem:[#allocation30_spill] sm:$0xff] %v4945_v8  ;;  %v2380_v34 = vmax.f32 %v4943_v3, %v4945_v8  ;;  %v4949_v23 = vpop.f32.mrb[82].mxu0 }
 0x575   : > { %5554 = vst [vmem:[#allocation5_spill] sm:$0xff] %v4949_v23  ;;  %v4951_v13 = vpop.f32.mrb[83].mxu0 }
 0x576   : > { %5555 = vst [vmem:[#allocation4_spill] sm:$0xff] %v4951_v13  ;;  %v2383_v55 = vmax.f32 %v4949_v23, %v4951_v13  ;;  %2381 = vmax.xlane.f32.xlu1 %v2380_v34 }
 0x578   : > { %2384 = vmax.xlane.f32.xlu0 %v2383_v55 }
 0x57a   : > { %v4955_v24 = vpop.f32.mrb[84].mxu0 }
 0x57b   : > { %5556 = vst [vmem:[#allocation8_spill] sm:$0xff] %v4955_v24  ;;  %v4957_v30 = vpop.f32.mrb[85].mxu0 }
 0x57c   : > { %5557 = vst [vmem:[#allocation2_spill] sm:$0xff] %v4957_v30  ;;  %v2386_v47 = vmax.f32 %v4955_v24, %v4957_v30  ;;  %v4961_v17 = vpop.f32.mrb[86].mxu0 }
 0x57d   : > { %5558 = vst [vmem:[#allocation3_spill] sm:$0xff] %v4961_v17  ;;  %v4963_v45 = vpop.f32.mrb[87].mxu0 }
 0x57e   : > { %5559 = vst [vmem:[#allocation13_spill] sm:$0xff] %v4963_v45  ;;  %v2389_v8 = vmax.f32 %v4961_v17, %v4963_v45  ;;  %2387 = vmax.xlane.f32.xlu1 %v2386_v47 }
 0x580   : > { %2390 = vmax.xlane.f32.xlu0 %v2389_v8 }
 0x593   : > { %v2298_v3 = vpop.xlane.xlu0 %2297 }
 0x594   : > { %v2392_v34 = vsub.f32 %v4767_v2, %v2298_v3  ;;  %v2393_v55 = vsub.f32 %v4769_v28, %v2298_v3 }
 0x595   : > { %v2301_v13 = vpop.xlane.xlu1 %2300 }
 0x596   : > { %v2456_v23 = vmul.f32 1.442695, %v2392_v34  ;;  %v2458_v44 = vmul.f32 1.442695, %v2393_v55  ;;  %v2394_v27 = vsub.f32 %v4773_v32, %v2301_v13  ;;  %v2395_v30 = vsub.f32 %v4775_v14, %v2301_v13 }
 0x598   : > { %3457 = vpow2.f32 %v2456_v23  ;;  %v2460_v24 = vmul.f32 1.442695, %v2394_v27  ;;  %v2462_v9 = vmul.f32 1.442695, %v2395_v30 }
 0x599   : > { %3459 = vpow2.f32 %v2458_v44 }
 0x59a   : > { %3461 = vpow2.f32 %v2460_v24 }
 0x59b   : > { %3463 = vpow2.f32 %v2462_v9  ;;  %v2304_v47 = vpop.xlane.xlu1 %2303 }
 0x59c   : > { %v2396_v8 = vsub.f32 %v4779_v25, %v2304_v47  ;;  %v2397_v2 = vsub.f32 %v4781_v54, %v2304_v47 }
 0x59d   : > { %v2307_v45 = vpop.xlane.xlu0 %2306 }
 0x59e   : > { %v2464_v3 = vmul.f32 1.442695, %v2396_v8  ;;  %v2466_v28 = vmul.f32 1.442695, %v2397_v2  ;;  %v2398_v34 = vsub.f32 %v4785_v48, %v2307_v45  ;;  %v2399_v32 = vsub.f32 %v4787_v37, %v2307_v45 }
 0x5a0   : > { %3465 = vpow2.f32 %v2464_v3  ;;  %v2468_v13 = vmul.f32 1.442695, %v2398_v34  ;;  %v2470_v23 = vmul.f32 1.442695, %v2399_v32 }
 0x5a1   : > { %3467 = vpow2.f32 %v2466_v28 }
 0x5a2   : > { %v3458_v14 = vpop.eup %3457  ;;  %3469 = vpow2.f32 %v2468_v13 }
 0x5a3   : > { %v3460_v27 = vpop.eup %3459  ;;  %3471 = vpow2.f32 %v2470_v23  ;;  %v2310_v9 = vpop.xlane.xlu1 %2309  ;;  %v2584_v44 = vmul.f32 %v3458_v14, %v3458_v14 }
 0x5a4   : > { %v3462_v25 = vpop.eup %3461  ;;  %v2400_v54 = vsub.f32 %v4791_v43, %v2310_v9  ;;  %v2401_v24 = vsub.f32 %v4793_v31, %v2310_v9  ;;  %v2585_v30 = vmul.f32 %v3460_v27, %v3460_v27 }
 0x5a5   : > { %v3464_v55 = vpop.eup %3463  ;;  %v2313_v48 = vpop.xlane.xlu0 %2312  ;;  %v2712_v47 = vpack.c.bf16 %v3462_v25, %v3458_v14  ;;  %v2586_v37 = vmul.f32 %v3462_v25, %v3462_v25  ;;  %v4977_v45 = vmul.f32 %v3458_v14, %v2584_v44 }
 0x5a6   : > { %v2472_v8 = vmul.f32 1.442695, %v2400_v54  ;;  %v2474_v2 = vmul.f32 1.442695, %v2401_v24  ;;  %v2402_v3 = vsub.f32 %v4797_v57, %v2313_v48  ;;  %v2403_v28 = vsub.f32 %v4799_v38, %v2313_v48 }
 0x5a7   : > { %v2713_v34 = vpack.c.bf16 %v3464_v55, %v3460_v27  ;;  %v2587_v32 = vmul.f32 %v3464_v55, %v3464_v55  ;;  %v2744_v13 = vpack.c.bf16 %v2586_v37, %v2584_v44  ;;  %v4981_v23 = vmul.f32 %v3460_v27, %v2585_v30 }
 0x5a8   : > { %3473 = vpow2.f32 %v2472_v8  ;;  %v2476_v43 = vmul.f32 1.442695, %v2402_v3  ;;  %v2478_v31 = vmul.f32 1.442695, %v2403_v28  ;;  %v4983_v9 = vmul.f32 %v3462_v25, %v2586_v37 }
 0x5a9   : > { %3475 = vpow2.f32 %v2474_v2  ;;  %2808 = vmatprep.subr.bf16.mxu0 %v2713_v34  ;;  %v2745_v14 = vpack.c.bf16 %v2587_v32, %v2585_v30  ;;  %v4985_v17 = vmul.f32 %v3464_v55, %v2587_v32 }
 0x5aa   : > { %v3466_v54 = vpop.eup %3465  ;;  %3477 = vpow2.f32 %v2476_v43  ;;  %2809 = vmatpush1.bf16.xpose.msra.mxu0 %v2712_v47 }
 0x5ab   : > { %v3468_v38 = vpop.eup %3467  ;;  %3479 = vpow2.f32 %v2478_v31  ;;  %2849 = vmatprep.subr.bf16.mxu1 %v2745_v14  ;;  %v2316_v27 = vpop.xlane.xlu1 %2315  ;;  %v2588_v44 = vmul.f32 %v3466_v54, %v3466_v54 }
 0x5ac   : > { %v3470_v24 = vpop.eup %3469  ;;  %2850 = vmatpush1.bf16.xpose.msra.mxu1 %v2744_v13  ;;  %v2404_v30 = vsub.f32 %v4803_v51, %v2316_v27  ;;  %v2405_v55 = vsub.f32 %v4805_v46, %v2316_v27  ;;  %v2589_v48 = vmul.f32 %v3468_v38, %v3468_v38 }
 0x5ad   : > { %v3472_v37 = vpop.eup %3471  ;;  %v2319_v47 = vpop.xlane.xlu0 %2318  ;;  %v2714_v8 = vpack.c.bf16 %v3470_v24, %v3466_v54  ;;  %v2590_v2 = vmul.f32 %v3470_v24, %v3470_v24  ;;  %v4993_v3 = vmul.f32 %v3466_v54, %v2588_v44 }
 0x5ae   : > { %v2480_v28 = vmul.f32 1.442695, %v2404_v30  ;;  %v2482_v34 = vmul.f32 1.442695, %v2405_v55  ;;  %v2406_v32 = vsub.f32 %v4809_v59, %v2319_v47  ;;  %v2407_v43 = vsub.f32 %v4811_v42, %v2319_v47 }
 0x5af   : > { %v2715_v31 = vpack.c.bf16 %v3472_v37, %v3468_v38  ;;  %v2591_v14 = vmul.f32 %v3472_v37, %v3472_v37  ;;  %v2746_v13 = vpack.c.bf16 %v2590_v2, %v2588_v44  ;;  %v4997_v57 = vmul.f32 %v3468_v38, %v2589_v48 }
 0x5b0   : > { %3481 = vpow2.f32 %v2480_v28  ;;  %v2484_v51 = vmul.f32 1.442695, %v2406_v32  ;;  %v2486_v46 = vmul.f32 1.442695, %v2407_v43  ;;  %v4999_v27 = vmul.f32 %v3470_v24, %v2590_v2 }
 0x5b1   : > { %3483 = vpow2.f32 %v2482_v34  ;;  %2810 = vmatprep.subr.bf16.mxu0 %v2715_v31  ;;  %v2747_v54 = vpack.c.bf16 %v2591_v14, %v2589_v48  ;;  %v5001_v25 = vmul.f32 %v3472_v37, %v2591_v14 }
 0x5b2   : > { %v3474_v30 = vpop.eup %3473  ;;  %3485 = vpow2.f32 %v2484_v51  ;;  %2811 = vmatpush1.bf16.xpose.msra.mxu0 %v2714_v8 }
 0x5b3   : > { %v3476_v42 = vpop.eup %3475  ;;  %3487 = vpow2.f32 %v2486_v46  ;;  %2851 = vmatprep.subr.bf16.mxu1 %v2747_v54  ;;  %v2322_v38 = vpop.xlane.xlu1 %2321  ;;  %v2592_v44 = vmul.f32 %v3474_v30, %v3474_v30 }
 0x5b4   : > { %v3478_v55 = vpop.eup %3477  ;;  %2852 = vmatpush1.bf16.xpose.msra.mxu1 %v2746_v13  ;;  %v2408_v48 = vsub.f32 %v4815_v52, %v2322_v38  ;;  %v2409_v37 = vsub.f32 %v4817_v56, %v2322_v38  ;;  %v2593_v47 = vmul.f32 %v3476_v42, %v3476_v42 }
 0x5b5   : > { %v3480_v2 = vpop.eup %3479  ;;  %v2325_v8 = vpop.xlane.xlu0 %2324  ;;  %v2716_v28 = vpack.c.bf16 %v3478_v55, %v3474_v30  ;;  %v2594_v34 = vmul.f32 %v3478_v55, %v3478_v55  ;;  %v5009_v32 = vmul.f32 %v3474_v30, %v2592_v44 }
 0x5b6   : > { %v2488_v43 = vmul.f32 1.442695, %v2408_v48  ;;  %v2490_v31 = vmul.f32 1.442695, %v2409_v37  ;;  %v2410_v14 = vsub.f32 %v4821_v1, %v2325_v8  ;;  %v2411_v51 = vsub.f32 %v4823_v15, %v2325_v8 }
 0x5b7   : > { %v2717_v46 = vpack.c.bf16 %v3480_v2, %v3476_v42  ;;  %v2595_v54 = vmul.f32 %v3480_v2, %v3480_v2  ;;  %v2748_v13 = vpack.c.bf16 %v2594_v34, %v2592_v44  ;;  %v5013_v59 = vmul.f32 %v3476_v42, %v2593_v47 }
 0x5b8   : > { %3489 = vpow2.f32 %v2488_v43  ;;  %v2492_v52 = vmul.f32 1.442695, %v2410_v14  ;;  %v2494_v56 = vmul.f32 1.442695, %v2411_v51  ;;  %v5015_v38 = vmul.f32 %v3478_v55, %v2594_v34 }
 0x5b9   : > { %3491 = vpow2.f32 %v2490_v31  ;;  %2812 = vmatprep.subr.bf16.mxu0 %v2717_v46  ;;  %v2749_v30 = vpack.c.bf16 %v2595_v54, %v2593_v47  ;;  %v5017_v24 = vmul.f32 %v3480_v2, %v2595_v54 }
 0x5ba   : > { %v3482_v48 = vpop.eup %3481  ;;  %3493 = vpow2.f32 %v2492_v52  ;;  %2813 = vmatpush1.bf16.xpose.msra.mxu0 %v2716_v28 }
 0x5bb   : > { %v3484_v15 = vpop.eup %3483  ;;  %3495 = vpow2.f32 %v2494_v56  ;;  %2853 = vmatprep.subr.bf16.mxu1 %v2749_v30  ;;  %v2328_v42 = vpop.xlane.xlu1 %2327  ;;  %v2596_v44 = vmul.f32 %v3482_v48, %v3482_v48 }
 0x5bc   : > { %v3486_v37 = vpop.eup %3485  ;;  %2854 = vmatpush1.bf16.xpose.msra.mxu1 %v2748_v13  ;;  %v2412_v47 = vsub.f32 %v4827_v10, %v2328_v42  ;;  %v2413_v2 = vsub.f32 %v4829_v33, %v2328_v42  ;;  %v2597_v8 = vmul.f32 %v3484_v15, %v3484_v15 }
 0x5bd   : > { %v3488_v34 = vpop.eup %3487  ;;  %v2331_v28 = vpop.xlane.xlu0 %2330  ;;  %v2718_v43 = vpack.c.bf16 %v3486_v37, %v3482_v48  ;;  %v2598_v31 = vmul.f32 %v3486_v37, %v3486_v37  ;;  %v5025_v14 = vmul.f32 %v3482_v48, %v2596_v44 }
 0x5be   : > { %v2496_v51 = vmul.f32 1.442695, %v2412_v47  ;;  %v2498_v46 = vmul.f32 1.442695, %v2413_v2  ;;  %v2414_v54 = vsub.f32 %v4833_v19, %v2331_v28  ;;  %v2415_v52 = vsub.f32 %v4835_v63, %v2331_v28 }
 0x5bf   : > { %v2719_v56 = vpack.c.bf16 %v3488_v34, %v3484_v15  ;;  %v2599_v30 = vmul.f32 %v3488_v34, %v3488_v34  ;;  %v2750_v13 = vpack.c.bf16 %v2598_v31, %v2596_v44  ;;  %v5029_v1 = vmul.f32 %v3484_v15, %v2597_v8 }
 0x5c0   : > { %3497 = vpow2.f32 %v2496_v51  ;;  %v2500_v10 = vmul.f32 1.442695, %v2414_v54  ;;  %v2502_v33 = vmul.f32 1.442695, %v2415_v52  ;;  %v5031_v42 = vmul.f32 %v3486_v37, %v2598_v31 }
 0x5c1   : > { %3499 = vpow2.f32 %v2498_v46  ;;  %2814 = vmatprep.subr.bf16.mxu0 %v2719_v56  ;;  %v2751_v48 = vpack.c.bf16 %v2599_v30, %v2597_v8  ;;  %v5033_v55 = vmul.f32 %v3488_v34, %v2599_v30 }
 0x5c2   : > { %v3490_v47 = vpop.eup %3489  ;;  %3501 = vpow2.f32 %v2500_v10  ;;  %2815 = vmatpush1.bf16.xpose.msra.mxu0 %v2718_v43 }
 0x5c3   : > { %v3492_v63 = vpop.eup %3491  ;;  %3503 = vpow2.f32 %v2502_v33  ;;  %2855 = vmatprep.subr.bf16.mxu1 %v2751_v48  ;;  %v2334_v15 = vpop.xlane.xlu1 %2333  ;;  %v2600_v44 = vmul.f32 %v3490_v47, %v3490_v47 }
 0x5c4   : > { %v3494_v2 = vpop.eup %3493  ;;  %2856 = vmatpush1.bf16.xpose.msra.mxu1 %v2750_v13  ;;  %v2416_v8 = vsub.f32 %v4839_v62, %v2334_v15  ;;  %v2417_v34 = vsub.f32 %v4841_v18, %v2334_v15  ;;  %v2601_v28 = vmul.f32 %v3492_v63, %v3492_v63 }
 0x5c5   : > { %v3496_v31 = vpop.eup %3495  ;;  %v2337_v43 = vpop.xlane.xlu0 %2336  ;;  %v2720_v51 = vpack.c.bf16 %v3494_v2, %v3490_v47  ;;  %v2602_v46 = vmul.f32 %v3494_v2, %v3494_v2  ;;  %v5041_v54 = vmul.f32 %v3490_v47, %v2600_v44 }
 0x5c6   : > { %v2504_v52 = vmul.f32 1.442695, %v2416_v8  ;;  %v2506_v56 = vmul.f32 1.442695, %v2417_v34  ;;  %v2418_v30 = vsub.f32 %v4845_v40, %v2337_v43  ;;  %v2419_v10 = vsub.f32 %v4847_v36, %v2337_v43 }
 0x5c7   : > { %v2721_v33 = vpack.c.bf16 %v3496_v31, %v3492_v63  ;;  %v2603_v48 = vmul.f32 %v3496_v31, %v3496_v31  ;;  %v2752_v13 = vpack.c.bf16 %v2602_v46, %v2600_v44  ;;  %v5045_v19 = vmul.f32 %v3492_v63, %v2601_v28 }
 0x5c8   : > { %3505 = vpow2.f32 %v2504_v52  ;;  %v2508_v62 = vmul.f32 1.442695, %v2418_v30  ;;  %v2510_v18 = vmul.f32 1.442695, %v2419_v10  ;;  %v5047_v15 = vmul.f32 %v3494_v2, %v2602_v46 }
 0x5c9   : > { %3507 = vpow2.f32 %v2506_v56  ;;  %2816 = vmatprep.subr.bf16.mxu0 %v2721_v33  ;;  %v2753_v47 = vpack.c.bf16 %v2603_v48, %v2601_v28  ;;  %v5049_v37 = vmul.f32 %v3496_v31, %v2603_v48 }
 0x5ca   : > { %v3498_v8 = vpop.eup %3497  ;;  %3509 = vpow2.f32 %v2508_v62  ;;  %2817 = vmatpush1.bf16.xpose.msra.mxu0 %v2720_v51 }
 0x5cb   : > { %v3500_v36 = vpop.eup %3499  ;;  %3511 = vpow2.f32 %v2510_v18  ;;  %2857 = vmatprep.subr.bf16.mxu1 %v2753_v47  ;;  %v2340_v63 = vpop.xlane.xlu1 %2339  ;;  %v2604_v44 = vmul.f32 %v3498_v8, %v3498_v8 }
 0x5cc   : > { %v3502_v34 = vpop.eup %3501  ;;  %2858 = vmatpush1.bf16.xpose.msra.mxu1 %v2752_v13  ;;  %v2420_v28 = vsub.f32 %v4851_v16, %v2340_v63  ;;  %v2421_v31 = vsub.f32 %v4853_v20, %v2340_v63  ;;  %v2605_v43 = vmul.f32 %v3500_v36, %v3500_v36 }
 0x5cd   : > { %v3504_v46 = vpop.eup %3503  ;;  %v2343_v51 = vpop.xlane.xlu0 %2342  ;;  %v2722_v52 = vpack.c.bf16 %v3502_v34, %v3498_v8  ;;  %v2606_v56 = vmul.f32 %v3502_v34, %v3502_v34  ;;  %v5057_v30 = vmul.f32 %v3498_v8, %v2604_v44 }
 0x5ce   : > { %v2512_v10 = vmul.f32 1.442695, %v2420_v28  ;;  %v2514_v33 = vmul.f32 1.442695, %v2421_v31  ;;  %v2422_v48 = vsub.f32 %v4858_v21, %v2343_v51  ;;  %v2423_v62 = vsub.f32 %v4861_v6, %v2343_v51 }
 0x5cf   : > { %v2723_v18 = vpack.c.bf16 %v3504_v46, %v3500_v36  ;;  %v2607_v47 = vmul.f32 %v3504_v46, %v3504_v46  ;;  %v2754_v13 = vpack.c.bf16 %v2606_v56, %v2604_v44  ;;  %v5061_v40 = vmul.f32 %v3500_v36, %v2605_v43 }
 0x5d0   : > { %3513 = vpow2.f32 %v2512_v10  ;;  %v2516_v16 = vmul.f32 1.442695, %v2422_v48  ;;  %v2518_v20 = vmul.f32 1.442695, %v2423_v62  ;;  %v5063_v63 = vmul.f32 %v3502_v34, %v2606_v56 }
 0x5d1   : > { %3515 = vpow2.f32 %v2514_v33  ;;  %2818 = vmatprep.subr.bf16.mxu0 %v2723_v18  ;;  %v2755_v8 = vpack.c.bf16 %v2607_v47, %v2605_v43  ;;  %v5065_v2 = vmul.f32 %v3504_v46, %v2607_v47 }
 0x5d2   : > { %v3506_v28 = vpop.eup %3505  ;;  %3517 = vpow2.f32 %v2516_v16  ;;  %2819 = vmatpush1.bf16.xpose.msra.mxu0 %v2722_v52 }
 0x5d3   : > { %v3508_v6 = vpop.eup %3507  ;;  %3519 = vpow2.f32 %v2518_v20  ;;  %2859 = vmatprep.subr.bf16.mxu1 %v2755_v8  ;;  %v2346_v36 = vpop.xlane.xlu1 %2345  ;;  %v2608_v44 = vmul.f32 %v3506_v28, %v3506_v28 }
 0x5d4   : > { %v3510_v31 = vpop.eup %3509  ;;  %2860 = vmatpush1.bf16.xpose.msra.mxu1 %v2754_v13  ;;  %v2424_v43 = vsub.f32 %v4868_v7, %v2346_v36  ;;  %v2425_v46 = vsub.f32 %v4871_v58, %v2346_v36  ;;  %v2609_v51 = vmul.f32 %v3508_v6, %v3508_v6 }
 0x5d5   : > { %v3512_v56 = vpop.eup %3511  ;;  %v2349_v52 = vpop.xlane.xlu0 %2348  ;;  %v2724_v10 = vpack.c.bf16 %v3510_v31, %v3506_v28  ;;  %v2610_v33 = vmul.f32 %v3510_v31, %v3510_v31  ;;  %v5073_v48 = vmul.f32 %v3506_v28, %v2608_v44 }
 0x5d6   : > { %v2520_v62 = vmul.f32 1.442695, %v2424_v43  ;;  %v2522_v18 = vmul.f32 1.442695, %v2425_v46  ;;  %v2426_v47 = vsub.f32 %v4875_v61, %v2349_v52  ;;  %v2427_v16 = vsub.f32 %v4877_v12, %v2349_v52 }
 0x5d7   : > { %v2725_v20 = vpack.c.bf16 %v3512_v56, %v3508_v6  ;;  %v2611_v8 = vmul.f32 %v3512_v56, %v3512_v56  ;;  %v2756_v13 = vpack.c.bf16 %v2610_v33, %v2608_v44  ;;  %v5077_v21 = vmul.f32 %v3508_v6, %v2609_v51 }
 0x5d8   : > { %3521 = vpow2.f32 %v2520_v62  ;;  %v2524_v7 = vmul.f32 1.442695, %v2426_v47  ;;  %v2526_v58 = vmul.f32 1.442695, %v2427_v16  ;;  %v5079_v36 = vmul.f32 %v3510_v31, %v2610_v33 }
 0x5d9   : > { %3523 = vpow2.f32 %v2522_v18  ;;  %2820 = vmatprep.subr.bf16.mxu0 %v2725_v20  ;;  %v2757_v28 = vpack.c.bf16 %v2611_v8, %v2609_v51  ;;  %v5081_v34 = vmul.f32 %v3512_v56, %v2611_v8 }
 0x5da   : > { %v3514_v43 = vpop.eup %3513  ;;  %3525 = vpow2.f32 %v2524_v7  ;;  %2821 = vmatpush1.bf16.xpose.msra.mxu0 %v2724_v10 }
 0x5db   : > { %v3516_v12 = vpop.eup %3515  ;;  %3527 = vpow2.f32 %v2526_v58  ;;  %2861 = vmatprep.subr.bf16.mxu1 %v2757_v28  ;;  %v2352_v6 = vpop.xlane.xlu1 %2351  ;;  %v2612_v44 = vmul.f32 %v3514_v43, %v3514_v43 }
 0x5dc   : > { %v3518_v46 = vpop.eup %3517  ;;  %2862 = vmatpush1.bf16.xpose.msra.mxu1 %v2756_v13  ;;  %v2428_v51 = vsub.f32 %v4883_v50, %v2352_v6  ;;  %v2429_v56 = vsub.f32 %v4885_v39, %v2352_v6  ;;  %v2613_v52 = vmul.f32 %v3516_v12, %v3516_v12 }
 0x5dd   : > { %v3520_v33 = vpop.eup %3519  ;;  %v2355_v10 = vpop.xlane.xlu0 %2354  ;;  %v2726_v62 = vpack.c.bf16 %v3518_v46, %v3514_v43  ;;  %v2614_v18 = vmul.f32 %v3518_v46, %v3518_v46  ;;  %v5089_v47 = vmul.f32 %v3514_v43, %v2612_v44 }
 0x5de   : > { %v2528_v16 = vmul.f32 1.442695, %v2428_v51  ;;  %v2530_v20 = vmul.f32 1.442695, %v2429_v56  ;;  %v2430_v8 = vsub.f32 %v4889_v53, %v2355_v10  ;;  %v2431_v7 = vsub.f32 %v4891_v0, %v2355_v10 }
 0x5df   : > { %v2727_v58 = vpack.c.bf16 %v3520_v33, %v3516_v12  ;;  %v2615_v28 = vmul.f32 %v3520_v33, %v3520_v33  ;;  %v2758_v13 = vpack.c.bf16 %v2614_v18, %v2612_v44  ;;  %v5093_v61 = vmul.f32 %v3516_v12, %v2613_v52 }
 0x5e0   : > { %3529 = vpow2.f32 %v2528_v16  ;;  %v2532_v50 = vmul.f32 1.442695, %v2430_v8  ;;  %v2534_v39 = vmul.f32 1.442695, %v2431_v7  ;;  %v5095_v6 = vmul.f32 %v3518_v46, %v2614_v18 }
 0x5e1   : > { %3531 = vpow2.f32 %v2530_v20  ;;  %2822 = vmatprep.subr.bf16.mxu0 %v2727_v58  ;;  %v2759_v43 = vpack.c.bf16 %v2615_v28, %v2613_v52  ;;  %v5097_v31 = vmul.f32 %v3520_v33, %v2615_v28 }
 0x5e2   : > { %v3522_v51 = vpop.eup %3521  ;;  %3533 = vpow2.f32 %v2532_v50  ;;  %2823 = vmatpush1.bf16.xpose.msra.mxu0 %v2726_v62 }
 0x5e3   : > { %v3524_v0 = vpop.eup %3523  ;;  %3535 = vpow2.f32 %v2534_v39  ;;  %2863 = vmatprep.subr.bf16.mxu1 %v2759_v43  ;;  %v2358_v12 = vpop.xlane.xlu1 %2357  ;;  %v2616_v44 = vmul.f32 %v3522_v51, %v3522_v51 }
 0x5e4   : > { %v3526_v56 = vpop.eup %3525  ;;  %2864 = vmatpush1.bf16.xpose.msra.mxu1 %v2758_v13  ;;  %v2432_v52 = vsub.f32 %v4895_v26, %v2358_v12  ;;  %v2433_v33 = vsub.f32 %v4897_v41, %v2358_v12  ;;  %v2617_v10 = vmul.f32 %v3524_v0, %v3524_v0 }
 0x5e5   : > { %v3528_v18 = vpop.eup %3527  ;;  %v2361_v62 = vpop.xlane.xlu0 %2360  ;;  %v2728_v16 = vpack.c.bf16 %v3526_v56, %v3522_v51  ;;  %v2618_v20 = vmul.f32 %v3526_v56, %v3526_v56  ;;  %v5105_v8 = vmul.f32 %v3522_v51, %v2616_v44 }
 0x5e6   : > { %v2536_v7 = vmul.f32 1.442695, %v2432_v52  ;;  %v2538_v58 = vmul.f32 1.442695, %v2433_v33  ;;  %v2434_v28 = vsub.f32 %v4901_v49, %v2361_v62  ;;  %v2435_v50 = vsub.f32 %v4903_v29, %v2361_v62 }
 0x5e7   : > { %v2729_v39 = vpack.c.bf16 %v3528_v18, %v3524_v0  ;;  %v2619_v43 = vmul.f32 %v3528_v18, %v3528_v18  ;;  %v2760_v13 = vpack.c.bf16 %v2618_v20, %v2616_v44  ;;  %v5109_v53 = vmul.f32 %v3524_v0, %v2617_v10 }
 0x5e8   : > { %3537 = vpow2.f32 %v2536_v7  ;;  %v2540_v26 = vmul.f32 1.442695, %v2434_v28  ;;  %v2542_v41 = vmul.f32 1.442695, %v2435_v50  ;;  %v5111_v12 = vmul.f32 %v3526_v56, %v2618_v20 }
 0x5e9   : > { %3539 = vpow2.f32 %v2538_v58  ;;  %2824 = vmatprep.subr.bf16.mxu0 %v2729_v39  ;;  %v2761_v51 = vpack.c.bf16 %v2619_v43, %v2617_v10  ;;  %v5113_v46 = vmul.f32 %v3528_v18, %v2619_v43 }
 0x5ea   : > { %v3530_v52 = vpop.eup %3529  ;;  %3541 = vpow2.f32 %v2540_v26  ;;  %2825 = vmatpush1.bf16.xpose.msra.mxu0 %v2728_v16 }
 0x5eb   : > { %v3532_v29 = vpop.eup %3531  ;;  %3543 = vpow2.f32 %v2542_v41  ;;  %2865 = vmatprep.subr.bf16.mxu1 %v2761_v51  ;;  %v2364_v0 = vpop.xlane.xlu1 %2363  ;;  %v2620_v44 = vmul.f32 %v3530_v52, %v3530_v52 }
 0x5ec   : > { %v3534_v33 = vpop.eup %3533  ;;  %2866 = vmatpush1.bf16.xpose.msra.mxu1 %v2760_v13  ;;  %v2436_v10 = vsub.f32 %v4907_v11, %v2364_v0  ;;  %v2437_v18 = vsub.f32 %v4909_v22, %v2364_v0  ;;  %v2621_v62 = vmul.f32 %v3532_v29, %v3532_v29 }
 0x5ed   : > { %v3536_v20 = vpop.eup %3535  ;;  %v2367_v16 = vpop.xlane.xlu0 %2366  ;;  %v2730_v7 = vpack.c.bf16 %v3534_v33, %v3530_v52  ;;  %v2622_v58 = vmul.f32 %v3534_v33, %v3534_v33  ;;  %v5121_v28 = vmul.f32 %v3530_v52, %v2620_v44 }
 0x5ee   : > { %v2544_v50 = vmul.f32 1.442695, %v2436_v10  ;;  %v2546_v39 = vmul.f32 1.442695, %v2437_v18  ;;  %v2438_v43 = vsub.f32 %v4913_v35, %v2367_v16  ;;  %v2439_v26 = vsub.f32 %v4915_v5, %v2367_v16 }
 0x5ef   : > { %5560 = vst [vmem:[#allocation11_spill] sm:$0xff] %v5121_v28  ;;  %v2731_v41 = vpack.c.bf16 %v3536_v20, %v3532_v29  ;;  %v2623_v51 = vmul.f32 %v3536_v20, %v3536_v20  ;;  %v2762_v13 = vpack.c.bf16 %v2622_v58, %v2620_v44  ;;  %v5125_v49 = vmul.f32 %v3532_v29, %v2621_v62 }
 0x5f0   : > { %3545 = vpow2.f32 %v2544_v50  ;;  %v2548_v11 = vmul.f32 1.442695, %v2438_v43  ;;  %v2550_v22 = vmul.f32 1.442695, %v2439_v26  ;;  %v5127_v0 = vmul.f32 %v3534_v33, %v2622_v58 }
 0x5f1   : > { %3547 = vpow2.f32 %v2546_v39  ;;  %2826 = vmatprep.subr.bf16.mxu0 %v2731_v41  ;;  %v2763_v52 = vpack.c.bf16 %v2623_v51, %v2621_v62  ;;  %v5129_v56 = vmul.f32 %v3536_v20, %v2623_v51  ;;  %v5563_v51 = vld [vmem:[#allocation23_spill] sm:$0xff] }
 0x5f2   : > { %5561 = vst [vmem:[#allocation7_spill] sm:$0xff] %v5127_v0  ;;  %v3538_v10 = vpop.eup %3537  ;;  %3549 = vpow2.f32 %v2548_v11  ;;  %2827 = vmatpush1.bf16.xpose.msra.mxu0 %v2730_v7 }
 0x5f3   : > { %v3540_v5 = vpop.eup %3539  ;;  %3551 = vpow2.f32 %v2550_v22  ;;  %2867 = vmatprep.subr.bf16.mxu1 %v2763_v52  ;;  %v2370_v29 = vpop.xlane.xlu1 %2369  ;;  %v2624_v44 = vmul.f32 %v3538_v10, %v3538_v10  ;;  %v5564_v22 = vld [vmem:[#allocation24_spill] sm:$0xff] }
 0x5f4   : > { %v3542_v18 = vpop.eup %3541  ;;  %2868 = vmatpush1.bf16.xpose.msra.mxu1 %v2762_v13  ;;  %v2440_v62 = vsub.f32 %v4919_v4, %v2370_v29  ;;  %v2441_v20 = vsub.f32 %v4921_v60, %v2370_v29  ;;  %v2625_v16 = vmul.f32 %v3540_v5, %v3540_v5 }
 0x5f5   : > { %v3544_v58 = vpop.eup %3543  ;;  %v2373_v7 = vpop.xlane.xlu0 %2372  ;;  %v2732_v50 = vpack.c.bf16 %v3542_v18, %v3538_v10  ;;  %v2626_v39 = vmul.f32 %v3542_v18, %v3542_v18  ;;  %v5137_v43 = vmul.f32 %v3538_v10, %v2624_v44 }
 0x5f6   : > { %v2552_v26 = vmul.f32 1.442695, %v2440_v62  ;;  %v2554_v41 = vmul.f32 1.442695, %v2441_v20  ;;  %v2442_v11 = vsub.f32 %v5563_v51, %v2373_v7  ;;  %v2443_v52 = vsub.f32 %v5564_v22, %v2373_v7  ;;  %v5572_v20 = vld [vmem:[#allocation28_spill] sm:$0xff] }
 0x5f7   : > { %5562 = vst [vmem:[#allocation9_spill] sm:$0xff] %v5137_v43  ;;  %v2733_v35 = vpack.c.bf16 %v3544_v58, %v3540_v5  ;;  %v2627_v33 = vmul.f32 %v3544_v58, %v3544_v58  ;;  %v2764_v13 = vpack.c.bf16 %v2626_v39, %v2624_v44  ;;  %v5141_v28 = vmul.f32 %v3540_v5, %v2625_v16 }
 0x5f8   : > { %3553 = vpow2.f32 %v2552_v26  ;;  %v2556_v4 = vmul.f32 1.442695, %v2442_v11  ;;  %v2558_v60 = vmul.f32 1.442695, %v2443_v52  ;;  %v5143_v29 = vmul.f32 %v3542_v18, %v2626_v39 }
 0x5f9   : > { %5565 = vst [vmem:[#allocation10_spill] sm:$0xff] %v5141_v28  ;;  %3555 = vpow2.f32 %v2554_v41  ;;  %2828 = vmatprep.subr.bf16.mxu0 %v2733_v35  ;;  %v2765_v10 = vpack.c.bf16 %v2627_v33, %v2625_v16  ;;  %v5145_v0 = vmul.f32 %v3544_v58, %v2627_v33  ;;  %v5568_v35 = vld [vmem:[#allocation25_spill] sm:$0xff]  ;;  %v5569_v33 = vld [vmem:[#allocation26_spill] sm:$0xff] }
 0x5fa   : > { %5566 = vst [vmem:[#allocation12_spill] sm:$0xff] %v5143_v29  ;;  %v3546_v62 = vpop.eup %3545  ;;  %3557 = vpow2.f32 %v2556_v4  ;;  %2829 = vmatpush1.bf16.xpose.msra.mxu0 %v2732_v50 }
 0x5fb   : > { %5567 = vst [vmem:[#allocation6_spill] sm:$0xff] %v5145_v0  ;;  %v3548_v7 = vpop.eup %3547  ;;  %3559 = vpow2.f32 %v2558_v60  ;;  %2869 = vmatprep.subr.bf16.mxu1 %v2765_v10  ;;  %v2376_v5 = vpop.xlane.xlu1 %2375  ;;  %v2628_v44 = vmul.f32 %v3546_v62, %v3546_v62  ;;  %v5571_v60 = vld [vmem:[#allocation27_spill] sm:$0xff] }
 0x5fc   : > { %v3550_v39 = vpop.eup %3549  ;;  %2870 = vmatpush1.bf16.xpose.msra.mxu1 %v2764_v13  ;;  %v2444_v16 = vsub.f32 %v5568_v35, %v2376_v5  ;;  %v2445_v58 = vsub.f32 %v5569_v33, %v2376_v5  ;;  %v2629_v26 = vmul.f32 %v3548_v7, %v3548_v7 }
 0x5fd   : > { %v3552_v41 = vpop.eup %3551  ;;  %v2379_v50 = vpop.xlane.xlu0 %2378  ;;  %v2734_v51 = vpack.c.bf16 %v3550_v39, %v3546_v62  ;;  %v2630_v11 = vmul.f32 %v3550_v39, %v3550_v39  ;;  %v5153_v22 = vmul.f32 %v3546_v62, %v2628_v44 }
 0x5fe   : > { %v2560_v52 = vmul.f32 1.442695, %v2444_v16  ;;  %v2562_v4 = vmul.f32 1.442695, %v2445_v58  ;;  %v2446_v10 = vsub.f32 %v5571_v60, %v2379_v50  ;;  %v2447_v43 = vsub.f32 %v5572_v20, %v2379_v50  ;;  %v5580_v20 = vld [vmem:[#allocation4_spill] sm:$0xff] }
 0x5ff   : > { %5570 = vst [vmem:[#allocation17_spill] sm:$0xff] %v5153_v22  ;;  %v2735_v18 = vpack.c.bf16 %v3552_v41, %v3548_v7  ;;  %v2631_v29 = vmul.f32 %v3552_v41, %v3552_v41  ;;  %v2766_v13 = vpack.c.bf16 %v2630_v11, %v2628_v44  ;;  %v5157_v28 = vmul.f32 %v3548_v7, %v2629_v26 }
 0x600   : > { %3561 = vpow2.f32 %v2560_v52  ;;  %v2564_v5 = vmul.f32 1.442695, %v2446_v10  ;;  %v2566_v35 = vmul.f32 1.442695, %v2447_v43  ;;  %v5159_v33 = vmul.f32 %v3550_v39, %v2630_v11 }
 0x601   : > { %5573 = vst [vmem:[#allocation15_spill] sm:$0xff] %v5157_v28  ;;  %3563 = vpow2.f32 %v2562_v4  ;;  %2830 = vmatprep.subr.bf16.mxu0 %v2735_v18  ;;  %v2767_v62 = vpack.c.bf16 %v2631_v29, %v2629_v26  ;;  %v5161_v0 = vmul.f32 %v3552_v41, %v2631_v29  ;;  %v5576_v18 = vld [vmem:[#allocation29_spill] sm:$0xff]  ;;  %v5577_v29 = vld [vmem:[#allocation30_spill] sm:$0xff] }
 0x602   : > { %5574 = vst [vmem:[#allocation16_spill] sm:$0xff] %v5159_v33  ;;  %v3554_v16 = vpop.eup %3553  ;;  %3565 = vpow2.f32 %v2564_v5  ;;  %2831 = vmatpush1.bf16.xpose.msra.mxu0 %v2734_v51 }
 0x603   : > { %5575 = vst [vmem:[#allocation14_spill] sm:$0xff] %v5161_v0  ;;  %v3556_v58 = vpop.eup %3555  ;;  %3567 = vpow2.f32 %v2566_v35  ;;  %2871 = vmatprep.subr.bf16.mxu1 %v2767_v62  ;;  %v2382_v7 = vpop.xlane.xlu1 %2381  ;;  %v2632_v44 = vmul.f32 %v3554_v16, %v3554_v16  ;;  %v5579_v35 = vld [vmem:[#allocation5_spill] sm:$0xff] }
 0x604   : > { %v3558_v39 = vpop.eup %3557  ;;  %2872 = vmatpush1.bf16.xpose.msra.mxu1 %v2766_v13  ;;  %v2448_v26 = vsub.f32 %v5576_v18, %v2382_v7  ;;  %v2449_v41 = vsub.f32 %v5577_v29, %v2382_v7  ;;  %v2633_v50 = vmul.f32 %v3556_v58, %v3556_v58 }
 0x605   : > { %v3560_v11 = vpop.eup %3559  ;;  %v2385_v51 = vpop.xlane.xlu0 %2384  ;;  %v2736_v52 = vpack.c.bf16 %v3558_v39, %v3554_v16  ;;  %v2634_v4 = vmul.f32 %v3558_v39, %v3558_v39  ;;  %v5169_v60 = vmul.f32 %v3554_v16, %v2632_v44 }
 0x606   : > { %v2568_v10 = vmul.f32 1.442695, %v2448_v26  ;;  %v2570_v5 = vmul.f32 1.442695, %v2449_v41  ;;  %v2450_v62 = vsub.f32 %v5579_v35, %v2385_v51  ;;  %v2451_v22 = vsub.f32 %v5580_v20, %v2385_v51  ;;  %v5588_v20 = vld [vmem:[#allocation13_spill] sm:$0xff] }
 0x607   : > { %5578 = vst [vmem:[#allocation19_spill] sm:$0xff] %v5169_v60  ;;  %v2737_v43 = vpack.c.bf16 %v3560_v11, %v3556_v58  ;;  %v2635_v33 = vmul.f32 %v3560_v11, %v3560_v11  ;;  %v2768_v13 = vpack.c.bf16 %v2634_v4, %v2632_v44  ;;  %v5173_v28 = vmul.f32 %v3556_v58, %v2633_v50 }
 0x608   : > { %3569 = vpow2.f32 %v2568_v10  ;;  %v2572_v7 = vmul.f32 1.442695, %v2450_v62  ;;  %v2574_v18 = vmul.f32 1.442695, %v2451_v22  ;;  %v5175_v29 = vmul.f32 %v3558_v39, %v2634_v4 }
 0x609   : > { %5581 = vst [vmem:[#allocation20_spill] sm:$0xff] %v5173_v28  ;;  %3571 = vpow2.f32 %v2570_v5  ;;  %2832 = vmatprep.subr.bf16.mxu0 %v2737_v43  ;;  %v2769_v16 = vpack.c.bf16 %v2635_v33, %v2633_v50  ;;  %v5177_v0 = vmul.f32 %v3560_v11, %v2635_v33  ;;  %v5584_v43 = vld [vmem:[#allocation8_spill] sm:$0xff]  ;;  %v5585_v33 = vld [vmem:[#allocation2_spill] sm:$0xff] }
 0x60a   : > { %5582 = vst [vmem:[#allocation18_spill] sm:$0xff] %v5175_v29  ;;  %v3562_v26 = vpop.eup %3561  ;;  %3573 = vpow2.f32 %v2572_v7  ;;  %2833 = vmatpush1.bf16.xpose.msra.mxu0 %v2736_v52 }
 0x60b   : > { %5583 = vst [vmem:[#allocation23_spill] sm:$0xff] %v5177_v0  ;;  %v3564_v41 = vpop.eup %3563  ;;  %3575 = vpow2.f32 %v2574_v18  ;;  %2873 = vmatprep.subr.bf16.mxu1 %v2769_v16  ;;  %v2388_v58 = vpop.xlane.xlu1 %2387  ;;  %v2636_v44 = vmul.f32 %v3562_v26, %v3562_v26  ;;  %v5587_v18 = vld [vmem:[#allocation3_spill] sm:$0xff] }
 0x60c   : > { %v3566_v39 = vpop.eup %3565  ;;  %2874 = vmatpush1.bf16.xpose.msra.mxu1 %v2768_v13  ;;  %v2452_v50 = vsub.f32 %v5584_v43, %v2388_v58  ;;  %v2453_v11 = vsub.f32 %v5585_v33, %v2388_v58  ;;  %v2637_v51 = vmul.f32 %v3564_v41, %v3564_v41 }
 0x60d   : > { %v3568_v4 = vpop.eup %3567  ;;  %v2391_v52 = vpop.xlane.xlu0 %2390  ;;  %v2738_v10 = vpack.c.bf16 %v3566_v39, %v3562_v26  ;;  %v2638_v5 = vmul.f32 %v3566_v39, %v3566_v39  ;;  %v5185_v35 = vmul.f32 %v3562_v26, %v2636_v44 }
 0x60e   : > { %v2576_v62 = vmul.f32 1.442695, %v2452_v50  ;;  %v2578_v7 = vmul.f32 1.442695, %v2453_v11  ;;  %v2454_v16 = vsub.f32 %v5587_v18, %v2391_v52  ;;  %v2455_v60 = vsub.f32 %v5588_v20, %v2391_v52 }
 0x60f   : > { %5586 = vst [vmem:[#allocation24_spill] sm:$0xff] %v5185_v35  ;;  %v2739_v22 = vpack.c.bf16 %v3568_v4, %v3564_v41  ;;  %v2639_v29 = vmul.f32 %v3568_v4, %v3568_v4  ;;  %v2770_v13 = vpack.c.bf16 %v2638_v5, %v2636_v44  ;;  %v5189_v28 = vmul.f32 %v3564_v41, %v2637_v51 }
 0x610   : > { %3577 = vpow2.f32 %v2576_v62  ;;  %v2580_v58 = vmul.f32 1.442695, %v2454_v16  ;;  %v2582_v43 = vmul.f32 1.442695, %v2455_v60  ;;  %v5191_v33 = vmul.f32 %v3566_v39, %v2638_v5 }
 0x611   : > { %3579 = vpow2.f32 %v2578_v7  ;;  %2834 = vmatprep.subr.bf16.mxu0 %v2739_v22  ;;  %v2771_v26 = vpack.c.bf16 %v2639_v29, %v2637_v51  ;;  %v5193_v0 = vmul.f32 %v3568_v4, %v2639_v29 }
 0x612   : > { %v3570_v50 = vpop.eup %3569  ;;  %3581 = vpow2.f32 %v2580_v58  ;;  %2835 = vmatpush1.bf16.xpose.msra.mxu0 %v2738_v10 }
 0x613   : > { %v3572_v11 = vpop.eup %3571  ;;  %3583 = vpow2.f32 %v2582_v43  ;;  %2875 = vmatprep.subr.bf16.mxu1 %v2771_v26  ;;  %v2640_v41 = vmul.f32 %v3570_v50, %v3570_v50 }
 0x614   : > { %v3574_v44 = vpop.eup %3573  ;;  %2876 = vmatpush1.bf16.xpose.msra.mxu1 %v2770_v13  ;;  %v2641_v39 = vmul.f32 %v3572_v11, %v3572_v11 }
 0x615   : > { %v3576_v22 = vpop.eup %3575  ;;  %v2740_v51 = vpack.c.bf16 %v3574_v44, %v3570_v50  ;;  %v2642_v29 = vmul.f32 %v3574_v44, %v3574_v44  ;;  %v5199_v4 = vmul.f32 %v3570_v50, %v2640_v41 }
 0x616   : > { %v2741_v52 = vpack.c.bf16 %v3576_v22, %v3572_v11  ;;  %v2643_v10 = vmul.f32 %v3576_v22, %v3576_v22  ;;  %v5201_v5 = vmul.f32 %v3572_v11, %v2641_v39 }
 0x617   : > { %v2772_v62 = vpack.c.bf16 %v2642_v29, %v2640_v41  ;;  %v5203_v7 = vmul.f32 %v3574_v44, %v2642_v29 }
 0x618   : > { %2836 = vmatprep.subr.bf16.mxu0 %v2741_v52  ;;  %v2773_v18 = vpack.c.bf16 %v2643_v10, %v2641_v39  ;;  %v2707_v16 = vmul.f32 %v3576_v22, %v2643_v10 }
 0x619   : > { %v2804_v58 = vpack.c.bf16 %v5203_v7, %v5199_v4 }
 0x61a   : > { %v3578_v13 = vpop.eup %3577  ;;  %2837 = vmatpush1.bf16.xpose.msra.mxu0 %v2740_v51  ;;  %2877 = vmatprep.subr.bf16.mxu1 %v2773_v18  ;;  %v2805_v43 = vpack.c.bf16 %v2707_v16, %v5201_v5  ;;  %v5590_v18 = vld [vmem:[#allocation21_spill] sm:$0xff]  ;;  %v5591_v16 = vpack.c.bf16 %v4983_v9, %v4977_v45  ;;  %v5596_v45 = vpack.c.bf16 %v5015_v38, %v5009_v32 }
 0x61b   : > { %v3580_v26 = vpop.eup %3579  ;;  %v2644_v50 = vmul.f32 %v3578_v13, %v3578_v13  ;;  %v5598_v9 = vpack.c.bf16 %v5031_v42, %v5025_v14  ;;  %v5605_v32 = vpack.c.bf16 %v5097_v31, %v5093_v61  ;;  %v5606_v38 = vpack.c.bf16 %v5095_v6, %v5089_v47  ;;  %v5610_v42 = vld [vmem:[#allocation7_spill] sm:$0xff]  ;;  %v5623_v61 = vld [vmem:[#allocation17_spill] sm:$0xff]  ;;  %v5626_v6 = vld [vmem:[#allocation20_spill] sm:$0xff] }
 0x61c   : > { %v3582_v20 = vpop.eup %3581  ;;  %2878 = vmatpush1.bf16.xpose.msra.mxu1 %v2772_v62  ;;  %v2645_v11 = vmul.f32 %v3580_v26, %v3580_v26  ;;  %v5589_v62 = vpack.c.bf16 %v4985_v17, %v4981_v23  ;;  %v5595_v17 = vpack.c.bf16 %v5017_v24, %v5013_v59  ;;  %v5597_v23 = vpack.c.bf16 %v5033_v55, %v5029_v1  ;;  %v5625_v47 = vld [vmem:[#allocation23_spill] sm:$0xff] }
 0x61d   : > { %v3584_v60 = vpop.eup %3583  ;;  %v2742_v41 = vpack.c.bf16 %v3582_v20, %v3578_v13  ;;  %v2646_v44 = vmul.f32 %v3582_v20, %v3582_v20  ;;  %v2708_v29 = vmul.f32 %v3578_v13, %v2644_v50  ;;  %v5592_v13 = vld [vmem:[#allocation32_spill] sm:$0xff]  ;;  %v5603_v59 = vpack.c.bf16 %v5081_v34, %v5077_v21  ;;  %v5619_v21 = vld [vmem:[#allocation14_spill] sm:$0xff]  ;;  %v5620_v34 = vld [vmem:[#allocation15_spill] sm:$0xff] }
 0x61e   : > { %v2743_v52 = vpack.c.bf16 %v3584_v60, %v3580_v26  ;;  %v2647_v39 = vmul.f32 %v3584_v60, %v3584_v60  ;;  %v2709_v22 = vmul.f32 %v3580_v26, %v2645_v11  ;;  %v5604_v24 = vpack.c.bf16 %v5079_v36, %v5073_v48  ;;  %v5622_v36 = vld [vmem:[#allocation16_spill] sm:$0xff] }
 0x61f   : > { %v2774_v10 = vpack.c.bf16 %v2646_v44, %v2644_v50  ;;  %v2710_v35 = vmul.f32 %v3582_v20, %v2646_v44  ;;  %v5594_v20 = vpack.c.bf16 %v4999_v27, %v4993_v3  ;;  %v5601_v3 = vpack.c.bf16 %v5065_v2, %v5061_v40  ;;  %v5616_v2 = vld [vmem:[#allocation12_spill] sm:$0xff] }
 0x620   : > { %2838 = vmatprep.subr.bf16.mxu0 %v2743_v52  ;;  %v2775_v4 = vpack.c.bf16 %v2647_v39, %v2645_v11  ;;  %v2711_v51 = vmul.f32 %v3584_v60, %v2647_v39  ;;  %v5602_v27 = vpack.c.bf16 %v5063_v63, %v5057_v30  ;;  %v5607_v1 = vpack.c.bf16 %v5113_v46, %v5109_v53  ;;  %v5617_v30 = vld [vmem:[#allocation9_spill] sm:$0xff]  ;;  %v5628_v46 = vld [vmem:[#allocation18_spill] sm:$0xff] }
 0x621   : > { %v2806_v7 = vpack.c.bf16 %v2710_v35, %v2708_v29  ;;  %v5593_v35 = vpack.c.bf16 %v5001_v25, %v4997_v57  ;;  %v5599_v57 = vpack.c.bf16 %v5049_v37, %v5045_v19  ;;  %v5600_v25 = vpack.c.bf16 %v5047_v15, %v5041_v54  ;;  %v5611_v19 = vld [vmem:[#allocation11_spill] sm:$0xff]  ;;  %v5613_v54 = vld [vmem:[#allocation6_spill] sm:$0xff] }
 0x622   : > { %2839 = vmatpush1.bf16.xpose.msra.mxu0 %v2742_v41  ;;  %2879 = vmatprep.subr.bf16.mxu1 %v2775_v4  ;;  %v2807_v5 = vpack.c.bf16 %v2711_v51, %v2709_v22  ;;  %v5608_v55 = vpack.c.bf16 %v5111_v12, %v5105_v8  ;;  %v5609_v14 = vpack.c.bf16 %v5129_v56, %v5125_v49  ;;  %v5614_v15 = vld [vmem:[#allocation10_spill] sm:$0xff]  ;;  %v5629_v8 = vld [vmem:[#allocation19_spill] sm:$0xff]  ;;  %v5632_v56 = vld [vmem:[#allocation24_spill] sm:$0xff] }
 0x623   : > { %2890 = vmatprep.subr.bf16.mxu0 %v5589_v62  ;;  %v5612_v37 = vpack.c.bf16 %v5610_v42, %v5611_v19  ;;  %v5615_v40 = vpack.c.bf16 %v5613_v54, %v5614_v15  ;;  %v5618_v63 = vpack.c.bf16 %v5616_v2, %v5617_v30  ;;  %v5621_v48 = vpack.c.bf16 %v5619_v21, %v5620_v34  ;;  %v3598_v62 = vld [vmem:[%s5319_s2] sm:$0x77] }
 0x624   : > { %2880 = vmatpush1.bf16.xpose.msra.mxu1 %v2774_v10  ;;  %v5624_v31 = vpack.c.bf16 %v5622_v36, %v5623_v61  ;;  %v5627_v53 = vpack.c.bf16 %v5625_v47, %v5626_v6  ;;  %v5630_v12 = vpack.c.bf16 %v5628_v46, %v5629_v8  ;;  %v5631_v49 = vpack.c.bf16 %v5193_v0, %v5189_v28 }
 0x625   : > { %v5633_v60 = vpack.c.bf16 %v5191_v33, %v5632_v56 }
 0x629   : > { %2841 = vmatmul.mubr.bf16.vlgmr.msra.gmra.mrb[88].mxu0 %v5590_v18 }
 0x62a   : > { %2891 = vmatpush1.bf16.xpose.msra.mxu0 %v5591_v16  ;;  %2922 = vmatprep.mubr.bf16.mxu0 %v5592_v13  ;;  %v5635_v13 = vld [vmem:[#allocation31_spill] sm:$0xff] }
 0x62b   : > { %2882 = vmatmul.mubr.bf16.vlgmr.msra.gmra.mrb[92].mxu1 %v5590_v18  ;;  %2892 = vmatprep.subr.bf16.mxu0 %v5593_v35 }
 0x632   : > { %2893 = vmatpush1.bf16.xpose.msra.mxu0 %v5594_v20 }
 0x633   : > { %2894 = vmatprep.subr.bf16.mxu0 %v5595_v17 }
 0x63a   : > { %2895 = vmatpush1.bf16.xpose.msra.mxu0 %v5596_v45 }
 0x63b   : > { %2896 = vmatprep.subr.bf16.mxu0 %v5597_v23 }
 0x642   : > { %2897 = vmatpush1.bf16.xpose.msra.mxu0 %v5598_v9 }
 0x643   : > { %2898 = vmatprep.subr.bf16.mxu0 %v5599_v57 }
 0x64a   : > { %2899 = vmatpush1.bf16.xpose.msra.mxu0 %v5600_v25 }
 0x64b   : > { %2900 = vmatprep.subr.bf16.mxu0 %v5601_v3 }
 0x652   : > { %2901 = vmatpush1.bf16.xpose.msra.mxu0 %v5602_v27 }
 0x653   : > { %2902 = vmatprep.subr.bf16.mxu0 %v5603_v59 }
 0x65a   : > { %2903 = vmatpush1.bf16.xpose.msra.mxu0 %v5604_v24 }
 0x65b   : > { %2904 = vmatprep.subr.bf16.mxu0 %v5605_v32 }
 0x662   : > { %2905 = vmatpush1.bf16.xpose.msra.mxu0 %v5606_v38 }
 0x663   : > { %2906 = vmatprep.subr.bf16.mxu0 %v5607_v1 }
 0x66a   : > { %2907 = vmatpush1.bf16.xpose.msra.mxu0 %v5608_v55 }
 0x66b   : > { %2908 = vmatprep.subr.bf16.mxu0 %v5609_v14 }
 0x672   : > { %2909 = vmatpush1.bf16.xpose.msra.mxu0 %v5612_v37 }
 0x673   : > { %2910 = vmatprep.subr.bf16.mxu0 %v5615_v40 }
 0x67a   : > { %2911 = vmatpush1.bf16.xpose.msra.mxu0 %v5618_v63 }
 0x67b   : > { %2912 = vmatprep.subr.bf16.mxu0 %v5621_v48 }
 0x682   : > { %2913 = vmatpush1.bf16.xpose.msra.mxu0 %v5624_v31 }
 0x683   : > { %2914 = vmatprep.subr.bf16.mxu0 %v5627_v53 }
 0x68a   : > { %2915 = vmatpush1.bf16.xpose.msra.mxu0 %v5630_v12 }
 0x68b   : > { %2916 = vmatprep.subr.bf16.mxu0 %v5631_v49 }
 0x692   : > { %2917 = vmatpush1.bf16.xpose.msra.mxu0 %v5633_v60 }
 0x693   : > { %2918 = vmatprep.subr.bf16.mxu0 %v2805_v43  ;;  %v5634_v43 = vld [vmem:[#allocation22_spill] sm:$0xff] }
 0x69a   : > { %2919 = vmatpush1.bf16.xpose.msra.mxu0 %v2804_v58 }
 0x69b   : > { %2920 = vmatprep.subr.bf16.mxu0 %v2807_v5 }
 0x6a2   : > { %2921 = vmatpush1.bf16.xpose.msra.mxu0 %v2806_v7 }
 0x6a9   : > { %2923 = vmatmul.mubr.bf16.vlgmr.msra.gmra.mrb[92].mxu0 %v5590_v18 }
 0x6fc   : > { %v2842_v26 = vpop.f32.mrb[88].mxu0 }
 0x6fd   : > { %3585 = vrcp.f32 %v2842_v26  ;;  %v2844_v50 = vpop.f32.mrb[89].mxu0 }
 0x6fe   : > { %3587 = vrcp.f32 %v2844_v50  ;;  %v2846_v11 = vpop.f32.mrb[90].mxu0  ;;  %v2883_v41 = vpop.f32.mrb[92].mxu1 }
 0x6ff   : > { %3589 = vrcp.f32 %v2883_v41  ;;  %v2847_v44 = vpop.f32.mrb[91].mxu0  ;;  %v2885_v28 = vpop.f32.mrb[93].mxu1 }
 0x700   : > { %3591 = vrcp.f32 %v2885_v28  ;;  %v2887_v0 = vpop.f32.mrb[94].mxu1 }
 0x701   : > { %v2888_v29 = vpop.f32.mrb[95].mxu1 }
 0x707   : > { %v3586_v33 = vpop.eup %3585 }
 0x708   : > { %v3588_v52 = vpop.eup %3587  ;;  %v2940_v58 = vrot.slane %v3586_v33, %v5634_v43 }
 0x709   : > { %v3590_v39 = vpop.eup %3589  ;;  %v2944_v22 = vrot.slane %v3588_v52, %v5634_v43 }
 0x70a   : > { %v3592_v10 = vpop.eup %3591  ;;  %v2961_v4 = vmul.f32 %v2940_v58, %v2842_v26  ;;  %v2948_v51 = vrot.slane %v3590_v39, %v5634_v43 }
 0x70b   : > { %v2962_v7 = vmul.f32 %v2944_v22, %v2844_v50  ;;  %v2952_v5 = vrot.slane %v3592_v10, %v5634_v43 }
 0x70c   : > { %v2967_v18 = vsub.f32 %v2961_v4, %v3598_v62  ;;  %v2963_v16 = vmul.f32 %v2948_v51, %v2883_v41 }
 0x70d   : > { %v2968_v35 = vsub.f32 %v2962_v7, %v5635_v13  ;;  %v2964_v20 = vmul.f32 %v2952_v5, %v2885_v28 }
 0x70e   : > { %v2969_v17 = vmul.f32 0.5, %v2967_v18  ;;  %v2975_v45 = vsub.f32 %v2963_v16, %v3598_v62 }
 0x70f   : > { %v2970_v23 = vmul.f32 0.5, %v2968_v35  ;;  %v2976_v9 = vsub.f32 %v2964_v20, %v5635_v13 }
 0x710   : > { %3149 = vst [vmem:[%s3919_s18 + $0x10] sm:$0x3] %v2969_v17  ;;  %v2977_v57 = vmul.f32 0.5, %v2969_v17  ;;  %v2979_v25 = vmul.f32 0.5, %v2975_v45 }
 0x711   : > { %3150 = vst [vmem:[%s3919_s18 + $0x18] sm:$0x3] %v2970_v23  ;;  %v2978_v3 = vmul.f32 0.5, %v2970_v23  ;;  %v2980_v27 = vmul.f32 0.5, %v2976_v9 }
 0x712   : > { %v2981_v59 = vadd.f32 %v2979_v25, %v2977_v57 }
 0x713   : > { %v2982_v24 = vadd.f32 %v2980_v27, %v2978_v3 }
 0x714   : > { %v2985_v32 = vrot.slane %v2981_v59, 6  ;;  %v2993_v21 = vmul.f32 0.5, %v2981_v59 }
 0x715   : > { %v2986_v38 = vrot.slane %v2982_v24, 6  ;;  %v2994_v48 = vmul.f32 0.5, %v2982_v24 }
 0x716   : > { %3151 = vst [vmem:[%s3919_s18 + $0x10] sm:$0xc] %v2985_v32 }
 0x717   : > { %3152 = vst [vmem:[%s3919_s18 + $0x18] sm:$0xc] %v2986_v38 }
 0x77c   : > { %v2924_v1 = vpop.f32.mrb[92].mxu0 }
 0x77d   : > { %3593 = vrcp.f32 %v2924_v1  ;;  %v2926_v55 = vpop.f32.mrb[93].mxu0 }
 0x77e   : > { %3595 = vrcp.f32 %v2926_v55  ;;  %v2928_v14 = vpop.f32.mrb[94].mxu0 }
 0x77f   : > { %v2929_v42 = vpop.f32.mrb[95].mxu0 }
 0x787   : > { %v3594_v19 = vpop.eup %3593 }
 0x788   : > { %v3596_v37 = vpop.eup %3595  ;;  %v2956_v54 = vrot.slane %v3594_v19, %v5634_v43 }
 0x789   : > { %v2960_v15 = vrot.slane %v3596_v37, %v5634_v43 }
 0x78a   : > { %v2965_v40 = vmul.f32 %v2956_v54, %v2924_v1 }
 0x78b   : > { %v2966_v2 = vmul.f32 %v2960_v15, %v2926_v55 }
 0x78c   : > { %v2991_v30 = vsub.f32 %v2965_v40, %v3598_v62 }
 0x78d   : > { %v2992_v63 = vsub.f32 %v2966_v2, %v5635_v13 }
 0x78e   : > { %v2995_v34 = vmul.f32 0.5, %v2991_v30 }
 0x78f   : > { %v2996_v36 = vmul.f32 0.5, %v2992_v63 }
 0x790   : > { %v2997_v61 = vadd.f32 %v2995_v34, %v2993_v21 }
 0x791   : > { %v2998_v31 = vadd.f32 %v2996_v36, %v2994_v48 }
 0x792   : > { %v3001_v47 = vrot.slane %v2997_v61, 4 }
 0x793   : > { %v3002_v6 = vrot.slane %v2998_v31, 4 }
 0x794   : > { %3153 = vst [vmem:[%s3919_s18 + $0x10] sm:$0x30] %v3001_v47 }
 0x795   : > { %3154 = vst [vmem:[%s3919_s18 + $0x18] sm:$0x30] %v3002_v6 }
 0x796 PF: > { %s17_s24 = sadd.s32 1, %s3605_s24  }
 0x797   : > { %p14_p4 = scmp.ge.s32.totalorder %s17_s24, 4  }
 0x799   :  { %16 = sbr.rel (!%p14_p4) target bundleno = 1 (0x1), region = 86 }

</bundles_post_ra>
